<compile_context>
chip_gen: v5e
topology: v5e:2x2
jax: 0.10.0
libtpu: 0.0.40
codegen_flags: <defaults>
</compile_context>

<pallas_src>
import functools

import jax
import jax.numpy as jnp
from jax import lax
from jax.experimental import pallas as pl
from jax.experimental.pallas import tpu as pltpu


# ---------------------------------------------------------------------------
# Pallas kernels
# ---------------------------------------------------------------------------

def _conv_bn_relu_kernel(x_ref, w_ref, b_ref, o_ref):
    """o = relu(x @ w + b); BatchNorm (eval) is pre-folded into (w, b)."""
    acc = jnp.dot(x_ref[...], w_ref[...], preferred_element_type=jnp.float32)
    o_ref[...] = jnp.maximum(acc + b_ref[...], 0.0).astype(o_ref.dtype)


def _fc_head_kernel(x_ref, w1_ref, b1_ref, w2_ref, b2_ref, w3_ref, b3_ref, o_ref):
    """Fused FC head: relu(relu(x@w1+b1)@w2+b2)@w3+b3 (w3/b3 lane-padded to 128)."""
    h = jnp.dot(x_ref[...], w1_ref[...], preferred_element_type=jnp.float32) + b1_ref[...]
    h = jnp.maximum(h, 0.0)
    h = jnp.dot(h, w2_ref[...], preferred_element_type=jnp.float32) + b2_ref[...]
    h = jnp.maximum(h, 0.0)
    out = jnp.dot(h, w3_ref[...], preferred_element_type=jnp.float32) + b3_ref[...]
    o_ref[...] = out.astype(o_ref.dtype)


def _vmem_spec():
    # Whole-array block resident in VMEM, no grid, no pipelining.
    return pl.BlockSpec(memory_space=pltpu.MemorySpace.VMEM)


def _conv_bn_relu(patches, w, b):
    """patches: (M, K) f32, w: (K, Cout), b: (1, Cout) -> (M, Cout)."""
    m = patches.shape[0]
    cout = w.shape[1]
    return pl.pallas_call(
        _conv_bn_relu_kernel,
        out_shape=jax.ShapeDtypeStruct((m, cout), patches.dtype),
        in_specs=[_vmem_spec()] * 3,
        out_specs=_vmem_spec(),
    )(patches, w, b)


def _fc_head(feats, p):
    b = feats.shape[0]
    n_pad = p["fc3_w"].shape[1]
    return pl.pallas_call(
        _fc_head_kernel,
        out_shape=jax.ShapeDtypeStruct((b, n_pad), feats.dtype),
        in_specs=[_vmem_spec()] * 7,
        out_specs=_vmem_spec(),
    )(feats, p["fc1_w"], p["fc1_b"], p["fc2_w"], p["fc2_b"], p["fc3_w"], p["fc3_b"])


# ---------------------------------------------------------------------------
# Wrapper-side layout glue (data movement only)
# ---------------------------------------------------------------------------

def _im2col(x, pad):
    """x: (B, H, W, C) NHWC -> 3x3 stride-1 patches (B*Ho*Wo, 9*C), ordered (dy, dx, c),
    zero-padded along K to a multiple of 8."""
    if pad:
        x = jnp.pad(x, ((0, 0), (pad, pad), (pad, pad), (0, 0)))
    b, h, w, c = x.shape
    ho, wo = h - 2, w - 2
    cols = [x[:, dy:dy + ho, dx:dx + wo, :] for dy in range(3) for dx in range(3)]
    p = jnp.concatenate(cols, axis=-1).reshape(b * ho * wo, 9 * c)
    k_pad = (-p.shape[1]) % 8
    if k_pad:
        p = jnp.pad(p, ((0, 0), (0, k_pad)))
    return p, (b, ho, wo)


def _maxpool2x2(x):
    b, h, w, c = x.shape
    return x.reshape(b, h // 2, 2, w // 2, 2, c).max(axis=(2, 4))


# ---------------------------------------------------------------------------
# One-time weight preparation (outside the hot path)
# ---------------------------------------------------------------------------

def prepare_params(p, *, bn_eps=1e-5, lane_pad=128):
    """Fold eval-mode BatchNorm into the conv weights/biases and lay out every
    weight exactly as the kernels consume it (no per-call transposes)."""
    out = {}
    for i in range(1, 6):
        w, b = p[f"conv{i}_w"], p[f"conv{i}_b"]
        scale = p[f"bn{i}_gamma"] / jnp.sqrt(p[f"bn{i}_var"] + bn_eps)      # (Cout,)
        w_f = w * scale[:, None, None, None]
        b_f = (b - p[f"bn{i}_mean"]) * scale + p[f"bn{i}_beta"]
        cout, cin = w.shape[0], w.shape[1]
        w_mat = jnp.transpose(w_f, (2, 3, 1, 0)).reshape(9 * cin, cout)     # (dy,dx,ci) x co
        k_pad = (-w_mat.shape[0]) % 8
        if k_pad:
            w_mat = jnp.pad(w_mat, ((0, k_pad), (0, 0)))
        out[f"conv{i}_w"] = w_mat
        out[f"conv{i}_b"] = b_f.reshape(1, cout)

    # fc1: permute input features from PyTorch's NCHW flatten (c,h,w) to our NHWC
    # flatten (h,w,c); done once here.
    c, hh, ww = 64, 4, 4
    w1 = p["fc1_w"]
    w1 = w1.reshape(-1, c, hh, ww).transpose(0, 2, 3, 1).reshape(w1.shape[0], c * hh * ww)
    out["fc1_w"] = w1.T
    out["fc1_b"] = p["fc1_b"].reshape(1, -1)
    out["fc2_w"] = p["fc2_w"].T
    out["fc2_b"] = p["fc2_b"].reshape(1, -1)

    # fc3: lane-dense output — pad num_classes up to a multiple of 128.
    w3 = p["fc3_w"].T
    b3 = p["fc3_b"].reshape(1, -1)
    n_pad = (-w3.shape[1]) % lane_pad
    out["fc3_w"] = jnp.pad(w3, ((0, 0), (0, n_pad)))
    out["fc3_b"] = jnp.pad(b3, ((0, 0), (0, n_pad)))
    return out


# ---------------------------------------------------------------------------
# Forward pass (hot path: im2col/pool glue + Pallas kernels only)
# ---------------------------------------------------------------------------

_LAYERS = ((1, 0, False), (2, 0, True), (3, 0, False), (4, 0, False), (5, 1, True))


@functools.partial(jax.jit, static_argnames=("num_classes",))
def oct_net_forward(x_nchw, prepped, *, num_classes):
    x = jnp.transpose(x_nchw, (0, 2, 3, 1))                     # NCHW -> NHWC
    for i, pad, pool in _LAYERS:
        patches, (b, ho, wo) = _im2col(x, pad)
        cout = prepped[f"conv{i}_w"].shape[1]
        y = _conv_bn_relu(patches, prepped[f"conv{i}_w"], prepped[f"conv{i}_b"])
        x = y.reshape(b, ho, wo, cout)
        if pool:
            x = _maxpool2x2(x)
    feats = x.reshape(x.shape[0], -1)                           # NHWC flatten (fc1 pre-permuted)
    logits = _fc_head(feats, prepped)
    return logits[:, :num_classes]


# ---------------------------------------------------------------------------
# Pure-JAX PyTorch-faithful reference (eval mode)
# ---------------------------------------------------------------------------

def reference_forward(x, p, *, bn_eps=1e-5):
    hp = lax.Precision.HIGHEST

    def conv(z, w, b, pad):
        y = lax.conv_general_dilated(
            z, w, window_strides=(1, 1), padding=[(pad, pad), (pad, pad)],
            dimension_numbers=("NCHW", "OIHW", "NCHW"), precision=hp)
        return y + b.reshape(1, -1, 1, 1)

    def bn(z, i):
        g = p[f"bn{i}_gamma"].reshape(1, -1, 1, 1)
        bt = p[f"bn{i}_beta"].reshape(1, -1, 1, 1)
        m = p[f"bn{i}_mean"].reshape(1, -1, 1, 1)
        v = p[f"bn{i}_var"].reshape(1, -1, 1, 1)
        return g * (z - m) / jnp.sqrt(v + bn_eps) + bt

    def pool(z):
        return lax.reduce_window(z, -jnp.inf, lax.max, (1, 1, 2, 2), (1, 1, 2, 2), "VALID")

    z = x
    for i, pad, do_pool in _LAYERS:
        z = jnp.maximum(bn(conv(z, p[f"conv{i}_w"], p[f"conv{i}_b"], pad), i), 0.0)
        if do_pool:
            z = pool(z)
    z = z.reshape(z.shape[0], -1)
    z = jnp.maximum(jnp.dot(z, p["fc1_w"].T, precision=hp) + p["fc1_b"], 0.0)
    z = jnp.maximum(jnp.dot(z, p["fc2_w"].T, precision=hp) + p["fc2_b"], 0.0)
    return jnp.dot(z, p["fc3_w"].T, precision=hp) + p["fc3_b"]


# ---------------------------------------------------------------------------
# Demo / self-check
# ---------------------------------------------------------------------------

if __name__ == "__main__":
    B, Cin, H, W = 2, 1, 28, 28          # 28x28 input is what fc's 64*4*4 implies
    num_classes = 4

    keys = iter(jax.random.split(jax.random.PRNGKey(0), 64))

    def nxt():
        return next(keys)

    def conv_init(cout, cin):
        bound = 1.0 / (cin * 9) ** 0.5
        w = jax.random.uniform(nxt(), (cout, cin, 3, 3), jnp.float32, -bound, bound)
        b = jax.random.uniform(nxt(), (cout,), jnp.float32, -bound, bound)
        return w, b

    def bn_init(c):
        return (jax.random.uniform(nxt(), (c,), jnp.float32, 0.5, 1.5),
                jax.random.uniform(nxt(), (c,), jnp.float32, -0.2, 0.2),
                0.1 * jax.random.normal(nxt(), (c,), jnp.float32),
                jax.random.uniform(nxt(), (c,), jnp.float32, 0.5, 1.5))

    def fc_init(out_f, in_f):
        bound = 1.0 / in_f ** 0.5
        w = jax.random.uniform(nxt(), (out_f, in_f), jnp.float32, -bound, bound)
        b = jax.random.uniform(nxt(), (out_f,), jnp.float32, -bound, bound)
        return w, b

    params = {}
    for i, (cout, cin) in enumerate(((16, Cin), (16, 16), (64, 16), (64, 64), (64, 64)), start=1):
        params[f"conv{i}_w"], params[f"conv{i}_b"] = conv_init(cout, cin)
        (params[f"bn{i}_gamma"], params[f"bn{i}_beta"],
         params[f"bn{i}_mean"], params[f"bn{i}_var"]) = bn_init(cout)
    params["fc1_w"], params["fc1_b"] = fc_init(128, 64 * 4 * 4)
    params["fc2_w"], params["fc2_b"] = fc_init(128, 128)
    params["fc3_w"], params["fc3_b"] = fc_init(num_classes, 128)

    x = jax.random.normal(nxt(), (B, Cin, H, W), dtype=jnp.float32)

    prepped = prepare_params(params)                       # one-time weight prep
    out = oct_net_forward(x, prepped, num_classes=num_classes)
    out = jax.block_until_ready(out)

    ref = reference_forward(x, params)
    assert out.shape == (B, num_classes), out.shape
    assert jnp.allclose(out, ref, atol=5e-3, rtol=5e-3), float(jnp.max(jnp.abs(out - ref)))

    print("KERNEL_OK")
</pallas_src>

<mosaic_0001>
module attributes {stable_mosaic.version = 11 : i64} {
  func.func @_conv_bn_relu_kernel(%arg0: memref<1352x16xf32, #tpu.memory_space<vmem>>, %arg1: memref<16x16xf32, #tpu.memory_space<vmem>>, %arg2: memref<1x16xf32, #tpu.memory_space<vmem>>, %arg3: memref<1352x16xf32, #tpu.memory_space<vmem>>) attributes {dimension_semantics = [], scalar_prefetch = 0 : i64, scratch_operands = 0 : i64, tpu.core_type = #tpu.core_type<tc>} {
    %c0 = arith.constant 0 : index
    %c0_0 = arith.constant 0 : index
    %0 = vector.load %arg0[%c0, %c0_0] : memref<1352x16xf32, #tpu.memory_space<vmem>>, vector<1352x16xf32>
    %c0_1 = arith.constant 0 : index
    %c0_2 = arith.constant 0 : index
    %1 = vector.load %arg1[%c0_1, %c0_2] : memref<16x16xf32, #tpu.memory_space<vmem>>, vector<16x16xf32>
    %cst = arith.constant dense<0.000000e+00> : vector<1352x16xf32>
    %2 = tpu.matmul %0, %1, %cst {dimension_numbers = #tpu.dot_dimension_numbers<[1], [0], [0], [1], [0, 0, 1, 1], [], []>} : vector<1352x16xf32>, vector<16x16xf32>, vector<1352x16xf32> -> vector<1352x16xf32>
    %c0_3 = arith.constant 0 : index
    %c0_4 = arith.constant 0 : index
    %3 = vector.load %arg2[%c0_3, %c0_4] : memref<1x16xf32, #tpu.memory_space<vmem>>, vector<1x16xf32>
    %4 = vector.broadcast %3 : vector<1x16xf32> to vector<1352x16xf32>
    %5 = arith.addf %2, %4 : vector<1352x16xf32>
    %cst_5 = arith.constant 0.000000e+00 : f32
    %6 = vector.broadcast %cst_5 : f32 to vector<1352x16xf32>
    %7 = arith.maximumf %5, %6 : vector<1352x16xf32>
    %c0_6 = arith.constant 0 : index
    %c0_7 = arith.constant 0 : index
    %8 = vector.load %arg3[%c0_6, %c0_7] : memref<1352x16xf32, #tpu.memory_space<vmem>>, vector<1352x16xf32>
    tpu.vector_store %arg3[%c0_6, %c0_7], %7 {strides = array<i32>} : memref<1352x16xf32, #tpu.memory_space<vmem>>, vector<1352x16xf32>,
    return
  }
}

module attributes {stable_mosaic.version = 11 : i64} {
  func.func @_conv_bn_relu_kernel(%arg0: memref<1152x144xf32, #tpu.memory_space<vmem>>, %arg1: memref<144x16xf32, #tpu.memory_space<vmem>>, %arg2: memref<1x16xf32, #tpu.memory_space<vmem>>, %arg3: memref<1152x16xf32, #tpu.memory_space<vmem>>) attributes {dimension_semantics = [], scalar_prefetch = 0 : i64, scratch_operands = 0 : i64, tpu.core_type = #tpu.core_type<tc>} {
    %c0 = arith.constant 0 : index
    %c0_0 = arith.constant 0 : index
    %0 = vector.load %arg0[%c0, %c0_0] : memref<1152x144xf32, #tpu.memory_space<vmem>>, vector<1152x144xf32>
    %c0_1 = arith.constant 0 : index
    %c0_2 = arith.constant 0 : index
    %1 = vector.load %arg1[%c0_1, %c0_2] : memref<144x16xf32, #tpu.memory_space<vmem>>, vector<144x16xf32>
    %cst = arith.constant dense<0.000000e+00> : vector<1152x16xf32>
    %2 = tpu.matmul %0, %1, %cst {dimension_numbers = #tpu.dot_dimension_numbers<[1], [0], [0], [1], [0, 0, 1, 1], [], []>} : vector<1152x144xf32>, vector<144x16xf32>, vector<1152x16xf32> -> vector<1152x16xf32>
    %c0_3 = arith.constant 0 : index
    %c0_4 = arith.constant 0 : index
    %3 = vector.load %arg2[%c0_3, %c0_4] : memref<1x16xf32, #tpu.memory_space<vmem>>, vector<1x16xf32>
    %4 = vector.broadcast %3 : vector<1x16xf32> to vector<1152x16xf32>
    %5 = arith.addf %2, %4 : vector<1152x16xf32>
    %cst_5 = arith.constant 0.000000e+00 : f32
    %6 = vector.broadcast %cst_5 : f32 to vector<1152x16xf32>
    %7 = arith.maximumf %5, %6 : vector<1152x16xf32>
    %c0_6 = arith.constant 0 : index
    %c0_7 = arith.constant 0 : index
    %8 = vector.load %arg3[%c0_6, %c0_7] : memref<1152x16xf32, #tpu.memory_space<vmem>>, vector<1152x16xf32>
    tpu.vector_store %arg3[%c0_6, %c0_7], %7 {strides = array<i32>} : memref<1152x16xf32, #tpu.memory_space<vmem>>, vector<1152x16xf32>,
    return
  }
}

module attributes {stable_mosaic.version = 11 : i64} {
  func.func @_conv_bn_relu_kernel(%arg0: memref<200x144xf32, #tpu.memory_space<vmem>>, %arg1: memref<144x64xf32, #tpu.memory_space<vmem>>, %arg2: memref<1x64xf32, #tpu.memory_space<vmem>>, %arg3: memref<200x64xf32, #tpu.memory_space<vmem>>) attributes {dimension_semantics = [], scalar_prefetch = 0 : i64, scratch_operands = 0 : i64, tpu.core_type = #tpu.core_type<tc>} {
    %c0 = arith.constant 0 : index
    %c0_0 = arith.constant 0 : index
    %0 = vector.load %arg0[%c0, %c0_0] : memref<200x144xf32, #tpu.memory_space<vmem>>, vector<200x144xf32>
    %c0_1 = arith.constant 0 : index
    %c0_2 = arith.constant 0 : index
    %1 = vector.load %arg1[%c0_1, %c0_2] : memref<144x64xf32, #tpu.memory_space<vmem>>, vector<144x64xf32>
    %cst = arith.constant dense<0.000000e+00> : vector<200x64xf32>
    %2 = tpu.matmul %0, %1, %cst {dimension_numbers = #tpu.dot_dimension_numbers<[1], [0], [0], [1], [0, 0, 1, 1], [], []>} : vector<200x144xf32>, vector<144x64xf32>, vector<200x64xf32> -> vector<200x64xf32>
    %c0_3 = arith.constant 0 : index
    %c0_4 = arith.constant 0 : index
    %3 = vector.load %arg2[%c0_3, %c0_4] : memref<1x64xf32, #tpu.memory_space<vmem>>, vector<1x64xf32>
    %4 = vector.broadcast %3 : vector<1x64xf32> to vector<200x64xf32>
    %5 = arith.addf %2, %4 : vector<200x64xf32>
    %cst_5 = arith.constant 0.000000e+00 : f32
    %6 = vector.broadcast %cst_5 : f32 to vector<200x64xf32>
    %7 = arith.maximumf %5, %6 : vector<200x64xf32>
    %c0_6 = arith.constant 0 : index
    %c0_7 = arith.constant 0 : index
    %8 = vector.load %arg3[%c0_6, %c0_7] : memref<200x64xf32, #tpu.memory_space<vmem>>, vector<200x64xf32>
    tpu.vector_store %arg3[%c0_6, %c0_7], %7 {strides = array<i32>} : memref<200x64xf32, #tpu.memory_space<vmem>>, vector<200x64xf32>,
    return
  }
}

module attributes {stable_mosaic.version = 11 : i64} {
  func.func @_conv_bn_relu_kernel(%arg0: memref<128x576xf32, #tpu.memory_space<vmem>>, %arg1: memref<576x64xf32, #tpu.memory_space<vmem>>, %arg2: memref<1x64xf32, #tpu.memory_space<vmem>>, %arg3: memref<128x64xf32, #tpu.memory_space<vmem>>) attributes {dimension_semantics = [], scalar_prefetch = 0 : i64, scratch_operands = 0 : i64, tpu.core_type = #tpu.core_type<tc>} {
    %c0 = arith.constant 0 : index
    %c0_0 = arith.constant 0 : index
    %0 = vector.load %arg0[%c0, %c0_0] : memref<128x576xf32, #tpu.memory_space<vmem>>, vector<128x576xf32>
    %c0_1 = arith.constant 0 : index
    %c0_2 = arith.constant 0 : index
    %1 = vector.load %arg1[%c0_1, %c0_2] : memref<576x64xf32, #tpu.memory_space<vmem>>, vector<576x64xf32>
    %cst = arith.constant dense<0.000000e+00> : vector<128x64xf32>
    %2 = tpu.matmul %0, %1, %cst {dimension_numbers = #tpu.dot_dimension_numbers<[1], [0], [0], [1], [0, 0, 1, 1], [], []>} : vector<128x576xf32>, vector<576x64xf32>, vector<128x64xf32> -> vector<128x64xf32>
    %c0_3 = arith.constant 0 : index
    %c0_4 = arith.constant 0 : index
    %3 = vector.load %arg2[%c0_3, %c0_4] : memref<1x64xf32, #tpu.memory_space<vmem>>, vector<1x64xf32>
    %4 = vector.broadcast %3 : vector<1x64xf32> to vector<128x64xf32>
    %5 = arith.addf %2, %4 : vector<128x64xf32>
    %cst_5 = arith.constant 0.000000e+00 : f32
    %6 = vector.broadcast %cst_5 : f32 to vector<128x64xf32>
    %7 = arith.maximumf %5, %6 : vector<128x64xf32>
    %c0_6 = arith.constant 0 : index
    %c0_7 = arith.constant 0 : index
    %8 = vector.load %arg3[%c0_6, %c0_7] : memref<128x64xf32, #tpu.memory_space<vmem>>, vector<128x64xf32>
    tpu.vector_store %arg3[%c0_6, %c0_7], %7 {strides = array<i32>} : memref<128x64xf32, #tpu.memory_space<vmem>>, vector<128x64xf32>,
    return
  }
}

module attributes {stable_mosaic.version = 11 : i64} {
  func.func @_fc_head_kernel(%arg0: memref<2x1024xf32, #tpu.memory_space<vmem>>, %arg1: memref<1024x128xf32, #tpu.memory_space<vmem>>, %arg2: memref<1x128xf32, #tpu.memory_space<vmem>>, %arg3: memref<128x128xf32, #tpu.memory_space<vmem>>, %arg4: memref<1x128xf32, #tpu.memory_space<vmem>>, %arg5: memref<128x128xf32, #tpu.memory_space<vmem>>, %arg6: memref<1x128xf32, #tpu.memory_space<vmem>>, %arg7: memref<2x128xf32, #tpu.memory_space<vmem>>) attributes {dimension_semantics = [], scalar_prefetch = 0 : i64, scratch_operands = 0 : i64, tpu.core_type = #tpu.core_type<tc>} {
    %c0 = arith.constant 0 : index
    %c0_0 = arith.constant 0 : index
    %0 = vector.load %arg0[%c0, %c0_0] : memref<2x1024xf32, #tpu.memory_space<vmem>>, vector<2x1024xf32>
    %c0_1 = arith.constant 0 : index
    %c0_2 = arith.constant 0 : index
    %1 = vector.load %arg1[%c0_1, %c0_2] : memref<1024x128xf32, #tpu.memory_space<vmem>>, vector<1024x128xf32>
    %cst = arith.constant dense<0.000000e+00> : vector<2x128xf32>
    %2 = tpu.matmul %0, %1, %cst {dimension_numbers = #tpu.dot_dimension_numbers<[1], [0], [0], [1], [0, 0, 1, 1], [], []>} : vector<2x1024xf32>, vector<1024x128xf32>, vector<2x128xf32> -> vector<2x128xf32>
    %c0_3 = arith.constant 0 : index
    %c0_4 = arith.constant 0 : index
    %3 = vector.load %arg2[%c0_3, %c0_4] : memref<1x128xf32, #tpu.memory_space<vmem>>, vector<1x128xf32>
    %4 = vector.broadcast %3 : vector<1x128xf32> to vector<2x128xf32>
    %5 = arith.addf %2, %4 : vector<2x128xf32>
    %cst_5 = arith.constant 0.000000e+00 : f32
    %6 = vector.broadcast %cst_5 : f32 to vector<2x128xf32>
    %7 = arith.maximumf %5, %6 : vector<2x128xf32>
    %c0_6 = arith.constant 0 : index
    %c0_7 = arith.constant 0 : index
    %8 = vector.load %arg3[%c0_6, %c0_7] : memref<128x128xf32, #tpu.memory_space<vmem>>, vector<128x128xf32>
    %cst_8 = arith.constant dense<0.000000e+00> : vector<2x128xf32>
    %9 = tpu.matmul %7, %8, %cst_8 {dimension_numbers = #tpu.dot_dimension_numbers<[1], [0], [0], [1], [0, 0, 1, 1], [], []>} : vector<2x128xf32>, vector<128x128xf32>, vector<2x128xf32> -> vector<2x128xf32>
    %c0_9 = arith.constant 0 : index
    %c0_10 = arith.constant 0 : index
    %10 = vector.load %arg4[%c0_9, %c0_10] : memref<1x128xf32, #tpu.memory_space<vmem>>, vector<1x128xf32>
    %11 = vector.broadcast %10 : vector<1x128xf32> to vector<2x128xf32>
    %12 = arith.addf %9, %11 : vector<2x128xf32>
    %cst_11 = arith.constant 0.000000e+00 : f32
    %13 = vector.broadcast %cst_11 : f32 to vector<2x128xf32>
    %14 = arith.maximumf %12, %13 : vector<2x128xf32>
    %c0_12 = arith.constant 0 : index
    %c0_13 = arith.constant 0 : index
    %15 = vector.load %arg5[%c0_12, %c0_13] : memref<128x128xf32, #tpu.memory_space<vmem>>, vector<128x128xf32>
    %cst_14 = arith.constant dense<0.000000e+00> : vector<2x128xf32>
    %16 = tpu.matmul %14, %15, %cst_14 {dimension_numbers = #tpu.dot_dimension_numbers<[1], [0], [0], [1], [0, 0, 1, 1], [], []>} : vector<2x128xf32>, vector<128x128xf32>, vector<2x128xf32> -> vector<2x128xf32>
    %c0_15 = arith.constant 0 : index
    %c0_16 = arith.constant 0 : index
    %17 = vector.load %arg6[%c0_15, %c0_16] : memref<1x128xf32, #tpu.memory_space<vmem>>, vector<1x128xf32>
    %18 = vector.broadcast %17 : vector<1x128xf32> to vector<2x128xf32>
    %19 = arith.addf %16, %18 : vector<2x128xf32>
    %c0_17 = arith.constant 0 : index
    %c0_18 = arith.constant 0 : index
    %20 = vector.load %arg7[%c0_17, %c0_18] : memref<2x128xf32, #tpu.memory_space<vmem>>, vector<2x128xf32>
    tpu.vector_store %arg7[%c0_17, %c0_18], %19 {strides = array<i32>} : memref<2x128xf32, #tpu.memory_space<vmem>>, vector<2x128xf32>,
    return
  }
}

</mosaic_0001>

<bundles_post_ra>
// kernel: oct_net_forward.6
= control target key start
LH: loop header
LB: loop body
LE: loop exit
PB: predicated region body
PF: predicated region fallthrough
CT: control target
= control target key end

     0   :  { %vm189_vm0 = vcmask 130048   ;;  %s3297_s1 = inlined_call_operand.vmem [shape: f32[16,16], index: 1, kind: input, shape index: {}]   ;;  %s3298_s0 = inlined_call_operand.vmem [shape: f32[1352,16], index: 0, kind: input, shape index: {}]   ;;  %s3299_s2 = inlined_call_operand.vmem [shape: f32[1,16], index: 2, kind: input, shape index: {}]   ;;  %s3300_s3 = inlined_call_operand.vmem [shape: f32[1352,16], index: 3, kind: output, shape index: {}]  }
   0x1   :  { %v184_v0 = vld [vmem:[%s3297_s1 + $0x8] sm:$0xff]  ;;  %v183_v1 = vld [vmem:[%s3297_s1] sm:$0xff]  ;;  %v56_v3 = vld [vmem:[%s3298_s0 + $0x150] sm:$0xff] }
   0x2   :  { %1733 = vmatpush.msra.mxu2 %v184_v0  ;;  %v99_v2 = vld [vmem:[%s3298_s0 + $0x2a8] sm:$0xff]  ;;  %1732 = vmatpush.msra.mxu1 %v184_v0  ;;  %v14_v4 = vld [vmem:[%s3298_s0] sm:$0xff]  ;;  %v100_v6 = vld [vmem:[%s3298_s0 + $0x2b0] sm:$0xff] }
   0x3   :  { %711 = vmatpush.msra.mxu0 %v184_v0  ;;  %1734 = vmatpush.msra.mxu3 %v184_v0  ;;  %v142_v5 = vld [vmem:[%s3298_s0 + $0x400] sm:$0xff]  ;;  %v57_v7 = vld [vmem:[%s3298_s0 + $0x158] sm:$0xff]  ;;  %v15_v8 = vld [vmem:[%s3298_s0 + $0x8] sm:$0xff] }
   0x4   :  { %1736 = vmatpush.msra.mxu2 %v183_v1  ;;  %1735 = vmatpush.msra.mxu1 %v183_v1  ;;  %v143_v9 = vld [vmem:[%s3298_s0 + $0x408] sm:$0xff]  ;;  %v101_v10 = vld [vmem:[%s3298_s0 + $0x2b8] sm:$0xff]  ;;  %v58_v11 = vld [vmem:[%s3298_s0 + $0x160] sm:$0xff] }
   0x5   :  { %1648 = vmatmul.msk.f32.vlgmr.msra.gmra.mxu2 %vm189_vm0, %v99_v2  ;;  %1605 = vmatmul.msk.f32.vlgmr.msra.gmra.mxu1 %vm189_vm0, %v56_v3  ;;  %v16_v12 = vld [vmem:[%s3298_s0 + $0x10] sm:$0xff]  ;;  %v102_v14 = vld [vmem:[%s3298_s0 + $0x2c0] sm:$0xff]  ;;  %v59_v15 = vld [vmem:[%s3298_s0 + $0x168] sm:$0xff] }
   0x6   :  { %712 = vmatpush.msra.mxu0 %v183_v1  ;;  %1737 = vmatpush.msra.mxu3 %v183_v1  ;;  %v144_v13 = vld [vmem:[%s3298_s0 + $0x410] sm:$0xff]  ;;  %v17_v16 = vld [vmem:[%s3298_s0 + $0x18] sm:$0xff]  ;;  %v103_v18 = vld [vmem:[%s3298_s0 + $0x2c8] sm:$0xff] }
   0x7   :  { %1563 = vmatmul.msk.f32.vlgmr.msra.gmra.mxu0 %vm189_vm0, %v14_v4  ;;  %1691 = vmatmul.msk.f32.vlgmr.msra.gmra.mxu3 %vm189_vm0, %v142_v5  ;;  %v145_v17 = vld [vmem:[%s3298_s0 + $0x418] sm:$0xff]  ;;  %v60_v19 = vld [vmem:[%s3298_s0 + $0x170] sm:$0xff]  ;;  %v18_v20 = vld [vmem:[%s3298_s0 + $0x20] sm:$0xff] }
   0x8   :  { %v146_v21 = vld [vmem:[%s3298_s0 + $0x420] sm:$0xff]  ;;  %v104_v22 = vld [vmem:[%s3298_s0 + $0x2d0] sm:$0xff]  ;;  %v61_v23 = vld [vmem:[%s3298_s0 + $0x178] sm:$0xff] }
   0x9   :  { %v19_v24 = vld [vmem:[%s3298_s0 + $0x28] sm:$0xff]  ;;  %v105_v26 = vld [vmem:[%s3298_s0 + $0x2d8] sm:$0xff]  ;;  %v62_v27 = vld [vmem:[%s3298_s0 + $0x180] sm:$0xff] }
   0xa   :  { %v147_v25 = vld [vmem:[%s3298_s0 + $0x428] sm:$0xff]  ;;  %v20_v28 = vld [vmem:[%s3298_s0 + $0x30] sm:$0xff]  ;;  %v106_v30 = vld [vmem:[%s3298_s0 + $0x2e0] sm:$0xff] }
   0xb   :  { %v148_v29 = vld [vmem:[%s3298_s0 + $0x430] sm:$0xff]  ;;  %v63_v31 = vld [vmem:[%s3298_s0 + $0x188] sm:$0xff]  ;;  %v21_v32 = vld [vmem:[%s3298_s0 + $0x38] sm:$0xff] }
   0xc   :  { %v149_v33 = vld [vmem:[%s3298_s0 + $0x438] sm:$0xff]  ;;  %v107_v34 = vld [vmem:[%s3298_s0 + $0x2e8] sm:$0xff]  ;;  %v64_v35 = vld [vmem:[%s3298_s0 + $0x190] sm:$0xff] }
   0xd   :  { %1649 = vmatmul.msk.f32.gmra.mxu2 %vm189_vm0, %v100_v6  ;;  %1606 = vmatmul.msk.f32.gmra.mxu1 %vm189_vm0, %v57_v7  ;;  %v22_v36 = vld [vmem:[%s3298_s0 + $0x40] sm:$0xff]  ;;  %v108_v38 = vld [vmem:[%s3298_s0 + $0x2f0] sm:$0xff]  ;;  %v65_v39 = vld [vmem:[%s3298_s0 + $0x198] sm:$0xff] }
   0xe   :  { %v150_v37 = vld [vmem:[%s3298_s0 + $0x440] sm:$0xff]  ;;  %v23_v40 = vld [vmem:[%s3298_s0 + $0x48] sm:$0xff]  ;;  %v109_v42 = vld [vmem:[%s3298_s0 + $0x2f8] sm:$0xff] }
   0xf   :  { %1564 = vmatmul.msk.f32.gmra.mxu0 %vm189_vm0, %v15_v8  ;;  %1692 = vmatmul.msk.f32.gmra.mxu3 %vm189_vm0, %v143_v9  ;;  %v151_v41 = vld [vmem:[%s3298_s0 + $0x448] sm:$0xff]  ;;  %v66_v43 = vld [vmem:[%s3298_s0 + $0x1a0] sm:$0xff]  ;;  %v24_v44 = vld [vmem:[%s3298_s0 + $0x50] sm:$0xff] }
  0x10   :  { %v152_v45 = vld [vmem:[%s3298_s0 + $0x450] sm:$0xff]  ;;  %v110_v46 = vld [vmem:[%s3298_s0 + $0x300] sm:$0xff]  ;;  %v67_v47 = vld [vmem:[%s3298_s0 + $0x1a8] sm:$0xff] }
  0x11   :  { %v25_v48 = vld [vmem:[%s3298_s0 + $0x58] sm:$0xff]  ;;  %v111_v50 = vld [vmem:[%s3298_s0 + $0x308] sm:$0xff]  ;;  %v68_v51 = vld [vmem:[%s3298_s0 + $0x1b0] sm:$0xff] }
  0x12   :  { %v153_v49 = vld [vmem:[%s3298_s0 + $0x458] sm:$0xff]  ;;  %v26_v52 = vld [vmem:[%s3298_s0 + $0x60] sm:$0xff]  ;;  %v112_v54 = vld [vmem:[%s3298_s0 + $0x310] sm:$0xff] }
  0x13   :  { %v154_v53 = vld [vmem:[%s3298_s0 + $0x460] sm:$0xff]  ;;  %v69_v55 = vld [vmem:[%s3298_s0 + $0x1b8] sm:$0xff]  ;;  %v27_v56 = vld [vmem:[%s3298_s0 + $0x68] sm:$0xff] }
  0x14   :  { %v155_v57 = vld [vmem:[%s3298_s0 + $0x468] sm:$0xff]  ;;  %v113_v58 = vld [vmem:[%s3298_s0 + $0x318] sm:$0xff]  ;;  %v70_v59 = vld [vmem:[%s3298_s0 + $0x1c0] sm:$0xff] }
  0x15   :  { %1650 = vmatmul.msk.f32.gmra.mxu2 %vm189_vm0, %v101_v10  ;;  %1607 = vmatmul.msk.f32.gmra.mxu1 %vm189_vm0, %v58_v11  ;;  %v28_v60 = vld [vmem:[%s3298_s0 + $0x70] sm:$0xff]  ;;  %v114_v62 = vld [vmem:[%s3298_s0 + $0x320] sm:$0xff]  ;;  %v71_v63 = vld [vmem:[%s3298_s0 + $0x1c8] sm:$0xff] }
  0x16   :  { %v156_v61 = vld [vmem:[%s3298_s0 + $0x470] sm:$0xff]  ;;  %v29_v0 = vld [vmem:[%s3298_s0 + $0x78] sm:$0xff]  ;;  %v2023_v2 = vld [vmem:[%s3299_s2] ss:$0 sm:$0xff] }
  0x17   :  { %1565 = vmatmul.msk.f32.gmra.mxu0 %vm189_vm0, %v16_v12  ;;  %1693 = vmatmul.msk.f32.gmra.mxu3 %vm189_vm0, %v144_v13  ;;  %v157_v1 = vld [vmem:[%s3298_s0 + $0x478] sm:$0xff]  ;;  %v115_v3 = vld [vmem:[%s3298_s0 + $0x328] sm:$0xff]  ;;  %v72_v5 = vld [vmem:[%s3298_s0 + $0x1d0] sm:$0xff] }
  0x18   :  { %v30_v8 = vld [vmem:[%s3298_s0 + $0x80] sm:$0xff] }
  0x19   :  { %v158_v9 = vld [vmem:[%s3298_s0 + $0x480] sm:$0xff] }
  0x1d   :  { %1651 = vmatmul.msk.f32.gmra.mxu2 %vm189_vm0, %v102_v14  ;;  %1608 = vmatmul.msk.f32.gmra.mxu1 %vm189_vm0, %v59_v15  ;;  %v116_v15 = vld [vmem:[%s3298_s0 + $0x330] sm:$0xff] }
  0x1f   :  { %1566 = vmatmul.msk.f32.gmra.mxu0 %vm189_vm0, %v17_v16  ;;  %1694 = vmatmul.msk.f32.gmra.mxu3 %vm189_vm0, %v145_v17  ;;  %v73_v17 = vld [vmem:[%s3298_s0 + $0x1d8] sm:$0xff] }
  0x25   :  { %1652 = vmatmul.msk.f32.gmra.mxu2 %vm189_vm0, %v103_v18  ;;  %1609 = vmatmul.msk.f32.gmra.mxu1 %vm189_vm0, %v60_v19 }
  0x27   :  { %1567 = vmatmul.msk.f32.gmra.mxu0 %vm189_vm0, %v18_v20  ;;  %1695 = vmatmul.msk.f32.gmra.mxu3 %vm189_vm0, %v146_v21 }
  0x2d   :  { %1653 = vmatmul.msk.f32.gmra.mxu2 %vm189_vm0, %v104_v22  ;;  %1610 = vmatmul.msk.f32.gmra.mxu1 %vm189_vm0, %v61_v23  ;;  %v31_v23 = vld [vmem:[%s3298_s0 + $0x88] sm:$0xff] }
  0x2f   :  { %1568 = vmatmul.msk.f32.gmra.mxu0 %vm189_vm0, %v19_v24  ;;  %1696 = vmatmul.msk.f32.gmra.mxu3 %vm189_vm0, %v147_v25  ;;  %v159_v24 = vld [vmem:[%s3298_s0 + $0x488] sm:$0xff] }
  0x35   :  { %1654 = vmatmul.msk.f32.gmra.mxu2 %vm189_vm0, %v105_v26  ;;  %1611 = vmatmul.msk.f32.gmra.mxu1 %vm189_vm0, %v62_v27 }
  0x37   :  { %1569 = vmatmul.msk.f32.gmra.mxu0 %vm189_vm0, %v20_v28  ;;  %1697 = vmatmul.msk.f32.gmra.mxu3 %vm189_vm0, %v148_v29 }
  0x3d   :  { %1655 = vmatmul.msk.f32.gmra.mxu2 %vm189_vm0, %v106_v30  ;;  %1612 = vmatmul.msk.f32.gmra.mxu1 %vm189_vm0, %v63_v31  ;;  %v117_v31 = vld [vmem:[%s3298_s0 + $0x338] sm:$0xff] }
  0x3f   :  { %1570 = vmatmul.msk.f32.gmra.mxu0 %vm189_vm0, %v21_v32  ;;  %1698 = vmatmul.msk.f32.gmra.mxu3 %vm189_vm0, %v149_v33  ;;  %v74_v33 = vld [vmem:[%s3298_s0 + $0x1e0] sm:$0xff] }
  0x45   :  { %1656 = vmatmul.msk.f32.gmra.mxu2 %vm189_vm0, %v107_v34  ;;  %1613 = vmatmul.msk.f32.gmra.mxu1 %vm189_vm0, %v64_v35 }
  0x47   :  { %1571 = vmatmul.msk.f32.gmra.mxu0 %vm189_vm0, %v22_v36  ;;  %1699 = vmatmul.msk.f32.gmra.mxu3 %vm189_vm0, %v150_v37 }
  0x4d   :  { %1657 = vmatmul.msk.f32.gmra.mxu2 %vm189_vm0, %v108_v38  ;;  %1614 = vmatmul.msk.f32.gmra.mxu1 %vm189_vm0, %v65_v39  ;;  %v32_v39 = vld [vmem:[%s3298_s0 + $0x90] sm:$0xff] }
  0x4f   :  { %1572 = vmatmul.msk.f32.gmra.mxu0 %vm189_vm0, %v23_v40  ;;  %1700 = vmatmul.msk.f32.gmra.mxu3 %vm189_vm0, %v151_v41  ;;  %v160_v40 = vld [vmem:[%s3298_s0 + $0x490] sm:$0xff] }
  0x55   :  { %1658 = vmatmul.msk.f32.gmra.mxu2 %vm189_vm0, %v109_v42  ;;  %1615 = vmatmul.msk.f32.gmra.mxu1 %vm189_vm0, %v66_v43 }
  0x57   :  { %1573 = vmatmul.msk.f32.gmra.mxu0 %vm189_vm0, %v24_v44  ;;  %1701 = vmatmul.msk.f32.gmra.mxu3 %vm189_vm0, %v152_v45 }
  0x5d   :  { %1659 = vmatmul.msk.f32.gmra.mxu2 %vm189_vm0, %v110_v46  ;;  %1616 = vmatmul.msk.f32.gmra.mxu1 %vm189_vm0, %v67_v47  ;;  %v118_v47 = vld [vmem:[%s3298_s0 + $0x340] sm:$0xff] }
  0x5f   :  { %1574 = vmatmul.msk.f32.gmra.mxu0 %vm189_vm0, %v25_v48  ;;  %1702 = vmatmul.msk.f32.gmra.mxu3 %vm189_vm0, %v153_v49  ;;  %v75_v49 = vld [vmem:[%s3298_s0 + $0x1e8] sm:$0xff] }
  0x65   :  { %1660 = vmatmul.msk.f32.gmra.mxu2 %vm189_vm0, %v111_v50  ;;  %1617 = vmatmul.msk.f32.gmra.mxu1 %vm189_vm0, %v68_v51 }
  0x67   :  { %1575 = vmatmul.msk.f32.gmra.mxu0 %vm189_vm0, %v26_v52  ;;  %1703 = vmatmul.msk.f32.gmra.mxu3 %vm189_vm0, %v154_v53 }
  0x6d   :  { %1661 = vmatmul.msk.f32.gmra.mxu2 %vm189_vm0, %v112_v54  ;;  %1618 = vmatmul.msk.f32.gmra.mxu1 %vm189_vm0, %v69_v55  ;;  %v33_v55 = vld [vmem:[%s3298_s0 + $0x98] sm:$0xff] }
  0x6f   :  { %1576 = vmatmul.msk.f32.gmra.mxu0 %vm189_vm0, %v27_v56  ;;  %1704 = vmatmul.msk.f32.gmra.mxu3 %vm189_vm0, %v155_v57  ;;  %v161_v56 = vld [vmem:[%s3298_s0 + $0x498] sm:$0xff] }
  0x75   :  { %1662 = vmatmul.msk.f32.gmra.mxu2 %vm189_vm0, %v113_v58  ;;  %1619 = vmatmul.msk.f32.gmra.mxu1 %vm189_vm0, %v70_v59 }
  0x77   :  { %1577 = vmatmul.msk.f32.gmra.mxu0 %vm189_vm0, %v28_v60  ;;  %1705 = vmatmul.msk.f32.gmra.mxu3 %vm189_vm0, %v156_v61 }
  0x7d   :  { %1663 = vmatmul.msk.f32.gmra.mxu2 %vm189_vm0, %v114_v62  ;;  %1620 = vmatmul.msk.f32.gmra.mxu1 %vm189_vm0, %v71_v63  ;;  %v119_v63 = vld [vmem:[%s3298_s0 + $0x348] sm:$0xff] }
  0x7f   :  { %1578 = vmatmul.msk.f32.gmra.mxu0 %vm189_vm0, %v29_v0  ;;  %1706 = vmatmul.msk.f32.gmra.mxu3 %vm189_vm0, %v157_v1  ;;  %v76_v1 = vld [vmem:[%s3298_s0 + $0x1f0] sm:$0xff] }
  0x82   :  { %v840_v4 = vpop.f32.mrf.mxu1 }
  0x83   :  { %v841_v6 = vadd.f32 %v2023_v2, %v840_v4 }
  0x84   :  { %v714_v7 = vpop.f32.mrf.mxu0 }
  0x85   :  { %1664 = vmatmul.msk.f32.gmra.mxu2 %vm189_vm0, %v115_v3  ;;  %v1263_v10 = vmax.f32 %v841_v6, 0.0  ;;  %1621 = vmatmul.msk.f32.gmra.mxu1 %vm189_vm0, %v72_v5  ;;  %v715_v11 = vadd.f32 %v2023_v2, %v714_v7 }
  0x87   :  { %1432 = vst.msk [vmem:[%s3300_s3 + $0x150] sm:$0xff] %vm189_vm0, %v1263_v10  ;;  %v1221_v12 = vmax.f32 %v715_v11, 0.0  ;;  %1579 = vmatmul.msk.f32.gmra.mxu0 %vm189_vm0, %v30_v8  ;;  %1707 = vmatmul.msk.f32.gmra.mxu3 %vm189_vm0, %v158_v9  ;;  %v34_v8 = vld [vmem:[%s3298_s0 + $0xa0] sm:$0xff] }
  0x88   :  { %v969_v13 = vpop.f32.mrf.mxu2  ;;  %v162_v9 = vld [vmem:[%s3298_s0 + $0x4a0] sm:$0xff] }
  0x89   :  { %v970_v14 = vadd.f32 %v2023_v2, %v969_v13  ;;  %1390 = vst.msk [vmem:[%s3300_s3] sm:$0xff] %vm189_vm0, %v1221_v12 }
  0x8a   :  { %v843_v16 = vpop.f32.mrf.mxu1  ;;  %v1098_v18 = vpop.f32.mrf.mxu3 }
  0x8b   :  { %v1306_v19 = vmax.f32 %v970_v14, 0.0  ;;  %v844_v20 = vadd.f32 %v2023_v2, %v843_v16  ;;  %v1099_v21 = vadd.f32 %v2023_v2, %v1098_v18  ;;  %v120_v16 = vld [vmem:[%s3298_s0 + $0x350] sm:$0xff]  ;;  %v77_v18 = vld [vmem:[%s3298_s0 + $0x1f8] sm:$0xff] }
  0x8c   :  { %v717_v22 = vpop.f32.mrf.mxu0 }
  0x8d   :  { %1475 = vst.msk [vmem:[%s3300_s3 + $0x2a8] sm:$0xff] %vm189_vm0, %v1306_v19  ;;  %1665 = vmatmul.msk.f32.gmra.mxu2 %vm189_vm0, %v116_v15  ;;  %v1264_v25 = vmax.f32 %v844_v20, 0.0  ;;  %1622 = vmatmul.msk.f32.gmra.mxu1 %vm189_vm0, %v73_v17  ;;  %v718_v26 = vadd.f32 %v2023_v2, %v717_v22  ;;  %v1349_v27 = vmax.f32 %v1099_v21, 0.0 }
  0x8f   :  { %1433 = vst.msk [vmem:[%s3300_s3 + $0x158] sm:$0xff] %vm189_vm0, %v1264_v25  ;;  %v1222_v28 = vmax.f32 %v718_v26, 0.0  ;;  %1580 = vmatmul.msk.f32.gmra.mxu0 %vm189_vm0, %v31_v23  ;;  %1708 = vmatmul.msk.f32.gmra.mxu3 %vm189_vm0, %v159_v24  ;;  %v35_v24 = vld [vmem:[%s3298_s0 + $0xa8] sm:$0xff] }
  0x90   :  { %v972_v29 = vpop.f32.mrf.mxu2  ;;  %1518 = vst.msk [vmem:[%s3300_s3 + $0x400] sm:$0xff] %vm189_vm0, %v1349_v27  ;;  %v163_v25 = vld [vmem:[%s3298_s0 + $0x4a8] sm:$0xff] }
  0x91   :  { %v973_v30 = vadd.f32 %v2023_v2, %v972_v29  ;;  %1391 = vst.msk [vmem:[%s3300_s3 + $0x8] sm:$0xff] %vm189_vm0, %v1222_v28 }
  0x92   :  { %v846_v32 = vpop.f32.mrf.mxu1  ;;  %v1101_v34 = vpop.f32.mrf.mxu3 }
  0x93   :  { %v1307_v35 = vmax.f32 %v973_v30, 0.0  ;;  %v847_v36 = vadd.f32 %v2023_v2, %v846_v32  ;;  %v1102_v37 = vadd.f32 %v2023_v2, %v1101_v34  ;;  %v121_v32 = vld [vmem:[%s3298_s0 + $0x358] sm:$0xff]  ;;  %v78_v34 = vld [vmem:[%s3298_s0 + $0x200] sm:$0xff] }
  0x94   :  { %v720_v38 = vpop.f32.mrf.mxu0 }
  0x95   :  { %1476 = vst.msk [vmem:[%s3300_s3 + $0x2b0] sm:$0xff] %vm189_vm0, %v1307_v35  ;;  %1666 = vmatmul.msk.f32.gmra.mxu2 %vm189_vm0, %v117_v31  ;;  %v1265_v41 = vmax.f32 %v847_v36, 0.0  ;;  %1623 = vmatmul.msk.f32.gmra.mxu1 %vm189_vm0, %v74_v33  ;;  %v721_v42 = vadd.f32 %v2023_v2, %v720_v38  ;;  %v1350_v43 = vmax.f32 %v1102_v37, 0.0 }
  0x97   :  { %1434 = vst.msk [vmem:[%s3300_s3 + $0x160] sm:$0xff] %vm189_vm0, %v1265_v41  ;;  %v1223_v44 = vmax.f32 %v721_v42, 0.0  ;;  %1581 = vmatmul.msk.f32.gmra.mxu0 %vm189_vm0, %v32_v39  ;;  %1709 = vmatmul.msk.f32.gmra.mxu3 %vm189_vm0, %v160_v40  ;;  %v36_v40 = vld [vmem:[%s3298_s0 + $0xb0] sm:$0xff] }
  0x98   :  { %v975_v45 = vpop.f32.mrf.mxu2  ;;  %1519 = vst.msk [vmem:[%s3300_s3 + $0x408] sm:$0xff] %vm189_vm0, %v1350_v43  ;;  %v164_v41 = vld [vmem:[%s3298_s0 + $0x4b0] sm:$0xff] }
  0x99   :  { %v976_v46 = vadd.f32 %v2023_v2, %v975_v45  ;;  %1392 = vst.msk [vmem:[%s3300_s3 + $0x10] sm:$0xff] %vm189_vm0, %v1223_v44 }
  0x9a   :  { %v849_v48 = vpop.f32.mrf.mxu1  ;;  %v1104_v50 = vpop.f32.mrf.mxu3 }
  0x9b   :  { %v1308_v51 = vmax.f32 %v976_v46, 0.0  ;;  %v850_v52 = vadd.f32 %v2023_v2, %v849_v48  ;;  %v1105_v53 = vadd.f32 %v2023_v2, %v1104_v50  ;;  %v122_v48 = vld [vmem:[%s3298_s0 + $0x360] sm:$0xff]  ;;  %v79_v50 = vld [vmem:[%s3298_s0 + $0x208] sm:$0xff] }
  0x9c   :  { %v723_v54 = vpop.f32.mrf.mxu0 }
  0x9d   :  { %1477 = vst.msk [vmem:[%s3300_s3 + $0x2b8] sm:$0xff] %vm189_vm0, %v1308_v51  ;;  %1667 = vmatmul.msk.f32.gmra.mxu2 %vm189_vm0, %v118_v47  ;;  %v1266_v57 = vmax.f32 %v850_v52, 0.0  ;;  %1624 = vmatmul.msk.f32.gmra.mxu1 %vm189_vm0, %v75_v49  ;;  %v724_v58 = vadd.f32 %v2023_v2, %v723_v54  ;;  %v1351_v59 = vmax.f32 %v1105_v53, 0.0 }
  0x9f   :  { %1435 = vst.msk [vmem:[%s3300_s3 + $0x168] sm:$0xff] %vm189_vm0, %v1266_v57  ;;  %v1224_v60 = vmax.f32 %v724_v58, 0.0  ;;  %1582 = vmatmul.msk.f32.gmra.mxu0 %vm189_vm0, %v33_v55  ;;  %1710 = vmatmul.msk.f32.gmra.mxu3 %vm189_vm0, %v161_v56  ;;  %v37_v56 = vld [vmem:[%s3298_s0 + $0xb8] sm:$0xff] }
  0xa0   :  { %v978_v61 = vpop.f32.mrf.mxu2  ;;  %1520 = vst.msk [vmem:[%s3300_s3 + $0x410] sm:$0xff] %vm189_vm0, %v1351_v59  ;;  %v165_v57 = vld [vmem:[%s3298_s0 + $0x4b8] sm:$0xff] }
  0xa1   :  { %v979_v62 = vadd.f32 %v2023_v2, %v978_v61  ;;  %1393 = vst.msk [vmem:[%s3300_s3 + $0x18] sm:$0xff] %vm189_vm0, %v1224_v60 }
  0xa2   :  { %v852_v0 = vpop.f32.mrf.mxu1  ;;  %v1107_v3 = vpop.f32.mrf.mxu3 }
  0xa3   :  { %v1309_v4 = vmax.f32 %v979_v62, 0.0  ;;  %v853_v5 = vadd.f32 %v2023_v2, %v852_v0  ;;  %v1108_v6 = vadd.f32 %v2023_v2, %v1107_v3  ;;  %v123_v0 = vld [vmem:[%s3298_s0 + $0x368] sm:$0xff]  ;;  %v80_v3 = vld [vmem:[%s3298_s0 + $0x210] sm:$0xff] }
  0xa4   :  { %v726_v7 = vpop.f32.mrf.mxu0 }
  0xa5   :  { %1478 = vst.msk [vmem:[%s3300_s3 + $0x2c0] sm:$0xff] %vm189_vm0, %v1309_v4  ;;  %1668 = vmatmul.msk.f32.gmra.mxu2 %vm189_vm0, %v119_v63  ;;  %v1267_v10 = vmax.f32 %v853_v5, 0.0  ;;  %1625 = vmatmul.msk.f32.gmra.mxu1 %vm189_vm0, %v76_v1  ;;  %v727_v11 = vadd.f32 %v2023_v2, %v726_v7  ;;  %v1352_v12 = vmax.f32 %v1108_v6, 0.0 }
  0xa7   :  { %1436 = vst.msk [vmem:[%s3300_s3 + $0x170] sm:$0xff] %vm189_vm0, %v1267_v10  ;;  %v1225_v13 = vmax.f32 %v727_v11, 0.0  ;;  %1583 = vmatmul.msk.f32.gmra.mxu0 %vm189_vm0, %v34_v8  ;;  %1711 = vmatmul.msk.f32.gmra.mxu3 %vm189_vm0, %v162_v9  ;;  %v38_v9 = vld [vmem:[%s3298_s0 + $0xc0] sm:$0xff] }
  0xa8   :  { %v981_v14 = vpop.f32.mrf.mxu2  ;;  %1521 = vst.msk [vmem:[%s3300_s3 + $0x418] sm:$0xff] %vm189_vm0, %v1352_v12  ;;  %v166_v10 = vld [vmem:[%s3298_s0 + $0x4c0] sm:$0xff] }
  0xa9   :  { %v982_v15 = vadd.f32 %v2023_v2, %v981_v14  ;;  %1394 = vst.msk [vmem:[%s3300_s3 + $0x20] sm:$0xff] %vm189_vm0, %v1225_v13 }
  0xaa   :  { %v855_v17 = vpop.f32.mrf.mxu1  ;;  %v1110_v19 = vpop.f32.mrf.mxu3 }
  0xab   :  { %v1310_v20 = vmax.f32 %v982_v15, 0.0  ;;  %v856_v21 = vadd.f32 %v2023_v2, %v855_v17  ;;  %v1111_v22 = vadd.f32 %v2023_v2, %v1110_v19  ;;  %v124_v17 = vld [vmem:[%s3298_s0 + $0x370] sm:$0xff]  ;;  %v81_v19 = vld [vmem:[%s3298_s0 + $0x218] sm:$0xff] }
  0xac   :  { %v729_v23 = vpop.f32.mrf.mxu0 }
  0xad   :  { %1479 = vst.msk [vmem:[%s3300_s3 + $0x2c8] sm:$0xff] %vm189_vm0, %v1310_v20  ;;  %1669 = vmatmul.msk.f32.gmra.mxu2 %vm189_vm0, %v120_v16  ;;  %v1268_v26 = vmax.f32 %v856_v21, 0.0  ;;  %1626 = vmatmul.msk.f32.gmra.mxu1 %vm189_vm0, %v77_v18  ;;  %v730_v27 = vadd.f32 %v2023_v2, %v729_v23  ;;  %v1353_v28 = vmax.f32 %v1111_v22, 0.0 }
  0xaf   :  { %1437 = vst.msk [vmem:[%s3300_s3 + $0x178] sm:$0xff] %vm189_vm0, %v1268_v26  ;;  %v1226_v29 = vmax.f32 %v730_v27, 0.0  ;;  %1584 = vmatmul.msk.f32.gmra.mxu0 %vm189_vm0, %v35_v24  ;;  %1712 = vmatmul.msk.f32.gmra.mxu3 %vm189_vm0, %v163_v25  ;;  %v39_v25 = vld [vmem:[%s3298_s0 + $0xc8] sm:$0xff] }
  0xb0   :  { %v984_v30 = vpop.f32.mrf.mxu2  ;;  %1522 = vst.msk [vmem:[%s3300_s3 + $0x420] sm:$0xff] %vm189_vm0, %v1353_v28  ;;  %v167_v26 = vld [vmem:[%s3298_s0 + $0x4c8] sm:$0xff] }
  0xb1   :  { %v985_v31 = vadd.f32 %v2023_v2, %v984_v30  ;;  %1395 = vst.msk [vmem:[%s3300_s3 + $0x28] sm:$0xff] %vm189_vm0, %v1226_v29 }
  0xb2   :  { %v858_v33 = vpop.f32.mrf.mxu1  ;;  %v1113_v35 = vpop.f32.mrf.mxu3 }
  0xb3   :  { %v1311_v36 = vmax.f32 %v985_v31, 0.0  ;;  %v859_v37 = vadd.f32 %v2023_v2, %v858_v33  ;;  %v1114_v38 = vadd.f32 %v2023_v2, %v1113_v35  ;;  %v125_v33 = vld [vmem:[%s3298_s0 + $0x378] sm:$0xff]  ;;  %v82_v35 = vld [vmem:[%s3298_s0 + $0x220] sm:$0xff] }
  0xb4   :  { %v732_v39 = vpop.f32.mrf.mxu0 }
  0xb5   :  { %1480 = vst.msk [vmem:[%s3300_s3 + $0x2d0] sm:$0xff] %vm189_vm0, %v1311_v36  ;;  %1670 = vmatmul.msk.f32.gmra.mxu2 %vm189_vm0, %v121_v32  ;;  %v1269_v42 = vmax.f32 %v859_v37, 0.0  ;;  %1627 = vmatmul.msk.f32.gmra.mxu1 %vm189_vm0, %v78_v34  ;;  %v733_v43 = vadd.f32 %v2023_v2, %v732_v39  ;;  %v1354_v44 = vmax.f32 %v1114_v38, 0.0 }
  0xb7   :  { %1438 = vst.msk [vmem:[%s3300_s3 + $0x180] sm:$0xff] %vm189_vm0, %v1269_v42  ;;  %v1227_v45 = vmax.f32 %v733_v43, 0.0  ;;  %1585 = vmatmul.msk.f32.gmra.mxu0 %vm189_vm0, %v36_v40  ;;  %1713 = vmatmul.msk.f32.gmra.mxu3 %vm189_vm0, %v164_v41  ;;  %v40_v41 = vld [vmem:[%s3298_s0 + $0xd0] sm:$0xff] }
  0xb8   :  { %v987_v46 = vpop.f32.mrf.mxu2  ;;  %1523 = vst.msk [vmem:[%s3300_s3 + $0x428] sm:$0xff] %vm189_vm0, %v1354_v44  ;;  %v168_v42 = vld [vmem:[%s3298_s0 + $0x4d0] sm:$0xff] }
  0xb9   :  { %v988_v47 = vadd.f32 %v2023_v2, %v987_v46  ;;  %1396 = vst.msk [vmem:[%s3300_s3 + $0x30] sm:$0xff] %vm189_vm0, %v1227_v45 }
  0xba   :  { %v861_v49 = vpop.f32.mrf.mxu1  ;;  %v1116_v51 = vpop.f32.mrf.mxu3 }
  0xbb   :  { %v1312_v52 = vmax.f32 %v988_v47, 0.0  ;;  %v862_v53 = vadd.f32 %v2023_v2, %v861_v49  ;;  %v1117_v54 = vadd.f32 %v2023_v2, %v1116_v51  ;;  %v126_v49 = vld [vmem:[%s3298_s0 + $0x380] sm:$0xff]  ;;  %v83_v51 = vld [vmem:[%s3298_s0 + $0x228] sm:$0xff] }
  0xbc   :  { %v735_v55 = vpop.f32.mrf.mxu0 }
  0xbd   :  { %1481 = vst.msk [vmem:[%s3300_s3 + $0x2d8] sm:$0xff] %vm189_vm0, %v1312_v52  ;;  %1671 = vmatmul.msk.f32.gmra.mxu2 %vm189_vm0, %v122_v48  ;;  %v1270_v58 = vmax.f32 %v862_v53, 0.0  ;;  %1628 = vmatmul.msk.f32.gmra.mxu1 %vm189_vm0, %v79_v50  ;;  %v736_v59 = vadd.f32 %v2023_v2, %v735_v55  ;;  %v1355_v60 = vmax.f32 %v1117_v54, 0.0 }
  0xbf   :  { %1439 = vst.msk [vmem:[%s3300_s3 + $0x188] sm:$0xff] %vm189_vm0, %v1270_v58  ;;  %v1228_v61 = vmax.f32 %v736_v59, 0.0  ;;  %1586 = vmatmul.msk.f32.gmra.mxu0 %vm189_vm0, %v37_v56  ;;  %1714 = vmatmul.msk.f32.gmra.mxu3 %vm189_vm0, %v165_v57  ;;  %v41_v57 = vld [vmem:[%s3298_s0 + $0xd8] sm:$0xff] }
  0xc0   :  { %v990_v62 = vpop.f32.mrf.mxu2  ;;  %1524 = vst.msk [vmem:[%s3300_s3 + $0x430] sm:$0xff] %vm189_vm0, %v1355_v60  ;;  %v169_v58 = vld [vmem:[%s3298_s0 + $0x4d8] sm:$0xff] }
  0xc1   :  { %v991_v63 = vadd.f32 %v2023_v2, %v990_v62  ;;  %1397 = vst.msk [vmem:[%s3300_s3 + $0x38] sm:$0xff] %vm189_vm0, %v1228_v61 }
  0xc2   :  { %v864_v1 = vpop.f32.mrf.mxu1  ;;  %v1119_v4 = vpop.f32.mrf.mxu3 }
  0xc3   :  { %v1313_v5 = vmax.f32 %v991_v63, 0.0  ;;  %v865_v6 = vadd.f32 %v2023_v2, %v864_v1  ;;  %v1120_v7 = vadd.f32 %v2023_v2, %v1119_v4  ;;  %v127_v1 = vld [vmem:[%s3298_s0 + $0x388] sm:$0xff]  ;;  %v84_v4 = vld [vmem:[%s3298_s0 + $0x230] sm:$0xff] }
  0xc4   :  { %v738_v8 = vpop.f32.mrf.mxu0 }
  0xc5   :  { %1482 = vst.msk [vmem:[%s3300_s3 + $0x2e0] sm:$0xff] %vm189_vm0, %v1313_v5  ;;  %1672 = vmatmul.msk.f32.gmra.mxu2 %vm189_vm0, %v123_v0  ;;  %v1271_v11 = vmax.f32 %v865_v6, 0.0  ;;  %1629 = vmatmul.msk.f32.gmra.mxu1 %vm189_vm0, %v80_v3  ;;  %v739_v12 = vadd.f32 %v2023_v2, %v738_v8  ;;  %v1356_v13 = vmax.f32 %v1120_v7, 0.0 }
  0xc7   :  { %1440 = vst.msk [vmem:[%s3300_s3 + $0x190] sm:$0xff] %vm189_vm0, %v1271_v11  ;;  %v1229_v14 = vmax.f32 %v739_v12, 0.0  ;;  %1587 = vmatmul.msk.f32.gmra.mxu0 %vm189_vm0, %v38_v9  ;;  %1715 = vmatmul.msk.f32.gmra.mxu3 %vm189_vm0, %v166_v10  ;;  %v42_v10 = vld [vmem:[%s3298_s0 + $0xe0] sm:$0xff] }
  0xc8   :  { %v993_v15 = vpop.f32.mrf.mxu2  ;;  %1525 = vst.msk [vmem:[%s3300_s3 + $0x438] sm:$0xff] %vm189_vm0, %v1356_v13  ;;  %v170_v11 = vld [vmem:[%s3298_s0 + $0x4e0] sm:$0xff] }
  0xc9   :  { %v994_v16 = vadd.f32 %v2023_v2, %v993_v15  ;;  %1398 = vst.msk [vmem:[%s3300_s3 + $0x40] sm:$0xff] %vm189_vm0, %v1229_v14 }
  0xca   :  { %v867_v18 = vpop.f32.mrf.mxu1  ;;  %v1122_v20 = vpop.f32.mrf.mxu3 }
  0xcb   :  { %v1314_v21 = vmax.f32 %v994_v16, 0.0  ;;  %v868_v22 = vadd.f32 %v2023_v2, %v867_v18  ;;  %v1123_v23 = vadd.f32 %v2023_v2, %v1122_v20  ;;  %v128_v18 = vld [vmem:[%s3298_s0 + $0x390] sm:$0xff]  ;;  %v85_v20 = vld [vmem:[%s3298_s0 + $0x238] sm:$0xff] }
  0xcc   :  { %v741_v24 = vpop.f32.mrf.mxu0 }
  0xcd   :  { %1483 = vst.msk [vmem:[%s3300_s3 + $0x2e8] sm:$0xff] %vm189_vm0, %v1314_v21  ;;  %1673 = vmatmul.msk.f32.gmra.mxu2 %vm189_vm0, %v124_v17  ;;  %v1272_v27 = vmax.f32 %v868_v22, 0.0  ;;  %1630 = vmatmul.msk.f32.gmra.mxu1 %vm189_vm0, %v81_v19  ;;  %v742_v28 = vadd.f32 %v2023_v2, %v741_v24  ;;  %v1357_v29 = vmax.f32 %v1123_v23, 0.0 }
  0xcf   :  { %1441 = vst.msk [vmem:[%s3300_s3 + $0x198] sm:$0xff] %vm189_vm0, %v1272_v27  ;;  %v1230_v30 = vmax.f32 %v742_v28, 0.0  ;;  %1588 = vmatmul.msk.f32.gmra.mxu0 %vm189_vm0, %v39_v25  ;;  %1716 = vmatmul.msk.f32.gmra.mxu3 %vm189_vm0, %v167_v26  ;;  %v43_v26 = vld [vmem:[%s3298_s0 + $0xe8] sm:$0xff] }
  0xd0   :  { %v996_v31 = vpop.f32.mrf.mxu2  ;;  %1526 = vst.msk [vmem:[%s3300_s3 + $0x440] sm:$0xff] %vm189_vm0, %v1357_v29  ;;  %v171_v27 = vld [vmem:[%s3298_s0 + $0x4e8] sm:$0xff] }
  0xd1   :  { %v997_v32 = vadd.f32 %v2023_v2, %v996_v31  ;;  %1399 = vst.msk [vmem:[%s3300_s3 + $0x48] sm:$0xff] %vm189_vm0, %v1230_v30 }
  0xd2   :  { %v870_v34 = vpop.f32.mrf.mxu1  ;;  %v1125_v36 = vpop.f32.mrf.mxu3 }
  0xd3   :  { %v1315_v37 = vmax.f32 %v997_v32, 0.0  ;;  %v871_v38 = vadd.f32 %v2023_v2, %v870_v34  ;;  %v1126_v39 = vadd.f32 %v2023_v2, %v1125_v36  ;;  %v129_v34 = vld [vmem:[%s3298_s0 + $0x398] sm:$0xff]  ;;  %v86_v36 = vld [vmem:[%s3298_s0 + $0x240] sm:$0xff] }
  0xd4   :  { %v744_v40 = vpop.f32.mrf.mxu0 }
  0xd5   :  { %1484 = vst.msk [vmem:[%s3300_s3 + $0x2f0] sm:$0xff] %vm189_vm0, %v1315_v37  ;;  %1674 = vmatmul.msk.f32.gmra.mxu2 %vm189_vm0, %v125_v33  ;;  %v1273_v43 = vmax.f32 %v871_v38, 0.0  ;;  %1631 = vmatmul.msk.f32.gmra.mxu1 %vm189_vm0, %v82_v35  ;;  %v745_v44 = vadd.f32 %v2023_v2, %v744_v40  ;;  %v1358_v45 = vmax.f32 %v1126_v39, 0.0 }
  0xd7   :  { %1442 = vst.msk [vmem:[%s3300_s3 + $0x1a0] sm:$0xff] %vm189_vm0, %v1273_v43  ;;  %v1231_v46 = vmax.f32 %v745_v44, 0.0  ;;  %1589 = vmatmul.msk.f32.gmra.mxu0 %vm189_vm0, %v40_v41  ;;  %1717 = vmatmul.msk.f32.gmra.mxu3 %vm189_vm0, %v168_v42  ;;  %v44_v42 = vld [vmem:[%s3298_s0 + $0xf0] sm:$0xff] }
  0xd8   :  { %v999_v47 = vpop.f32.mrf.mxu2  ;;  %1527 = vst.msk [vmem:[%s3300_s3 + $0x448] sm:$0xff] %vm189_vm0, %v1358_v45  ;;  %v172_v43 = vld [vmem:[%s3298_s0 + $0x4f0] sm:$0xff] }
  0xd9   :  { %v1000_v48 = vadd.f32 %v2023_v2, %v999_v47  ;;  %1400 = vst.msk [vmem:[%s3300_s3 + $0x50] sm:$0xff] %vm189_vm0, %v1231_v46 }
  0xda   :  { %v873_v50 = vpop.f32.mrf.mxu1  ;;  %v1128_v52 = vpop.f32.mrf.mxu3 }
  0xdb   :  { %v1316_v53 = vmax.f32 %v1000_v48, 0.0  ;;  %v874_v54 = vadd.f32 %v2023_v2, %v873_v50  ;;  %v1129_v55 = vadd.f32 %v2023_v2, %v1128_v52  ;;  %v130_v50 = vld [vmem:[%s3298_s0 + $0x3a0] sm:$0xff]  ;;  %v87_v52 = vld [vmem:[%s3298_s0 + $0x248] sm:$0xff] }
  0xdc   :  { %v747_v56 = vpop.f32.mrf.mxu0 }
  0xdd   :  { %1485 = vst.msk [vmem:[%s3300_s3 + $0x2f8] sm:$0xff] %vm189_vm0, %v1316_v53  ;;  %1675 = vmatmul.msk.f32.gmra.mxu2 %vm189_vm0, %v126_v49  ;;  %v1274_v59 = vmax.f32 %v874_v54, 0.0  ;;  %1632 = vmatmul.msk.f32.gmra.mxu1 %vm189_vm0, %v83_v51  ;;  %v748_v60 = vadd.f32 %v2023_v2, %v747_v56  ;;  %v1359_v61 = vmax.f32 %v1129_v55, 0.0 }
  0xdf   :  { %1443 = vst.msk [vmem:[%s3300_s3 + $0x1a8] sm:$0xff] %vm189_vm0, %v1274_v59  ;;  %v1232_v62 = vmax.f32 %v748_v60, 0.0  ;;  %1590 = vmatmul.msk.f32.gmra.mxu0 %vm189_vm0, %v41_v57  ;;  %1718 = vmatmul.msk.f32.gmra.mxu3 %vm189_vm0, %v169_v58  ;;  %v45_v58 = vld [vmem:[%s3298_s0 + $0xf8] sm:$0xff] }
  0xe0   :  { %v1002_v63 = vpop.f32.mrf.mxu2  ;;  %1528 = vst.msk [vmem:[%s3300_s3 + $0x450] sm:$0xff] %vm189_vm0, %v1359_v61  ;;  %v173_v59 = vld [vmem:[%s3298_s0 + $0x4f8] sm:$0xff] }
  0xe1   :  { %v1003_v0 = vadd.f32 %v2023_v2, %v1002_v63  ;;  %1401 = vst.msk [vmem:[%s3300_s3 + $0x58] sm:$0xff] %vm189_vm0, %v1232_v62 }
  0xe2   :  { %v876_v3 = vpop.f32.mrf.mxu1  ;;  %v1131_v5 = vpop.f32.mrf.mxu3 }
  0xe3   :  { %v1317_v6 = vmax.f32 %v1003_v0, 0.0  ;;  %v877_v7 = vadd.f32 %v2023_v2, %v876_v3  ;;  %v1132_v8 = vadd.f32 %v2023_v2, %v1131_v5  ;;  %v131_v3 = vld [vmem:[%s3298_s0 + $0x3a8] sm:$0xff]  ;;  %v88_v5 = vld [vmem:[%s3298_s0 + $0x250] sm:$0xff] }
  0xe4   :  { %v750_v9 = vpop.f32.mrf.mxu0 }
  0xe5   :  { %1486 = vst.msk [vmem:[%s3300_s3 + $0x300] sm:$0xff] %vm189_vm0, %v1317_v6  ;;  %1676 = vmatmul.msk.f32.gmra.mxu2 %vm189_vm0, %v127_v1  ;;  %v1275_v12 = vmax.f32 %v877_v7, 0.0  ;;  %1633 = vmatmul.msk.f32.gmra.mxu1 %vm189_vm0, %v84_v4  ;;  %v751_v13 = vadd.f32 %v2023_v2, %v750_v9  ;;  %v1360_v14 = vmax.f32 %v1132_v8, 0.0 }
  0xe7   :  { %1444 = vst.msk [vmem:[%s3300_s3 + $0x1b0] sm:$0xff] %vm189_vm0, %v1275_v12  ;;  %v1233_v15 = vmax.f32 %v751_v13, 0.0  ;;  %1591 = vmatmul.msk.f32.gmra.mxu0 %vm189_vm0, %v42_v10  ;;  %1719 = vmatmul.msk.f32.gmra.mxu3 %vm189_vm0, %v170_v11  ;;  %v46_v11 = vld [vmem:[%s3298_s0 + $0x100] sm:$0xff] }
  0xe8   :  { %v1005_v16 = vpop.f32.mrf.mxu2  ;;  %1529 = vst.msk [vmem:[%s3300_s3 + $0x458] sm:$0xff] %vm189_vm0, %v1360_v14  ;;  %v174_v12 = vld [vmem:[%s3298_s0 + $0x500] sm:$0xff] }
  0xe9   :  { %v1006_v17 = vadd.f32 %v2023_v2, %v1005_v16  ;;  %1402 = vst.msk [vmem:[%s3300_s3 + $0x60] sm:$0xff] %vm189_vm0, %v1233_v15 }
  0xea   :  { %v879_v19 = vpop.f32.mrf.mxu1  ;;  %v1134_v21 = vpop.f32.mrf.mxu3 }
  0xeb   :  { %v1318_v22 = vmax.f32 %v1006_v17, 0.0  ;;  %v880_v23 = vadd.f32 %v2023_v2, %v879_v19  ;;  %v1135_v24 = vadd.f32 %v2023_v2, %v1134_v21  ;;  %v132_v19 = vld [vmem:[%s3298_s0 + $0x3b0] sm:$0xff]  ;;  %v89_v21 = vld [vmem:[%s3298_s0 + $0x258] sm:$0xff] }
  0xec   :  { %v753_v25 = vpop.f32.mrf.mxu0 }
  0xed   :  { %1487 = vst.msk [vmem:[%s3300_s3 + $0x308] sm:$0xff] %vm189_vm0, %v1318_v22  ;;  %1677 = vmatmul.msk.f32.gmra.mxu2 %vm189_vm0, %v128_v18  ;;  %v1276_v28 = vmax.f32 %v880_v23, 0.0  ;;  %1634 = vmatmul.msk.f32.gmra.mxu1 %vm189_vm0, %v85_v20  ;;  %v754_v29 = vadd.f32 %v2023_v2, %v753_v25  ;;  %v1361_v30 = vmax.f32 %v1135_v24, 0.0 }
  0xef   :  { %1445 = vst.msk [vmem:[%s3300_s3 + $0x1b8] sm:$0xff] %vm189_vm0, %v1276_v28  ;;  %v1234_v31 = vmax.f32 %v754_v29, 0.0  ;;  %1592 = vmatmul.msk.f32.gmra.mxu0 %vm189_vm0, %v43_v26  ;;  %1720 = vmatmul.msk.f32.gmra.mxu3 %vm189_vm0, %v171_v27  ;;  %v47_v27 = vld [vmem:[%s3298_s0 + $0x108] sm:$0xff] }
  0xf0   :  { %v1008_v32 = vpop.f32.mrf.mxu2  ;;  %1530 = vst.msk [vmem:[%s3300_s3 + $0x460] sm:$0xff] %vm189_vm0, %v1361_v30  ;;  %v175_v28 = vld [vmem:[%s3298_s0 + $0x508] sm:$0xff] }
  0xf1   :  { %v1009_v33 = vadd.f32 %v2023_v2, %v1008_v32  ;;  %1403 = vst.msk [vmem:[%s3300_s3 + $0x68] sm:$0xff] %vm189_vm0, %v1234_v31 }
  0xf2   :  { %v882_v35 = vpop.f32.mrf.mxu1  ;;  %v1137_v37 = vpop.f32.mrf.mxu3 }
  0xf3   :  { %v1319_v38 = vmax.f32 %v1009_v33, 0.0  ;;  %v883_v39 = vadd.f32 %v2023_v2, %v882_v35  ;;  %v1138_v40 = vadd.f32 %v2023_v2, %v1137_v37  ;;  %v133_v35 = vld [vmem:[%s3298_s0 + $0x3b8] sm:$0xff]  ;;  %v90_v37 = vld [vmem:[%s3298_s0 + $0x260] sm:$0xff] }
  0xf4   :  { %v756_v41 = vpop.f32.mrf.mxu0 }
  0xf5   :  { %1488 = vst.msk [vmem:[%s3300_s3 + $0x310] sm:$0xff] %vm189_vm0, %v1319_v38  ;;  %1678 = vmatmul.msk.f32.gmra.mxu2 %vm189_vm0, %v129_v34  ;;  %v1277_v44 = vmax.f32 %v883_v39, 0.0  ;;  %1635 = vmatmul.msk.f32.gmra.mxu1 %vm189_vm0, %v86_v36  ;;  %v757_v45 = vadd.f32 %v2023_v2, %v756_v41  ;;  %v1362_v46 = vmax.f32 %v1138_v40, 0.0 }
  0xf7   :  { %1446 = vst.msk [vmem:[%s3300_s3 + $0x1c0] sm:$0xff] %vm189_vm0, %v1277_v44  ;;  %v1235_v47 = vmax.f32 %v757_v45, 0.0  ;;  %1593 = vmatmul.msk.f32.gmra.mxu0 %vm189_vm0, %v44_v42  ;;  %1721 = vmatmul.msk.f32.gmra.mxu3 %vm189_vm0, %v172_v43  ;;  %v48_v43 = vld [vmem:[%s3298_s0 + $0x110] sm:$0xff] }
  0xf8   :  { %v1011_v48 = vpop.f32.mrf.mxu2  ;;  %1531 = vst.msk [vmem:[%s3300_s3 + $0x468] sm:$0xff] %vm189_vm0, %v1362_v46  ;;  %v176_v44 = vld [vmem:[%s3298_s0 + $0x510] sm:$0xff] }
  0xf9   :  { %v1012_v49 = vadd.f32 %v2023_v2, %v1011_v48  ;;  %1404 = vst.msk [vmem:[%s3300_s3 + $0x70] sm:$0xff] %vm189_vm0, %v1235_v47 }
  0xfa   :  { %v885_v51 = vpop.f32.mrf.mxu1  ;;  %v1140_v53 = vpop.f32.mrf.mxu3 }
  0xfb   :  { %v1320_v54 = vmax.f32 %v1012_v49, 0.0  ;;  %v886_v55 = vadd.f32 %v2023_v2, %v885_v51  ;;  %v1141_v56 = vadd.f32 %v2023_v2, %v1140_v53  ;;  %v134_v51 = vld [vmem:[%s3298_s0 + $0x3c0] sm:$0xff]  ;;  %v91_v53 = vld [vmem:[%s3298_s0 + $0x268] sm:$0xff] }
  0xfc   :  { %v759_v57 = vpop.f32.mrf.mxu0 }
  0xfd   :  { %1489 = vst.msk [vmem:[%s3300_s3 + $0x318] sm:$0xff] %vm189_vm0, %v1320_v54  ;;  %1679 = vmatmul.msk.f32.gmra.mxu2 %vm189_vm0, %v130_v50  ;;  %v1278_v60 = vmax.f32 %v886_v55, 0.0  ;;  %1636 = vmatmul.msk.f32.gmra.mxu1 %vm189_vm0, %v87_v52  ;;  %v760_v61 = vadd.f32 %v2023_v2, %v759_v57  ;;  %v1363_v62 = vmax.f32 %v1141_v56, 0.0 }
  0xff   :  { %1447 = vst.msk [vmem:[%s3300_s3 + $0x1c8] sm:$0xff] %vm189_vm0, %v1278_v60  ;;  %v1236_v63 = vmax.f32 %v760_v61, 0.0  ;;  %1594 = vmatmul.msk.f32.gmra.mxu0 %vm189_vm0, %v45_v58  ;;  %1722 = vmatmul.msk.f32.gmra.mxu3 %vm189_vm0, %v173_v59  ;;  %v49_v59 = vld [vmem:[%s3298_s0 + $0x118] sm:$0xff] }
 0x100   :  { %v1014_v0 = vpop.f32.mrf.mxu2  ;;  %1532 = vst.msk [vmem:[%s3300_s3 + $0x470] sm:$0xff] %vm189_vm0, %v1363_v62  ;;  %v177_v60 = vld [vmem:[%s3298_s0 + $0x518] sm:$0xff] }
 0x101   :  { %v1015_v1 = vadd.f32 %v2023_v2, %v1014_v0  ;;  %1405 = vst.msk [vmem:[%s3300_s3 + $0x78] sm:$0xff] %vm189_vm0, %v1236_v63 }
 0x102   :  { %v888_v4 = vpop.f32.mrf.mxu1  ;;  %v1143_v6 = vpop.f32.mrf.mxu3 }
 0x103   :  { %v1321_v7 = vmax.f32 %v1015_v1, 0.0  ;;  %v889_v8 = vadd.f32 %v2023_v2, %v888_v4  ;;  %v1144_v9 = vadd.f32 %v2023_v2, %v1143_v6  ;;  %v135_v4 = vld [vmem:[%s3298_s0 + $0x3c8] sm:$0xff]  ;;  %v92_v6 = vld [vmem:[%s3298_s0 + $0x270] sm:$0xff] }
 0x104   :  { %v762_v10 = vpop.f32.mrf.mxu0 }
 0x105   :  { %1490 = vst.msk [vmem:[%s3300_s3 + $0x320] sm:$0xff] %vm189_vm0, %v1321_v7  ;;  %1680 = vmatmul.msk.f32.gmra.mxu2 %vm189_vm0, %v131_v3  ;;  %v1279_v13 = vmax.f32 %v889_v8, 0.0  ;;  %1637 = vmatmul.msk.f32.gmra.mxu1 %vm189_vm0, %v88_v5  ;;  %v763_v14 = vadd.f32 %v2023_v2, %v762_v10  ;;  %v1364_v15 = vmax.f32 %v1144_v9, 0.0 }
 0x107   :  { %1448 = vst.msk [vmem:[%s3300_s3 + $0x1d0] sm:$0xff] %vm189_vm0, %v1279_v13  ;;  %v1237_v16 = vmax.f32 %v763_v14, 0.0  ;;  %1595 = vmatmul.msk.f32.gmra.mxu0 %vm189_vm0, %v46_v11  ;;  %1723 = vmatmul.msk.f32.gmra.mxu3 %vm189_vm0, %v174_v12  ;;  %v50_v12 = vld [vmem:[%s3298_s0 + $0x120] sm:$0xff] }
 0x108   :  { %v1017_v17 = vpop.f32.mrf.mxu2  ;;  %1533 = vst.msk [vmem:[%s3300_s3 + $0x478] sm:$0xff] %vm189_vm0, %v1364_v15  ;;  %v178_v13 = vld [vmem:[%s3298_s0 + $0x520] sm:$0xff] }
 0x109   :  { %v1018_v18 = vadd.f32 %v2023_v2, %v1017_v17  ;;  %1406 = vst.msk [vmem:[%s3300_s3 + $0x80] sm:$0xff] %vm189_vm0, %v1237_v16 }
 0x10a   :  { %v891_v20 = vpop.f32.mrf.mxu1  ;;  %v1146_v22 = vpop.f32.mrf.mxu3 }
 0x10b   :  { %v1322_v23 = vmax.f32 %v1018_v18, 0.0  ;;  %v892_v24 = vadd.f32 %v2023_v2, %v891_v20  ;;  %v1147_v25 = vadd.f32 %v2023_v2, %v1146_v22  ;;  %v136_v20 = vld [vmem:[%s3298_s0 + $0x3d0] sm:$0xff]  ;;  %v93_v22 = vld [vmem:[%s3298_s0 + $0x278] sm:$0xff] }
 0x10c   :  { %v765_v26 = vpop.f32.mrf.mxu0 }
 0x10d   :  { %1491 = vst.msk [vmem:[%s3300_s3 + $0x328] sm:$0xff] %vm189_vm0, %v1322_v23  ;;  %1681 = vmatmul.msk.f32.gmra.mxu2 %vm189_vm0, %v132_v19  ;;  %v1280_v29 = vmax.f32 %v892_v24, 0.0  ;;  %1638 = vmatmul.msk.f32.gmra.mxu1 %vm189_vm0, %v89_v21  ;;  %v766_v30 = vadd.f32 %v2023_v2, %v765_v26  ;;  %v1365_v31 = vmax.f32 %v1147_v25, 0.0 }
 0x10f   :  { %1449 = vst.msk [vmem:[%s3300_s3 + $0x1d8] sm:$0xff] %vm189_vm0, %v1280_v29  ;;  %v1238_v32 = vmax.f32 %v766_v30, 0.0  ;;  %1596 = vmatmul.msk.f32.gmra.mxu0 %vm189_vm0, %v47_v27  ;;  %1724 = vmatmul.msk.f32.gmra.mxu3 %vm189_vm0, %v175_v28  ;;  %v51_v28 = vld [vmem:[%s3298_s0 + $0x128] sm:$0xff] }
 0x110   :  { %v1020_v33 = vpop.f32.mrf.mxu2  ;;  %1534 = vst.msk [vmem:[%s3300_s3 + $0x480] sm:$0xff] %vm189_vm0, %v1365_v31  ;;  %v179_v29 = vld [vmem:[%s3298_s0 + $0x528] sm:$0xff] }
 0x111   :  { %v1021_v34 = vadd.f32 %v2023_v2, %v1020_v33  ;;  %1407 = vst.msk [vmem:[%s3300_s3 + $0x88] sm:$0xff] %vm189_vm0, %v1238_v32 }
 0x112   :  { %v894_v36 = vpop.f32.mrf.mxu1  ;;  %v1149_v38 = vpop.f32.mrf.mxu3 }
 0x113   :  { %v1323_v39 = vmax.f32 %v1021_v34, 0.0  ;;  %v895_v40 = vadd.f32 %v2023_v2, %v894_v36  ;;  %v1150_v41 = vadd.f32 %v2023_v2, %v1149_v38  ;;  %v137_v36 = vld [vmem:[%s3298_s0 + $0x3d8] sm:$0xff]  ;;  %v94_v38 = vld [vmem:[%s3298_s0 + $0x280] sm:$0xff] }
 0x114   :  { %v768_v42 = vpop.f32.mrf.mxu0 }
 0x115   :  { %1492 = vst.msk [vmem:[%s3300_s3 + $0x330] sm:$0xff] %vm189_vm0, %v1323_v39  ;;  %1682 = vmatmul.msk.f32.gmra.mxu2 %vm189_vm0, %v133_v35  ;;  %v1281_v45 = vmax.f32 %v895_v40, 0.0  ;;  %1639 = vmatmul.msk.f32.gmra.mxu1 %vm189_vm0, %v90_v37  ;;  %v769_v46 = vadd.f32 %v2023_v2, %v768_v42  ;;  %v1366_v47 = vmax.f32 %v1150_v41, 0.0 }
 0x117   :  { %1450 = vst.msk [vmem:[%s3300_s3 + $0x1e0] sm:$0xff] %vm189_vm0, %v1281_v45  ;;  %v1239_v48 = vmax.f32 %v769_v46, 0.0  ;;  %1597 = vmatmul.msk.f32.gmra.mxu0 %vm189_vm0, %v48_v43  ;;  %1725 = vmatmul.msk.f32.gmra.mxu3 %vm189_vm0, %v176_v44  ;;  %v52_v44 = vld [vmem:[%s3298_s0 + $0x130] sm:$0xff] }
 0x118   :  { %v1023_v49 = vpop.f32.mrf.mxu2  ;;  %1535 = vst.msk [vmem:[%s3300_s3 + $0x488] sm:$0xff] %vm189_vm0, %v1366_v47  ;;  %v180_v45 = vld [vmem:[%s3298_s0 + $0x530] sm:$0xff] }
 0x119   :  { %v1024_v50 = vadd.f32 %v2023_v2, %v1023_v49  ;;  %1408 = vst.msk [vmem:[%s3300_s3 + $0x90] sm:$0xff] %vm189_vm0, %v1239_v48 }
 0x11a   :  { %v897_v52 = vpop.f32.mrf.mxu1  ;;  %v1152_v54 = vpop.f32.mrf.mxu3 }
 0x11b   :  { %v1324_v55 = vmax.f32 %v1024_v50, 0.0  ;;  %v898_v56 = vadd.f32 %v2023_v2, %v897_v52  ;;  %v1153_v57 = vadd.f32 %v2023_v2, %v1152_v54  ;;  %v138_v52 = vld [vmem:[%s3298_s0 + $0x3e0] sm:$0xff]  ;;  %v95_v54 = vld [vmem:[%s3298_s0 + $0x288] sm:$0xff] }
 0x11c   :  { %v771_v58 = vpop.f32.mrf.mxu0 }
 0x11d   :  { %1493 = vst.msk [vmem:[%s3300_s3 + $0x338] sm:$0xff] %vm189_vm0, %v1324_v55  ;;  %1683 = vmatmul.msk.f32.gmra.mxu2 %vm189_vm0, %v134_v51  ;;  %v1282_v61 = vmax.f32 %v898_v56, 0.0  ;;  %1640 = vmatmul.msk.f32.gmra.mxu1 %vm189_vm0, %v91_v53  ;;  %v772_v62 = vadd.f32 %v2023_v2, %v771_v58  ;;  %v1367_v63 = vmax.f32 %v1153_v57, 0.0 }
 0x11f   :  { %1451 = vst.msk [vmem:[%s3300_s3 + $0x1e8] sm:$0xff] %vm189_vm0, %v1282_v61  ;;  %v1240_v0 = vmax.f32 %v772_v62, 0.0  ;;  %1598 = vmatmul.msk.f32.gmra.mxu0 %vm189_vm0, %v49_v59  ;;  %1726 = vmatmul.msk.f32.gmra.mxu3 %vm189_vm0, %v177_v60  ;;  %v53_v60 = vld [vmem:[%s3298_s0 + $0x138] sm:$0xff] }
 0x120   :  { %v1026_v1 = vpop.f32.mrf.mxu2  ;;  %1536 = vst.msk [vmem:[%s3300_s3 + $0x490] sm:$0xff] %vm189_vm0, %v1367_v63  ;;  %v181_v61 = vld [vmem:[%s3298_s0 + $0x538] sm:$0xff] }
 0x121   :  { %v1027_v3 = vadd.f32 %v2023_v2, %v1026_v1  ;;  %1409 = vst.msk [vmem:[%s3300_s3 + $0x98] sm:$0xff] %vm189_vm0, %v1240_v0 }
 0x122   :  { %v900_v5 = vpop.f32.mrf.mxu1  ;;  %v1155_v7 = vpop.f32.mrf.mxu3 }
 0x123   :  { %v1325_v8 = vmax.f32 %v1027_v3, 0.0  ;;  %v901_v9 = vadd.f32 %v2023_v2, %v900_v5  ;;  %v1156_v10 = vadd.f32 %v2023_v2, %v1155_v7  ;;  %v139_v5 = vld [vmem:[%s3298_s0 + $0x3e8] sm:$0xff]  ;;  %v96_v7 = vld [vmem:[%s3298_s0 + $0x290] sm:$0xff] }
 0x124   :  { %v774_v11 = vpop.f32.mrf.mxu0 }
 0x125   :  { %1494 = vst.msk [vmem:[%s3300_s3 + $0x340] sm:$0xff] %vm189_vm0, %v1325_v8  ;;  %1684 = vmatmul.msk.f32.gmra.mxu2 %vm189_vm0, %v135_v4  ;;  %v1283_v14 = vmax.f32 %v901_v9, 0.0  ;;  %1641 = vmatmul.msk.f32.gmra.mxu1 %vm189_vm0, %v92_v6  ;;  %v775_v15 = vadd.f32 %v2023_v2, %v774_v11  ;;  %v1368_v16 = vmax.f32 %v1156_v10, 0.0 }
 0x127   :  { %1452 = vst.msk [vmem:[%s3300_s3 + $0x1f0] sm:$0xff] %vm189_vm0, %v1283_v14  ;;  %v1241_v17 = vmax.f32 %v775_v15, 0.0  ;;  %1599 = vmatmul.msk.f32.gmra.mxu0 %vm189_vm0, %v50_v12  ;;  %1727 = vmatmul.msk.f32.gmra.mxu3 %vm189_vm0, %v178_v13  ;;  %v54_v13 = vld [vmem:[%s3298_s0 + $0x140] sm:$0xff] }
 0x128   :  { %v1029_v18 = vpop.f32.mrf.mxu2  ;;  %1537 = vst.msk [vmem:[%s3300_s3 + $0x498] sm:$0xff] %vm189_vm0, %v1368_v16  ;;  %v182_v14 = vld [vmem:[%s3298_s0 + $0x540] sm:$0xff] }
 0x129   :  { %v1030_v19 = vadd.f32 %v2023_v2, %v1029_v18  ;;  %1410 = vst.msk [vmem:[%s3300_s3 + $0xa0] sm:$0xff] %vm189_vm0, %v1241_v17 }
 0x12a   :  { %v903_v21 = vpop.f32.mrf.mxu1  ;;  %v1158_v23 = vpop.f32.mrf.mxu3 }
 0x12b   :  { %v1326_v24 = vmax.f32 %v1030_v19, 0.0  ;;  %v904_v25 = vadd.f32 %v2023_v2, %v903_v21  ;;  %v1159_v26 = vadd.f32 %v2023_v2, %v1158_v23  ;;  %v2797_v2 = vld [vmem:[%s3299_s2] ss:$0 sm:$0xff]  ;;  %v140_v21 = vld [vmem:[%s3298_s0 + $0x3f0] sm:$0xff]  ;;  %v97_v23 = vld [vmem:[%s3298_s0 + $0x298] sm:$0xff] }
 0x12c   :  { %v777_v27 = vpop.f32.mrf.mxu0 }
 0x12d   :  { %1495 = vst.msk [vmem:[%s3300_s3 + $0x348] sm:$0xff] %vm189_vm0, %v1326_v24  ;;  %1685 = vmatmul.msk.f32.gmra.mxu2 %vm189_vm0, %v136_v20  ;;  %v1284_v30 = vmax.f32 %v904_v25, 0.0  ;;  %1642 = vmatmul.msk.f32.gmra.mxu1 %vm189_vm0, %v93_v22  ;;  %v778_v31 = vadd.f32 %v2797_v2, %v777_v27  ;;  %v1369_v32 = vmax.f32 %v1159_v26, 0.0 }
 0x12f   :  { %1453 = vst.msk [vmem:[%s3300_s3 + $0x1f8] sm:$0xff] %vm189_vm0, %v1284_v30  ;;  %v1242_v33 = vmax.f32 %v778_v31, 0.0  ;;  %1600 = vmatmul.msk.f32.gmra.mxu0 %vm189_vm0, %v51_v28  ;;  %1728 = vmatmul.msk.f32.gmra.mxu3 %vm189_vm0, %v179_v29  ;;  %v55_v29 = vld [vmem:[%s3298_s0 + $0x148] sm:$0xff] }
 0x130   :  { %v1032_v34 = vpop.f32.mrf.mxu2  ;;  %1538 = vst.msk [vmem:[%s3300_s3 + $0x4a0] sm:$0xff] %vm189_vm0, %v1369_v32 }
 0x131   :  { %v1033_v35 = vadd.f32 %v2797_v2, %v1032_v34  ;;  %1411 = vst.msk [vmem:[%s3300_s3 + $0xa8] sm:$0xff] %vm189_vm0, %v1242_v33 }
 0x132   :  { %v906_v37 = vpop.f32.mrf.mxu1  ;;  %v1161_v39 = vpop.f32.mrf.mxu3 }
 0x133   :  { %v1327_v40 = vmax.f32 %v1033_v35, 0.0  ;;  %v907_v41 = vadd.f32 %v2797_v2, %v906_v37  ;;  %v1162_v42 = vadd.f32 %v2797_v2, %v1161_v39 }
 0x134   :  { %v780_v43 = vpop.f32.mrf.mxu0 }
 0x135   :  { %1496 = vst.msk [vmem:[%s3300_s3 + $0x350] sm:$0xff] %vm189_vm0, %v1327_v40  ;;  %1686 = vmatmul.msk.f32.gmra.mxu2 %vm189_vm0, %v137_v36  ;;  %v1285_v46 = vmax.f32 %v907_v41, 0.0  ;;  %1643 = vmatmul.msk.f32.gmra.mxu1 %vm189_vm0, %v94_v38  ;;  %v781_v47 = vadd.f32 %v2797_v2, %v780_v43  ;;  %v1370_v48 = vmax.f32 %v1162_v42, 0.0  ;;  %v141_v36 = vld [vmem:[%s3298_s0 + $0x3f8] sm:$0xff]  ;;  %v98_v38 = vld [vmem:[%s3298_s0 + $0x2a0] sm:$0xff] }
 0x137   :  { %1454 = vst.msk [vmem:[%s3300_s3 + $0x200] sm:$0xff] %vm189_vm0, %v1285_v46  ;;  %v1243_v49 = vmax.f32 %v781_v47, 0.0  ;;  %1601 = vmatmul.msk.f32.gmra.mxu0 %vm189_vm0, %v52_v44  ;;  %1729 = vmatmul.msk.f32.gmra.mxu3 %vm189_vm0, %v180_v45 }
 0x138   :  { %v1035_v50 = vpop.f32.mrf.mxu2  ;;  %1539 = vst.msk [vmem:[%s3300_s3 + $0x4a8] sm:$0xff] %vm189_vm0, %v1370_v48 }
 0x139   :  { %v1036_v51 = vadd.f32 %v2797_v2, %v1035_v50  ;;  %1412 = vst.msk [vmem:[%s3300_s3 + $0xb0] sm:$0xff] %vm189_vm0, %v1243_v49 }
 0x13a   :  { %v909_v53 = vpop.f32.mrf.mxu1  ;;  %v1164_v55 = vpop.f32.mrf.mxu3 }
 0x13b   :  { %v1328_v56 = vmax.f32 %v1036_v51, 0.0  ;;  %v910_v57 = vadd.f32 %v2797_v2, %v909_v53  ;;  %v1165_v58 = vadd.f32 %v2797_v2, %v1164_v55 }
 0x13c   :  { %v783_v59 = vpop.f32.mrf.mxu0 }
 0x13d   :  { %1497 = vst.msk [vmem:[%s3300_s3 + $0x358] sm:$0xff] %vm189_vm0, %v1328_v56  ;;  %1687 = vmatmul.msk.f32.gmra.mxu2 %vm189_vm0, %v138_v52  ;;  %v1286_v62 = vmax.f32 %v910_v57, 0.0  ;;  %1644 = vmatmul.msk.f32.gmra.mxu1 %vm189_vm0, %v95_v54  ;;  %v784_v63 = vadd.f32 %v2797_v2, %v783_v59  ;;  %v1371_v0 = vmax.f32 %v1165_v58, 0.0 }
 0x13f   :  { %1455 = vst.msk [vmem:[%s3300_s3 + $0x208] sm:$0xff] %vm189_vm0, %v1286_v62  ;;  %v1244_v1 = vmax.f32 %v784_v63, 0.0  ;;  %1602 = vmatmul.msk.f32.gmra.mxu0 %vm189_vm0, %v53_v60  ;;  %1730 = vmatmul.msk.f32.gmra.mxu3 %vm189_vm0, %v181_v61 }
 0x140   :  { %v1038_v3 = vpop.f32.mrf.mxu2  ;;  %1540 = vst.msk [vmem:[%s3300_s3 + $0x4b0] sm:$0xff] %vm189_vm0, %v1371_v0 }
 0x141   :  { %v1039_v4 = vadd.f32 %v2797_v2, %v1038_v3  ;;  %1413 = vst.msk [vmem:[%s3300_s3 + $0xb8] sm:$0xff] %vm189_vm0, %v1244_v1 }
 0x142   :  { %v912_v6 = vpop.f32.mrf.mxu1  ;;  %v1167_v8 = vpop.f32.mrf.mxu3 }
 0x143   :  { %v1329_v9 = vmax.f32 %v1039_v4, 0.0  ;;  %v913_v10 = vadd.f32 %v2797_v2, %v912_v6  ;;  %v1168_v11 = vadd.f32 %v2797_v2, %v1167_v8 }
 0x144   :  { %v786_v12 = vpop.f32.mrf.mxu0 }
 0x145   :  { %1498 = vst.msk [vmem:[%s3300_s3 + $0x360] sm:$0xff] %vm189_vm0, %v1329_v9  ;;  %1688 = vmatmul.msk.f32.gmra.mxu2 %vm189_vm0, %v139_v5  ;;  %v1287_v15 = vmax.f32 %v913_v10, 0.0  ;;  %1645 = vmatmul.msk.f32.gmra.mxu1 %vm189_vm0, %v96_v7  ;;  %v787_v16 = vadd.f32 %v2797_v2, %v786_v12  ;;  %v1372_v17 = vmax.f32 %v1168_v11, 0.0 }
 0x147   :  { %1456 = vst.msk [vmem:[%s3300_s3 + $0x210] sm:$0xff] %vm189_vm0, %v1287_v15  ;;  %v1245_v18 = vmax.f32 %v787_v16, 0.0  ;;  %1603 = vmatmul.msk.f32.gmra.mxu0 %vm189_vm0, %v54_v13  ;;  %1731 = vmatmul.msk.f32.gmra.mxu3 %vm189_vm0, %v182_v14 }
 0x148   :  { %v1041_v19 = vpop.f32.mrf.mxu2  ;;  %1541 = vst.msk [vmem:[%s3300_s3 + $0x4b8] sm:$0xff] %vm189_vm0, %v1372_v17 }
 0x149   :  { %v1042_v20 = vadd.f32 %v2797_v2, %v1041_v19  ;;  %1414 = vst.msk [vmem:[%s3300_s3 + $0xc0] sm:$0xff] %vm189_vm0, %v1245_v18 }
 0x14a   :  { %v915_v22 = vpop.f32.mrf.mxu1  ;;  %v1170_v24 = vpop.f32.mrf.mxu3 }
 0x14b   :  { %v1330_v25 = vmax.f32 %v1042_v20, 0.0  ;;  %v916_v26 = vadd.f32 %v2797_v2, %v915_v22  ;;  %v1171_v27 = vadd.f32 %v2797_v2, %v1170_v24 }
 0x14c   :  { %v789_v28 = vpop.f32.mrf.mxu0 }
 0x14d   :  { %1499 = vst.msk [vmem:[%s3300_s3 + $0x368] sm:$0xff] %vm189_vm0, %v1330_v25  ;;  %1689 = vmatmul.msk.f32.gmra.mxu2 %vm189_vm0, %v140_v21  ;;  %v1288_v30 = vmax.f32 %v916_v26, 0.0  ;;  %1646 = vmatmul.msk.f32.gmra.mxu1 %vm189_vm0, %v97_v23  ;;  %v790_v31 = vadd.f32 %v2797_v2, %v789_v28  ;;  %v1373_v32 = vmax.f32 %v1171_v27, 0.0 }
 0x14f   :  { %1457 = vst.msk [vmem:[%s3300_s3 + $0x218] sm:$0xff] %vm189_vm0, %v1288_v30  ;;  %v1246_v33 = vmax.f32 %v790_v31, 0.0  ;;  %1604 = vmatmul.msk.f32.gmra.mxu0 %vm189_vm0, %v55_v29 }
 0x150   :  { %v1044_v34 = vpop.f32.mrf.mxu2  ;;  %1542 = vst.msk [vmem:[%s3300_s3 + $0x4c0] sm:$0xff] %vm189_vm0, %v1373_v32 }
 0x151   :  { %v1045_v35 = vadd.f32 %v2797_v2, %v1044_v34  ;;  %1415 = vst.msk [vmem:[%s3300_s3 + $0xc8] sm:$0xff] %vm189_vm0, %v1246_v33 }
 0x152   :  { %v918_v37 = vpop.f32.mrf.mxu1  ;;  %v1173_v39 = vpop.f32.mrf.mxu3 }
 0x153   :  { %v1331_v40 = vmax.f32 %v1045_v35, 0.0  ;;  %v919_v41 = vadd.f32 %v2797_v2, %v918_v37  ;;  %v1174_v42 = vadd.f32 %v2797_v2, %v1173_v39 }
 0x154   :  { %v792_v43 = vpop.f32.mrf.mxu0 }
 0x155   :  { %1500 = vst.msk [vmem:[%s3300_s3 + $0x370] sm:$0xff] %vm189_vm0, %v1331_v40  ;;  %1690 = vmatmul.msk.f32.gmra.mxu2 %vm189_vm0, %v141_v36  ;;  %v1289_v44 = vmax.f32 %v919_v41, 0.0  ;;  %1647 = vmatmul.msk.f32.gmra.mxu1 %vm189_vm0, %v98_v38  ;;  %v793_v45 = vadd.f32 %v2797_v2, %v792_v43  ;;  %v1374_v46 = vmax.f32 %v1174_v42, 0.0 }
 0x157   :  { %1458 = vst.msk [vmem:[%s3300_s3 + $0x220] sm:$0xff] %vm189_vm0, %v1289_v44  ;;  %v1247_v47 = vmax.f32 %v793_v45, 0.0 }
 0x158   :  { %v1047_v48 = vpop.f32.mrf.mxu2  ;;  %1543 = vst.msk [vmem:[%s3300_s3 + $0x4c8] sm:$0xff] %vm189_vm0, %v1374_v46 }
 0x159   :  { %v1048_v49 = vadd.f32 %v2797_v2, %v1047_v48  ;;  %1416 = vst.msk [vmem:[%s3300_s3 + $0xd0] sm:$0xff] %vm189_vm0, %v1247_v47 }
 0x15a   :  { %v921_v50 = vpop.f32.mrf.mxu1  ;;  %v1176_v51 = vpop.f32.mrf.mxu3 }
 0x15b   :  { %v1332_v52 = vmax.f32 %v1048_v49, 0.0  ;;  %v922_v53 = vadd.f32 %v2797_v2, %v921_v50  ;;  %v1177_v54 = vadd.f32 %v2797_v2, %v1176_v51 }
 0x15c   :  { %v795_v55 = vpop.f32.mrf.mxu0 }
 0x15d   :  { %1501 = vst.msk [vmem:[%s3300_s3 + $0x378] sm:$0xff] %vm189_vm0, %v1332_v52  ;;  %v1290_v56 = vmax.f32 %v922_v53, 0.0  ;;  %v796_v57 = vadd.f32 %v2797_v2, %v795_v55  ;;  %v1375_v58 = vmax.f32 %v1177_v54, 0.0 }
 0x15f   :  { %1459 = vst.msk [vmem:[%s3300_s3 + $0x228] sm:$0xff] %vm189_vm0, %v1290_v56  ;;  %v1248_v59 = vmax.f32 %v796_v57, 0.0 }
 0x160   :  { %v1050_v60 = vpop.f32.mrf.mxu2  ;;  %1544 = vst.msk [vmem:[%s3300_s3 + $0x4d0] sm:$0xff] %vm189_vm0, %v1375_v58 }
 0x161   :  { %v1051_v61 = vadd.f32 %v2797_v2, %v1050_v60  ;;  %1417 = vst.msk [vmem:[%s3300_s3 + $0xd8] sm:$0xff] %vm189_vm0, %v1248_v59 }
 0x162   :  { %v924_v62 = vpop.f32.mrf.mxu1  ;;  %v1179_v63 = vpop.f32.mrf.mxu3 }
 0x163   :  { %v1333_v0 = vmax.f32 %v1051_v61, 0.0  ;;  %v925_v1 = vadd.f32 %v2797_v2, %v924_v62  ;;  %v1180_v3 = vadd.f32 %v2797_v2, %v1179_v63 }
 0x164   :  { %v798_v4 = vpop.f32.mrf.mxu0 }
 0x165   :  { %1502 = vst.msk [vmem:[%s3300_s3 + $0x380] sm:$0xff] %vm189_vm0, %v1333_v0  ;;  %v1291_v5 = vmax.f32 %v925_v1, 0.0  ;;  %v799_v6 = vadd.f32 %v2797_v2, %v798_v4  ;;  %v1376_v7 = vmax.f32 %v1180_v3, 0.0 }
 0x167   :  { %1460 = vst.msk [vmem:[%s3300_s3 + $0x230] sm:$0xff] %vm189_vm0, %v1291_v5  ;;  %v1249_v8 = vmax.f32 %v799_v6, 0.0 }
 0x168   :  { %v1053_v9 = vpop.f32.mrf.mxu2  ;;  %1545 = vst.msk [vmem:[%s3300_s3 + $0x4d8] sm:$0xff] %vm189_vm0, %v1376_v7 }
 0x169   :  { %v1054_v10 = vadd.f32 %v2797_v2, %v1053_v9  ;;  %1418 = vst.msk [vmem:[%s3300_s3 + $0xe0] sm:$0xff] %vm189_vm0, %v1249_v8 }
 0x16a   :  { %v927_v11 = vpop.f32.mrf.mxu1  ;;  %v1182_v12 = vpop.f32.mrf.mxu3 }
 0x16b   :  { %v1334_v13 = vmax.f32 %v1054_v10, 0.0  ;;  %v928_v14 = vadd.f32 %v2797_v2, %v927_v11  ;;  %v1183_v15 = vadd.f32 %v2797_v2, %v1182_v12 }
 0x16c   :  { %v801_v16 = vpop.f32.mrf.mxu0 }
 0x16d   :  { %1503 = vst.msk [vmem:[%s3300_s3 + $0x388] sm:$0xff] %vm189_vm0, %v1334_v13  ;;  %v1292_v17 = vmax.f32 %v928_v14, 0.0  ;;  %v802_v18 = vadd.f32 %v2797_v2, %v801_v16  ;;  %v1377_v19 = vmax.f32 %v1183_v15, 0.0 }
 0x16f   :  { %1461 = vst.msk [vmem:[%s3300_s3 + $0x238] sm:$0xff] %vm189_vm0, %v1292_v17  ;;  %v1250_v20 = vmax.f32 %v802_v18, 0.0 }
 0x170   :  { %v1056_v21 = vpop.f32.mrf.mxu2  ;;  %1546 = vst.msk [vmem:[%s3300_s3 + $0x4e0] sm:$0xff] %vm189_vm0, %v1377_v19 }
 0x171   :  { %v1057_v22 = vadd.f32 %v2797_v2, %v1056_v21  ;;  %1419 = vst.msk [vmem:[%s3300_s3 + $0xe8] sm:$0xff] %vm189_vm0, %v1250_v20 }
 0x172   :  { %v930_v23 = vpop.f32.mrf.mxu1  ;;  %v1185_v24 = vpop.f32.mrf.mxu3 }
 0x173   :  { %v1335_v25 = vmax.f32 %v1057_v22, 0.0  ;;  %v931_v26 = vadd.f32 %v2797_v2, %v930_v23  ;;  %v1186_v27 = vadd.f32 %v2797_v2, %v1185_v24 }
 0x174   :  { %v804_v28 = vpop.f32.mrf.mxu0 }
 0x175   :  { %1504 = vst.msk [vmem:[%s3300_s3 + $0x390] sm:$0xff] %vm189_vm0, %v1335_v25  ;;  %v1293_v29 = vmax.f32 %v931_v26, 0.0  ;;  %v805_v30 = vadd.f32 %v2797_v2, %v804_v28  ;;  %v1378_v31 = vmax.f32 %v1186_v27, 0.0 }
 0x177   :  { %1462 = vst.msk [vmem:[%s3300_s3 + $0x240] sm:$0xff] %vm189_vm0, %v1293_v29  ;;  %v1251_v32 = vmax.f32 %v805_v30, 0.0 }
 0x178   :  { %v1059_v33 = vpop.f32.mrf.mxu2  ;;  %1547 = vst.msk [vmem:[%s3300_s3 + $0x4e8] sm:$0xff] %vm189_vm0, %v1378_v31 }
 0x179   :  { %v1060_v34 = vadd.f32 %v2797_v2, %v1059_v33  ;;  %1420 = vst.msk [vmem:[%s3300_s3 + $0xf0] sm:$0xff] %vm189_vm0, %v1251_v32 }
 0x17a   :  { %v933_v35 = vpop.f32.mrf.mxu1  ;;  %v1188_v36 = vpop.f32.mrf.mxu3 }
 0x17b   :  { %v1336_v37 = vmax.f32 %v1060_v34, 0.0  ;;  %v934_v38 = vadd.f32 %v2797_v2, %v933_v35  ;;  %v1189_v39 = vadd.f32 %v2797_v2, %v1188_v36 }
 0x17c   :  { %v807_v40 = vpop.f32.mrf.mxu0 }
 0x17d   :  { %1505 = vst.msk [vmem:[%s3300_s3 + $0x398] sm:$0xff] %vm189_vm0, %v1336_v37  ;;  %v1294_v41 = vmax.f32 %v934_v38, 0.0  ;;  %v808_v42 = vadd.f32 %v2797_v2, %v807_v40  ;;  %v1379_v43 = vmax.f32 %v1189_v39, 0.0 }
 0x17f   :  { %1463 = vst.msk [vmem:[%s3300_s3 + $0x248] sm:$0xff] %vm189_vm0, %v1294_v41  ;;  %v1252_v44 = vmax.f32 %v808_v42, 0.0 }
 0x180   :  { %v1062_v45 = vpop.f32.mrf.mxu2  ;;  %1548 = vst.msk [vmem:[%s3300_s3 + $0x4f0] sm:$0xff] %vm189_vm0, %v1379_v43 }
 0x181   :  { %v1063_v46 = vadd.f32 %v2797_v2, %v1062_v45  ;;  %1421 = vst.msk [vmem:[%s3300_s3 + $0xf8] sm:$0xff] %vm189_vm0, %v1252_v44 }
 0x182   :  { %v936_v47 = vpop.f32.mrf.mxu1  ;;  %v1191_v48 = vpop.f32.mrf.mxu3 }
 0x183   :  { %v1337_v49 = vmax.f32 %v1063_v46, 0.0  ;;  %v937_v50 = vadd.f32 %v2797_v2, %v936_v47  ;;  %v1192_v51 = vadd.f32 %v2797_v2, %v1191_v48 }
 0x184   :  { %v810_v52 = vpop.f32.mrf.mxu0 }
 0x185   :  { %1506 = vst.msk [vmem:[%s3300_s3 + $0x3a0] sm:$0xff] %vm189_vm0, %v1337_v49  ;;  %v1295_v53 = vmax.f32 %v937_v50, 0.0  ;;  %v811_v54 = vadd.f32 %v2797_v2, %v810_v52  ;;  %v1380_v55 = vmax.f32 %v1192_v51, 0.0 }
 0x187   :  { %1464 = vst.msk [vmem:[%s3300_s3 + $0x250] sm:$0xff] %vm189_vm0, %v1295_v53  ;;  %v1253_v56 = vmax.f32 %v811_v54, 0.0 }
 0x188   :  { %v1065_v57 = vpop.f32.mrf.mxu2  ;;  %1549 = vst.msk [vmem:[%s3300_s3 + $0x4f8] sm:$0xff] %vm189_vm0, %v1380_v55 }
 0x189   :  { %v1066_v58 = vadd.f32 %v2797_v2, %v1065_v57  ;;  %1422 = vst.msk [vmem:[%s3300_s3 + $0x100] sm:$0xff] %vm189_vm0, %v1253_v56 }
 0x18a   :  { %v939_v59 = vpop.f32.mrf.mxu1  ;;  %v1194_v60 = vpop.f32.mrf.mxu3 }
 0x18b   :  { %v1338_v61 = vmax.f32 %v1066_v58, 0.0  ;;  %v940_v62 = vadd.f32 %v2797_v2, %v939_v59  ;;  %v1195_v63 = vadd.f32 %v2797_v2, %v1194_v60 }
 0x18c   :  { %v813_v0 = vpop.f32.mrf.mxu0 }
 0x18d   :  { %1507 = vst.msk [vmem:[%s3300_s3 + $0x3a8] sm:$0xff] %vm189_vm0, %v1338_v61  ;;  %v1296_v1 = vmax.f32 %v940_v62, 0.0  ;;  %v814_v3 = vadd.f32 %v2797_v2, %v813_v0  ;;  %v1381_v4 = vmax.f32 %v1195_v63, 0.0 }
 0x18f   :  { %1465 = vst.msk [vmem:[%s3300_s3 + $0x258] sm:$0xff] %vm189_vm0, %v1296_v1  ;;  %v1254_v5 = vmax.f32 %v814_v3, 0.0 }
 0x190   :  { %v1068_v6 = vpop.f32.mrf.mxu2  ;;  %1550 = vst.msk [vmem:[%s3300_s3 + $0x500] sm:$0xff] %vm189_vm0, %v1381_v4 }
 0x191   :  { %v1069_v7 = vadd.f32 %v2797_v2, %v1068_v6  ;;  %1423 = vst.msk [vmem:[%s3300_s3 + $0x108] sm:$0xff] %vm189_vm0, %v1254_v5 }
 0x192   :  { %v942_v8 = vpop.f32.mrf.mxu1  ;;  %v1197_v9 = vpop.f32.mrf.mxu3 }
 0x193   :  { %v1339_v10 = vmax.f32 %v1069_v7, 0.0  ;;  %v943_v11 = vadd.f32 %v2797_v2, %v942_v8  ;;  %v1198_v12 = vadd.f32 %v2797_v2, %v1197_v9 }
 0x194   :  { %v816_v13 = vpop.f32.mrf.mxu0 }
 0x195   :  { %1508 = vst.msk [vmem:[%s3300_s3 + $0x3b0] sm:$0xff] %vm189_vm0, %v1339_v10  ;;  %v1297_v14 = vmax.f32 %v943_v11, 0.0  ;;  %v817_v15 = vadd.f32 %v2797_v2, %v816_v13  ;;  %v1382_v16 = vmax.f32 %v1198_v12, 0.0 }
 0x197   :  { %1466 = vst.msk [vmem:[%s3300_s3 + $0x260] sm:$0xff] %vm189_vm0, %v1297_v14  ;;  %v1255_v17 = vmax.f32 %v817_v15, 0.0 }
 0x198   :  { %v1071_v18 = vpop.f32.mrf.mxu2  ;;  %1551 = vst.msk [vmem:[%s3300_s3 + $0x508] sm:$0xff] %vm189_vm0, %v1382_v16 }
 0x199   :  { %v1072_v19 = vadd.f32 %v2797_v2, %v1071_v18  ;;  %1424 = vst.msk [vmem:[%s3300_s3 + $0x110] sm:$0xff] %vm189_vm0, %v1255_v17 }
 0x19a   :  { %v945_v20 = vpop.f32.mrf.mxu1  ;;  %v1200_v21 = vpop.f32.mrf.mxu3 }
 0x19b   :  { %v1340_v22 = vmax.f32 %v1072_v19, 0.0  ;;  %v946_v23 = vadd.f32 %v2797_v2, %v945_v20  ;;  %v1201_v24 = vadd.f32 %v2797_v2, %v1200_v21 }
 0x19c   :  { %v819_v25 = vpop.f32.mrf.mxu0 }
 0x19d   :  { %1509 = vst.msk [vmem:[%s3300_s3 + $0x3b8] sm:$0xff] %vm189_vm0, %v1340_v22  ;;  %v1298_v26 = vmax.f32 %v946_v23, 0.0  ;;  %v820_v27 = vadd.f32 %v2797_v2, %v819_v25  ;;  %v1383_v28 = vmax.f32 %v1201_v24, 0.0 }
 0x19f   :  { %1467 = vst.msk [vmem:[%s3300_s3 + $0x268] sm:$0xff] %vm189_vm0, %v1298_v26  ;;  %v1256_v29 = vmax.f32 %v820_v27, 0.0 }
 0x1a0   :  { %v1074_v30 = vpop.f32.mrf.mxu2  ;;  %1552 = vst.msk [vmem:[%s3300_s3 + $0x510] sm:$0xff] %vm189_vm0, %v1383_v28 }
 0x1a1   :  { %v1075_v31 = vadd.f32 %v2797_v2, %v1074_v30  ;;  %1425 = vst.msk [vmem:[%s3300_s3 + $0x118] sm:$0xff] %vm189_vm0, %v1256_v29 }
 0x1a2   :  { %v948_v32 = vpop.f32.mrf.mxu1  ;;  %v1203_v33 = vpop.f32.mrf.mxu3 }
 0x1a3   :  { %v1341_v34 = vmax.f32 %v1075_v31, 0.0  ;;  %v949_v35 = vadd.f32 %v2797_v2, %v948_v32  ;;  %v1204_v36 = vadd.f32 %v2797_v2, %v1203_v33 }
 0x1a4   :  { %v822_v37 = vpop.f32.mrf.mxu0 }
 0x1a5   :  { %1510 = vst.msk [vmem:[%s3300_s3 + $0x3c0] sm:$0xff] %vm189_vm0, %v1341_v34  ;;  %v1299_v38 = vmax.f32 %v949_v35, 0.0  ;;  %v823_v39 = vadd.f32 %v2797_v2, %v822_v37  ;;  %v1384_v40 = vmax.f32 %v1204_v36, 0.0 }
 0x1a7   :  { %1468 = vst.msk [vmem:[%s3300_s3 + $0x270] sm:$0xff] %vm189_vm0, %v1299_v38  ;;  %v1257_v41 = vmax.f32 %v823_v39, 0.0 }
 0x1a8   :  { %v1077_v42 = vpop.f32.mrf.mxu2  ;;  %1553 = vst.msk [vmem:[%s3300_s3 + $0x518] sm:$0xff] %vm189_vm0, %v1384_v40 }
 0x1a9   :  { %v1078_v43 = vadd.f32 %v2797_v2, %v1077_v42  ;;  %1426 = vst.msk [vmem:[%s3300_s3 + $0x120] sm:$0xff] %vm189_vm0, %v1257_v41 }
 0x1aa   :  { %v951_v44 = vpop.f32.mrf.mxu1  ;;  %v1206_v45 = vpop.f32.mrf.mxu3 }
 0x1ab   :  { %v1342_v46 = vmax.f32 %v1078_v43, 0.0  ;;  %v952_v47 = vadd.f32 %v2797_v2, %v951_v44  ;;  %v1207_v48 = vadd.f32 %v2797_v2, %v1206_v45 }
 0x1ac   :  { %v825_v49 = vpop.f32.mrf.mxu0 }
 0x1ad   :  { %1511 = vst.msk [vmem:[%s3300_s3 + $0x3c8] sm:$0xff] %vm189_vm0, %v1342_v46  ;;  %v1300_v50 = vmax.f32 %v952_v47, 0.0  ;;  %v826_v51 = vadd.f32 %v2797_v2, %v825_v49  ;;  %v1385_v52 = vmax.f32 %v1207_v48, 0.0 }
 0x1af   :  { %1469 = vst.msk [vmem:[%s3300_s3 + $0x278] sm:$0xff] %vm189_vm0, %v1300_v50  ;;  %v1258_v53 = vmax.f32 %v826_v51, 0.0 }
 0x1b0   :  { %v1080_v54 = vpop.f32.mrf.mxu2  ;;  %1554 = vst.msk [vmem:[%s3300_s3 + $0x520] sm:$0xff] %vm189_vm0, %v1385_v52 }
 0x1b1   :  { %v1081_v55 = vadd.f32 %v2797_v2, %v1080_v54  ;;  %1427 = vst.msk [vmem:[%s3300_s3 + $0x128] sm:$0xff] %vm189_vm0, %v1258_v53 }
 0x1b2   :  { %v954_v56 = vpop.f32.mrf.mxu1  ;;  %v1209_v57 = vpop.f32.mrf.mxu3 }
 0x1b3   :  { %v1343_v58 = vmax.f32 %v1081_v55, 0.0  ;;  %v955_v59 = vadd.f32 %v2797_v2, %v954_v56  ;;  %v1210_v60 = vadd.f32 %v2797_v2, %v1209_v57 }
 0x1b4   :  { %v828_v61 = vpop.f32.mrf.mxu0 }
 0x1b5   :  { %1512 = vst.msk [vmem:[%s3300_s3 + $0x3d0] sm:$0xff] %vm189_vm0, %v1343_v58  ;;  %v1301_v62 = vmax.f32 %v955_v59, 0.0  ;;  %v829_v63 = vadd.f32 %v2797_v2, %v828_v61  ;;  %v1386_v0 = vmax.f32 %v1210_v60, 0.0 }
 0x1b7   :  { %1470 = vst.msk [vmem:[%s3300_s3 + $0x280] sm:$0xff] %vm189_vm0, %v1301_v62  ;;  %v1259_v1 = vmax.f32 %v829_v63, 0.0 }
 0x1b8   :  { %v1083_v3 = vpop.f32.mrf.mxu2  ;;  %1555 = vst.msk [vmem:[%s3300_s3 + $0x528] sm:$0xff] %vm189_vm0, %v1386_v0 }
 0x1b9   :  { %v1084_v4 = vadd.f32 %v2797_v2, %v1083_v3  ;;  %1428 = vst.msk [vmem:[%s3300_s3 + $0x130] sm:$0xff] %vm189_vm0, %v1259_v1 }
 0x1ba   :  { %v957_v5 = vpop.f32.mrf.mxu1  ;;  %v1212_v6 = vpop.f32.mrf.mxu3 }
 0x1bb   :  { %v1344_v7 = vmax.f32 %v1084_v4, 0.0  ;;  %v958_v8 = vadd.f32 %v2797_v2, %v957_v5  ;;  %v1213_v9 = vadd.f32 %v2797_v2, %v1212_v6 }
 0x1bc   :  { %v831_v10 = vpop.f32.mrf.mxu0 }
 0x1bd   :  { %1513 = vst.msk [vmem:[%s3300_s3 + $0x3d8] sm:$0xff] %vm189_vm0, %v1344_v7  ;;  %v1302_v11 = vmax.f32 %v958_v8, 0.0  ;;  %v832_v12 = vadd.f32 %v2797_v2, %v831_v10  ;;  %v1387_v13 = vmax.f32 %v1213_v9, 0.0 }
 0x1bf   :  { %1471 = vst.msk [vmem:[%s3300_s3 + $0x288] sm:$0xff] %vm189_vm0, %v1302_v11  ;;  %v1260_v14 = vmax.f32 %v832_v12, 0.0 }
 0x1c0   :  { %v1086_v15 = vpop.f32.mrf.mxu2  ;;  %1556 = vst.msk [vmem:[%s3300_s3 + $0x530] sm:$0xff] %vm189_vm0, %v1387_v13 }
 0x1c1   :  { %v1087_v16 = vadd.f32 %v2797_v2, %v1086_v15  ;;  %1429 = vst.msk [vmem:[%s3300_s3 + $0x138] sm:$0xff] %vm189_vm0, %v1260_v14 }
 0x1c2   :  { %v960_v17 = vpop.f32.mrf.mxu1  ;;  %v1215_v18 = vpop.f32.mrf.mxu3 }
 0x1c3   :  { %v1345_v19 = vmax.f32 %v1087_v16, 0.0  ;;  %v961_v20 = vadd.f32 %v2797_v2, %v960_v17  ;;  %v1216_v21 = vadd.f32 %v2797_v2, %v1215_v18 }
 0x1c4   :  { %v834_v22 = vpop.f32.mrf.mxu0 }
 0x1c5   :  { %1514 = vst.msk [vmem:[%s3300_s3 + $0x3e0] sm:$0xff] %vm189_vm0, %v1345_v19  ;;  %v1303_v23 = vmax.f32 %v961_v20, 0.0  ;;  %v835_v24 = vadd.f32 %v2797_v2, %v834_v22  ;;  %v1388_v25 = vmax.f32 %v1216_v21, 0.0 }
 0x1c7   :  { %1472 = vst.msk [vmem:[%s3300_s3 + $0x290] sm:$0xff] %vm189_vm0, %v1303_v23  ;;  %v1261_v26 = vmax.f32 %v835_v24, 0.0 }
 0x1c8   :  { %v1089_v27 = vpop.f32.mrf.mxu2  ;;  %1557 = vst.msk [vmem:[%s3300_s3 + $0x538] sm:$0xff] %vm189_vm0, %v1388_v25 }
 0x1c9   :  { %v1090_v28 = vadd.f32 %v2797_v2, %v1089_v27  ;;  %1430 = vst.msk [vmem:[%s3300_s3 + $0x140] sm:$0xff] %vm189_vm0, %v1261_v26 }
 0x1ca   :  { %v963_v29 = vpop.f32.mrf.mxu1  ;;  %v1218_v30 = vpop.f32.mrf.mxu3 }
 0x1cb   :  { %v1346_v31 = vmax.f32 %v1090_v28, 0.0  ;;  %v964_v32 = vadd.f32 %v2797_v2, %v963_v29  ;;  %v1219_v33 = vadd.f32 %v2797_v2, %v1218_v30 }
 0x1cc   :  { %v837_v34 = vpop.f32.mrf.mxu0 }
 0x1cd   :  { %1515 = vst.msk [vmem:[%s3300_s3 + $0x3e8] sm:$0xff] %vm189_vm0, %v1346_v31  ;;  %v1304_v35 = vmax.f32 %v964_v32, 0.0  ;;  %v838_v36 = vadd.f32 %v2797_v2, %v837_v34  ;;  %v1389_v37 = vmax.f32 %v1219_v33, 0.0 }
 0x1cf   :  { %1473 = vst.msk [vmem:[%s3300_s3 + $0x298] sm:$0xff] %vm189_vm0, %v1304_v35  ;;  %v1262_v38 = vmax.f32 %v838_v36, 0.0 }
 0x1d0   :  { %v1092_v39 = vpop.f32.mrf.mxu2  ;;  %1558 = vst.msk [vmem:[%s3300_s3 + $0x540] sm:$0xff] %vm189_vm0, %v1389_v37 }
 0x1d1   :  { %v1093_v40 = vadd.f32 %v2797_v2, %v1092_v39  ;;  %1431 = vst.msk [vmem:[%s3300_s3 + $0x148] sm:$0xff] %vm189_vm0, %v1262_v38 }
 0x1d2   :  { %v966_v41 = vpop.f32.mrf.mxu1 }
 0x1d3   :  { %v1347_v42 = vmax.f32 %v1093_v40, 0.0  ;;  %v967_v43 = vadd.f32 %v2797_v2, %v966_v41 }
 0x1d5   :  { %1516 = vst.msk [vmem:[%s3300_s3 + $0x3f0] sm:$0xff] %vm189_vm0, %v1347_v42  ;;  %v1305_v44 = vmax.f32 %v967_v43, 0.0 }
 0x1d7   :  { %1474 = vst.msk [vmem:[%s3300_s3 + $0x2a0] sm:$0xff] %vm189_vm0, %v1305_v44 }
 0x1d8   :  { %v1095_v45 = vpop.f32.mrf.mxu2 }
 0x1d9   :  { %v1096_v46 = vadd.f32 %v2797_v2, %v1095_v45 }
 0x1db   :  { %v1348_v47 = vmax.f32 %v1096_v46, 0.0 }
 0x1dd   :  { %1517 = vst.msk [vmem:[%s3300_s3 + $0x3f8] sm:$0xff] %vm189_vm0, %v1348_v47 }

// kernel: oct_net_forward.7
= control target key start
LH: loop header
LB: loop body
LE: loop exit
PB: predicated region body
PF: predicated region fallthrough
CT: control target
= control target key end

     0   :  { %vm324_vm0 = vcmask 130048   ;;  %s4124_s1 = inlined_call_operand.vmem [shape: f32[144,16], index: 1, kind: input, shape index: {}]   ;;  %s4125_s0 = inlined_call_operand.vmem [shape: f32[1152,144], index: 0, kind: input, shape index: {}]   ;;  %s4126_s2 = inlined_call_operand.vmem [shape: f32[1,16], index: 2, kind: input, shape index: {}]   ;;  %s4127_s3 = inlined_call_operand.vmem [shape: f32[1152,16], index: 3, kind: output, shape index: {}]  }
   0x1   :  { %v317_v0 = vld [vmem:[%s4124_s1 + $0x78] sm:$0xff]  ;;  %v2154_v1 = vld [vmem:[%s4124_s1 + $0x88] sm:$0xff]  ;;  %v316_v2 = vld [vmem:[%s4124_s1 + $0x70] sm:$0xff] }
   0x2   :  { %757 = vmatpush.msra.mxu0 %v317_v0  ;;  %2091 = vmatpush.msra.mxu2 %v317_v0  ;;  %v2162_v3 = vld [vmem:[%s4124_s1 + $0x80] sm:$0xff]  ;;  %v15_v4 = vld [vmem:[%s4125_s0 + $0x8] sm:$0xff]  ;;  %v313_v7 = vld [vmem:[%s4124_s1 + $0x58] sm:$0xff] }
   0x3   :  { %2092 = vmatpush.msra.mxu3 %v317_v0  ;;  %1220 = vmatpush.msra.mxu1 %v2154_v1  ;;  %v315_v5 = vld [vmem:[%s4124_s1 + $0x68] sm:$0xff]  ;;  %v314_v6 = vld [vmem:[%s4124_s1 + $0x60] sm:$0xff]  ;;  %v312_v8 = vld [vmem:[%s4124_s1 + $0x50] sm:$0xff] }
   0x4   :  { %758 = vmatpush.msra.mxu0 %v316_v2  ;;  %2093 = vmatpush.msra.mxu2 %v316_v2  ;;  %v17_v9 = vld [vmem:[%s4125_s0 + $0x18] sm:$0xff]  ;;  %v311_v10 = vld [vmem:[%s4124_s1 + $0x48] sm:$0xff]  ;;  %v310_v11 = vld [vmem:[%s4124_s1 + $0x40] sm:$0xff] }
   0x5   :  { %2094 = vmatpush.msra.mxu3 %v316_v2  ;;  %1221 = vmatpush.msra.mxu1 %v2162_v3  ;;  %v309_v12 = vld [vmem:[%s4124_s1 + $0x38] sm:$0xff]  ;;  %v308_v13 = vld [vmem:[%s4124_s1 + $0x30] sm:$0xff]  ;;  %v19_v14 = vld [vmem:[%s4125_s0 + $0x28] sm:$0xff] }
   0x6   :  { %1947 = vmatmul.msk.f32.vlgmr.msra.gmra.mxu1 %vm324_vm0, %v15_v4  ;;  %759 = vmatpush.msra.mxu0 %v315_v5  ;;  %v307_v15 = vld [vmem:[%s4124_s1 + $0x28] sm:$0xff]  ;;  %v306_v16 = vld [vmem:[%s4124_s1 + $0x20] sm:$0xff]  ;;  %v305_v17 = vld [vmem:[%s4124_s1 + $0x18] sm:$0xff] }
   0x7   :  { %2095 = vmatpush.msra.mxu2 %v315_v5  ;;  %2096 = vmatpush.msra.mxu3 %v315_v5  ;;  %v304_v18 = vld [vmem:[%s4124_s1 + $0x10] sm:$0xff]  ;;  %v21_v19 = vld [vmem:[%s4125_s0 + $0x38] sm:$0xff]  ;;  %v303_v20 = vld [vmem:[%s4124_s1 + $0x8] sm:$0xff] }
   0x8   :  { %760 = vmatpush.msra.mxu0 %v314_v6  ;;  %v302_v21 = vld [vmem:[%s4124_s1] sm:$0xff]  ;;  %v156_v23 = vld [vmem:[%s4125_s0 + $0x470] sm:$0xff]  ;;  %v23_v25 = vld [vmem:[%s4125_s0 + $0x48] sm:$0xff] }
   0x9   :  { %2097 = vmatpush.msra.mxu2 %v314_v6  ;;  %2098 = vmatpush.msra.mxu3 %v314_v6  ;;  %v14_v22 = vld [vmem:[%s4125_s0] sm:$0xff]  ;;  %v300_v24 = vld [vmem:[%s4125_s0 + $0x8f0] sm:$0xff]  ;;  %v163_v28 = vld [vmem:[%s4125_s0 + $0x4a8] sm:$0xff] }
   0xa   :  { %761 = vmatpush.msra.mxu0 %v313_v7  ;;  %v16_v26 = vld [vmem:[%s4125_s0 + $0x10] sm:$0xff]  ;;  %v158_v27 = vld [vmem:[%s4125_s0 + $0x480] sm:$0xff]  ;;  %v25_v29 = vld [vmem:[%s4125_s0 + $0x58] sm:$0xff] }
   0xb   :  { %2099 = vmatpush.msra.mxu2 %v313_v7  ;;  %2100 = vmatpush.msra.mxu3 %v313_v7  ;;  %v18_v30 = vld [vmem:[%s4125_s0 + $0x20] sm:$0xff]  ;;  %v160_v31 = vld [vmem:[%s4125_s0 + $0x490] sm:$0xff]  ;;  %v165_v32 = vld [vmem:[%s4125_s0 + $0x4b8] sm:$0xff] }
   0xc   :  { %762 = vmatpush.msra.mxu0 %v312_v8  ;;  %v27_v33 = vld [vmem:[%s4125_s0 + $0x68] sm:$0xff]  ;;  %v20_v34 = vld [vmem:[%s4125_s0 + $0x30] sm:$0xff]  ;;  %v162_v35 = vld [vmem:[%s4125_s0 + $0x4a0] sm:$0xff] }
   0xd   :  { %2101 = vmatpush.msra.mxu2 %v312_v8  ;;  %2102 = vmatpush.msra.mxu3 %v312_v8  ;;  %v167_v36 = vld [vmem:[%s4125_s0 + $0x4c8] sm:$0xff]  ;;  %v29_v37 = vld [vmem:[%s4125_s0 + $0x78] sm:$0xff]  ;;  %v22_v38 = vld [vmem:[%s4125_s0 + $0x40] sm:$0xff] }
   0xe   :  { %1948 = vmatmul.msk.f32.gmra.mxu1 %vm324_vm0, %v17_v9  ;;  %763 = vmatpush.msra.mxu0 %v311_v10  ;;  %v164_v39 = vld [vmem:[%s4125_s0 + $0x4b0] sm:$0xff]  ;;  %v169_v40 = vld [vmem:[%s4125_s0 + $0x4d8] sm:$0xff]  ;;  %v31_v41 = vld [vmem:[%s4125_s0 + $0x88] sm:$0xff] }
   0xf   :  { %2103 = vmatpush.msra.mxu2 %v311_v10  ;;  %2104 = vmatpush.msra.mxu3 %v311_v10  ;;  %v24_v42 = vld [vmem:[%s4125_s0 + $0x50] sm:$0xff]  ;;  %v166_v43 = vld [vmem:[%s4125_s0 + $0x4c0] sm:$0xff]  ;;  %v171_v44 = vld [vmem:[%s4125_s0 + $0x4e8] sm:$0xff] }
  0x10   :  { %764 = vmatpush.msra.mxu0 %v310_v11  ;;  %v33_v45 = vld [vmem:[%s4125_s0 + $0x98] sm:$0xff]  ;;  %v26_v46 = vld [vmem:[%s4125_s0 + $0x60] sm:$0xff]  ;;  %v168_v47 = vld [vmem:[%s4125_s0 + $0x4d0] sm:$0xff] }
  0x11   :  { %2105 = vmatpush.msra.mxu2 %v310_v11  ;;  %2106 = vmatpush.msra.mxu3 %v310_v11  ;;  %v173_v48 = vld [vmem:[%s4125_s0 + $0x4f8] sm:$0xff]  ;;  %v35_v49 = vld [vmem:[%s4125_s0 + $0xa8] sm:$0xff]  ;;  %v28_v50 = vld [vmem:[%s4125_s0 + $0x70] sm:$0xff] }
  0x12   :  { %765 = vmatpush.msra.mxu0 %v309_v12  ;;  %v170_v51 = vld [vmem:[%s4125_s0 + $0x4e0] sm:$0xff]  ;;  %v175_v52 = vld [vmem:[%s4125_s0 + $0x508] sm:$0xff]  ;;  %v37_v53 = vld [vmem:[%s4125_s0 + $0xb8] sm:$0xff] }
  0x13   :  { %2107 = vmatpush.msra.mxu2 %v309_v12  ;;  %2108 = vmatpush.msra.mxu3 %v309_v12  ;;  %v30_v54 = vld [vmem:[%s4125_s0 + $0x80] sm:$0xff]  ;;  %v172_v55 = vld [vmem:[%s4125_s0 + $0x4f0] sm:$0xff]  ;;  %v177_v56 = vld [vmem:[%s4125_s0 + $0x518] sm:$0xff] }
  0x14   :  { %766 = vmatpush.msra.mxu0 %v308_v13  ;;  %v39_v57 = vld [vmem:[%s4125_s0 + $0xc8] sm:$0xff]  ;;  %v32_v58 = vld [vmem:[%s4125_s0 + $0x90] sm:$0xff]  ;;  %v174_v59 = vld [vmem:[%s4125_s0 + $0x500] sm:$0xff] }
  0x15   :  { %2109 = vmatpush.msra.mxu2 %v308_v13  ;;  %2110 = vmatpush.msra.mxu3 %v308_v13  ;;  %v179_v60 = vld [vmem:[%s4125_s0 + $0x528] sm:$0xff]  ;;  %v41_v61 = vld [vmem:[%s4125_s0 + $0xd8] sm:$0xff]  ;;  %v34_v62 = vld [vmem:[%s4125_s0 + $0xa0] sm:$0xff] }
  0x16   :  { %1949 = vmatmul.msk.f32.gmra.mxu1 %vm324_vm0, %v19_v14  ;;  %767 = vmatpush.msra.mxu0 %v307_v15  ;;  %v176_v63 = vld [vmem:[%s4125_s0 + $0x510] sm:$0xff]  ;;  %v181_v0 = vld [vmem:[%s4125_s0 + $0x538] sm:$0xff]  ;;  %v183_v4 = vld [vmem:[%s4125_s0 + $0x548] sm:$0xff] }
  0x17   :  { %2111 = vmatpush.msra.mxu2 %v307_v15  ;;  %2112 = vmatpush.msra.mxu3 %v307_v15  ;;  %v36_v2 = vld [vmem:[%s4125_s0 + $0xb0] sm:$0xff]  ;;  %v45_v5 = vld [vmem:[%s4125_s0 + $0xf8] sm:$0xff]  ;;  %v38_v6 = vld [vmem:[%s4125_s0 + $0xc0] sm:$0xff] }
  0x18   :  { %768 = vmatpush.msra.mxu0 %v306_v16  ;;  %v180_v7 = vld [vmem:[%s4125_s0 + $0x530] sm:$0xff]  ;;  %v185_v8 = vld [vmem:[%s4125_s0 + $0x558] sm:$0xff]  ;;  %v47_v10 = vld [vmem:[%s4125_s0 + $0x108] sm:$0xff] }
  0x19   :  { %2113 = vmatpush.msra.mxu2 %v306_v16  ;;  %2114 = vmatpush.msra.mxu3 %v306_v16  ;;  %v40_v11 = vld [vmem:[%s4125_s0 + $0xd0] sm:$0xff]  ;;  %v182_v12 = vld [vmem:[%s4125_s0 + $0x540] sm:$0xff]  ;;  %v187_v13 = vld [vmem:[%s4125_s0 + $0x568] sm:$0xff] }
  0x1a   :  { %769 = vmatpush.msra.mxu0 %v305_v17  ;;  %v49_v15 = vld [vmem:[%s4125_s0 + $0x118] sm:$0xff]  ;;  %v42_v16 = vld [vmem:[%s4125_s0 + $0xe0] sm:$0xff] }
  0x1b   :  { %2115 = vmatpush.msra.mxu2 %v305_v17  ;;  %2116 = vmatpush.msra.mxu3 %v305_v17  ;;  %v184_v17 = vld [vmem:[%s4125_s0 + $0x550] sm:$0xff] }
  0x1c   :  { %770 = vmatpush.msra.mxu0 %v304_v18 }
  0x1d   :  { %2117 = vmatpush.msra.mxu2 %v304_v18  ;;  %2118 = vmatpush.msra.mxu3 %v304_v18  ;;  %v189_v18 = vld [vmem:[%s4125_s0 + $0x578] sm:$0xff] }
  0x1e   :  { %1950 = vmatmul.msk.f32.gmra.mxu1 %vm324_vm0, %v21_v19  ;;  %771 = vmatpush.msra.mxu0 %v303_v20 }
  0x1f   :  { %2119 = vmatpush.msra.mxu2 %v303_v20  ;;  %2120 = vmatpush.msra.mxu3 %v303_v20  ;;  %v51_v20 = vld [vmem:[%s4125_s0 + $0x128] sm:$0xff] }
  0x20   :  { %772 = vmatpush.msra.mxu0 %v302_v21 }
  0x21   :  { %2121 = vmatpush.msra.mxu2 %v302_v21  ;;  %2122 = vmatpush.msra.mxu3 %v302_v21  ;;  %v44_v21 = vld [vmem:[%s4125_s0 + $0xf0] sm:$0xff] }
  0x22   :  { %773 = vmatmul.f32.vlgmr.msra.gmra.mxu0 %v14_v22  ;;  %986 = vmatmul.f32.vlgmr.msra.gmra.mxu2 %v156_v23  ;;  %v186_v22 = vld [vmem:[%s4125_s0 + $0x560] sm:$0xff]  ;;  %v191_v23 = vld [vmem:[%s4125_s0 + $0x588] sm:$0xff] }
  0x23   :  { %1202 = vmatmul.f32.vlgmr.msra.gmra.mxu3 %v300_v24 }
  0x24   :  { %2123 = vmatpush.msrb.mxu3 %v2154_v1  ;;  %v43_v1 = vld [vmem:[%s4125_s0 + $0xe8] sm:$0xff] }
  0x26   :  { %1951 = vmatmul.msk.f32.gmra.mxu1 %vm324_vm0, %v23_v25  ;;  %2124 = vmatpush.msrb.mxu3 %v2162_v3  ;;  %v178_v3 = vld [vmem:[%s4125_s0 + $0x520] sm:$0xff]  ;;  %v53_v25 = vld [vmem:[%s4125_s0 + $0x138] sm:$0xff] }
  0x2a   :  { %776 = vmatmul.f32.gmra.mxu0 %v16_v26  ;;  %989 = vmatmul.f32.gmra.mxu2 %v158_v27  ;;  %v2451_v26 = vld [vmem:[%s4126_s2] ss:$0 sm:$0xff] }
  0x2b   :  { %2021 = vmatmul.msk.f32.vlgmr.msrb.gmra.mxu3 %vm324_vm0, %v163_v28  ;;  %v46_v28 = vld [vmem:[%s4125_s0 + $0x100] sm:$0xff] }
  0x2e   :  { %1952 = vmatmul.msk.f32.gmra.mxu1 %vm324_vm0, %v25_v29  ;;  %v188_v29 = vld [vmem:[%s4125_s0 + $0x570] sm:$0xff] }
  0x32   :  { %779 = vmatmul.f32.gmra.mxu0 %v18_v30  ;;  %992 = vmatmul.f32.gmra.mxu2 %v160_v31  ;;  %v193_v31 = vld [vmem:[%s4125_s0 + $0x598] sm:$0xff] }
  0x33   :  { %2022 = vmatmul.msk.f32.gmra.mxu3 %vm324_vm0, %v165_v32 }
  0x36   :  { %1953 = vmatmul.msk.f32.gmra.mxu1 %vm324_vm0, %v27_v33 }
  0x3a   :  { %782 = vmatmul.f32.gmra.mxu0 %v20_v34  ;;  %995 = vmatmul.f32.gmra.mxu2 %v162_v35  ;;  %v55_v34 = vld [vmem:[%s4125_s0 + $0x148] sm:$0xff] }
  0x3b   :  { %2023 = vmatmul.msk.f32.gmra.mxu3 %vm324_vm0, %v167_v36 }
  0x3e   :  { %1954 = vmatmul.msk.f32.gmra.mxu1 %vm324_vm0, %v29_v37 }
  0x42   :  { %785 = vmatmul.f32.gmra.mxu0 %v22_v38  ;;  %998 = vmatmul.f32.gmra.mxu2 %v164_v39  ;;  %v48_v39 = vld [vmem:[%s4125_s0 + $0x110] sm:$0xff] }
  0x43   :  { %2024 = vmatmul.msk.f32.gmra.mxu3 %vm324_vm0, %v169_v40  ;;  %v190_v40 = vld [vmem:[%s4125_s0 + $0x580] sm:$0xff] }
  0x46   :  { %1955 = vmatmul.msk.f32.gmra.mxu1 %vm324_vm0, %v31_v41 }
  0x4a   :  { %788 = vmatmul.f32.gmra.mxu0 %v24_v42  ;;  %1001 = vmatmul.f32.gmra.mxu2 %v166_v43  ;;  %v195_v42 = vld [vmem:[%s4125_s0 + $0x5a8] sm:$0xff] }
  0x4b   :  { %2025 = vmatmul.msk.f32.gmra.mxu3 %vm324_vm0, %v171_v44 }
  0x4e   :  { %1956 = vmatmul.msk.f32.gmra.mxu1 %vm324_vm0, %v33_v45  ;;  %v57_v45 = vld [vmem:[%s4125_s0 + $0x158] sm:$0xff] }
  0x52   :  { %791 = vmatmul.f32.gmra.mxu0 %v26_v46  ;;  %1004 = vmatmul.f32.gmra.mxu2 %v168_v47 }
  0x53   :  { %2026 = vmatmul.msk.f32.gmra.mxu3 %vm324_vm0, %v173_v48 }
  0x56   :  { %1957 = vmatmul.msk.f32.gmra.mxu1 %vm324_vm0, %v35_v49 }
  0x5a   :  { %794 = vmatmul.f32.gmra.mxu0 %v28_v50  ;;  %1007 = vmatmul.f32.gmra.mxu2 %v170_v51  ;;  %v50_v50 = vld [vmem:[%s4125_s0 + $0x120] sm:$0xff]  ;;  %v192_v51 = vld [vmem:[%s4125_s0 + $0x590] sm:$0xff] }
  0x5b   :  { %2027 = vmatmul.msk.f32.gmra.mxu3 %vm324_vm0, %v175_v52 }
  0x5e   :  { %1958 = vmatmul.msk.f32.gmra.mxu1 %vm324_vm0, %v37_v53  ;;  %v197_v53 = vld [vmem:[%s4125_s0 + $0x5b8] sm:$0xff] }
  0x62   :  { %797 = vmatmul.f32.gmra.mxu0 %v30_v54  ;;  %1010 = vmatmul.f32.gmra.mxu2 %v172_v55 }
  0x63   :  { %2028 = vmatmul.msk.f32.gmra.mxu3 %vm324_vm0, %v177_v56  ;;  %v59_v56 = vld [vmem:[%s4125_s0 + $0x168] sm:$0xff] }
  0x66   :  { %1959 = vmatmul.msk.f32.gmra.mxu1 %vm324_vm0, %v39_v57 }
  0x6a   :  { %800 = vmatmul.f32.gmra.mxu0 %v32_v58  ;;  %1013 = vmatmul.f32.gmra.mxu2 %v174_v59 }
  0x6b   :  { %2029 = vmatmul.msk.f32.gmra.mxu3 %vm324_vm0, %v179_v60 }
  0x6e   :  { %1960 = vmatmul.msk.f32.gmra.mxu1 %vm324_vm0, %v41_v61  ;;  %v52_v61 = vld [vmem:[%s4125_s0 + $0x130] sm:$0xff] }
  0x72   :  { %803 = vmatmul.f32.gmra.mxu0 %v34_v62  ;;  %1016 = vmatmul.f32.gmra.mxu2 %v176_v63  ;;  %v194_v62 = vld [vmem:[%s4125_s0 + $0x5a0] sm:$0xff] }
  0x73   :  { %2030 = vmatmul.msk.f32.gmra.mxu3 %vm324_vm0, %v181_v0  ;;  %v199_v0 = vld [vmem:[%s4125_s0 + $0x5c8] sm:$0xff] }
  0x76   :  { %1961 = vmatmul.msk.f32.gmra.mxu1 %vm324_vm0, %v43_v1 }
  0x7a   :  { %806 = vmatmul.f32.gmra.mxu0 %v36_v2  ;;  %1019 = vmatmul.f32.gmra.mxu2 %v178_v3  ;;  %v61_v3 = vld [vmem:[%s4125_s0 + $0x178] sm:$0xff] }
  0x7b   :  { %2031 = vmatmul.msk.f32.gmra.mxu3 %vm324_vm0, %v183_v4 }
  0x7e   :  { %1962 = vmatmul.msk.f32.gmra.mxu1 %vm324_vm0, %v45_v5 }
  0x82   :  { %809 = vmatmul.f32.gmra.mxu0 %v38_v6  ;;  %1022 = vmatmul.f32.gmra.mxu2 %v180_v7 }
  0x83   :  { %2032 = vmatmul.msk.f32.gmra.mxu3 %vm324_vm0, %v185_v8  ;;  %v1223_v9 = vpop.f32.mrf.mxu1 }
  0x86   :  { %1963 = vmatmul.msk.f32.gmra.mxu1 %vm324_vm0, %v47_v10  ;;  %v196_v10 = vld [vmem:[%s4125_s0 + $0x5b0] sm:$0xff] }
  0x8a   :  { %812 = vmatmul.f32.gmra.mxu0 %v40_v11  ;;  %1025 = vmatmul.f32.gmra.mxu2 %v182_v12 }
  0x8b   :  { %2033 = vmatmul.msk.f32.gmra.mxu3 %vm324_vm0, %v187_v13  ;;  %v1226_v14 = vpop.f32.mrf.mxu1  ;;  %v201_v13 = vld [vmem:[%s4125_s0 + $0x5d8] sm:$0xff] }
  0x8e   :  { %1964 = vmatmul.msk.f32.gmra.mxu1 %vm324_vm0, %v49_v15 }
  0x92   :  { %815 = vmatmul.f32.gmra.mxu0 %v42_v16  ;;  %1028 = vmatmul.f32.gmra.mxu2 %v184_v17  ;;  %v63_v17 = vld [vmem:[%s4125_s0 + $0x188] sm:$0xff] }
  0x93   :  { %2034 = vmatmul.msk.f32.gmra.mxu3 %vm324_vm0, %v189_v18  ;;  %v1229_v19 = vpop.f32.mrf.mxu1 }
  0x96   :  { %1965 = vmatmul.msk.f32.gmra.mxu1 %vm324_vm0, %v51_v20 }
  0x9a   :  { %818 = vmatmul.f32.gmra.mxu0 %v44_v21  ;;  %1031 = vmatmul.f32.gmra.mxu2 %v186_v22 }
  0x9b   :  { %2035 = vmatmul.msk.f32.gmra.mxu3 %vm324_vm0, %v191_v23  ;;  %v1232_v24 = vpop.f32.mrf.mxu1  ;;  %v56_v23 = vld [vmem:[%s4125_s0 + $0x150] sm:$0xff] }
  0x9e   :  { %1966 = vmatmul.msk.f32.gmra.mxu1 %vm324_vm0, %v53_v25 }
  0x9f   :  { %v774_v27 = vpop.f32.mrf.mxu0 }
  0xa0   :  { %v775_v30 = vadd.f32 %v2451_v26, %v774_v27 }
  0xa2   :  { %v1224_v32 = vadd.f32 %v1223_v9, %v775_v30  ;;  %821 = vmatmul.f32.gmra.mxu0 %v46_v28  ;;  %1034 = vmatmul.f32.gmra.mxu2 %v188_v29  ;;  %v54_v9 = vld [vmem:[%s4125_s0 + $0x140] sm:$0xff]  ;;  %v203_v28 = vld [vmem:[%s4125_s0 + $0x5e8] sm:$0xff] }
  0xa3   :  { %2036 = vmatmul.msk.f32.gmra.mxu3 %vm324_vm0, %v193_v31  ;;  %v2465_v33 = vpop.f32.mrf.mxu1 }
  0xa4   :  { %v1655_v35 = vmax.f32 %v1224_v32, 0.0  ;;  %v65_v32 = vld [vmem:[%s4125_s0 + $0x198] sm:$0xff] }
  0xa5   :  { %v2470_v36 = vpop.f32.mrf.mxu2 }
  0xa6   :  { %1799 = vst.msk [vmem:[%s4127_s3] sm:$0xff] %vm324_vm0, %v1655_v35  ;;  %v2476_v37 = vpop.f32.mrf.mxu3  ;;  %1967 = vmatmul.msk.f32.gmra.mxu1 %vm324_vm0, %v55_v34 }
  0xa7   :  { %v777_v38 = vpop.f32.mrf.mxu0 }
  0xa8   :  { %v778_v41 = vadd.f32 %v2451_v26, %v777_v38 }
  0xaa   :  { %v1227_v43 = vadd.f32 %v1226_v14, %v778_v41  ;;  %824 = vmatmul.f32.gmra.mxu0 %v48_v39  ;;  %1037 = vmatmul.f32.gmra.mxu2 %v190_v40  ;;  %v58_v40 = vld [vmem:[%s4125_s0 + $0x160] sm:$0xff]  ;;  %v200_v41 = vld [vmem:[%s4125_s0 + $0x5d0] sm:$0xff] }
  0xab   :  { %2037 = vmatmul.msk.f32.gmra.mxu3 %vm324_vm0, %v195_v42  ;;  %v2490_v44 = vpop.f32.mrf.mxu1 }
  0xac   :  { %v1656_v46 = vmax.f32 %v1227_v43, 0.0 }
  0xad   :  { %v2495_v47 = vpop.f32.mrf.mxu2 }
  0xae   :  { %1800 = vst.msk [vmem:[%s4127_s3 + $0x8] sm:$0xff] %vm324_vm0, %v1656_v46  ;;  %v1445_v48 = vpop.f32.mrf.mxu3  ;;  %1968 = vmatmul.msk.f32.gmra.mxu1 %vm324_vm0, %v57_v45 }
  0xaf   :  { %v780_v49 = vpop.f32.mrf.mxu0 }
  0xb0   :  { %v781_v52 = vadd.f32 %v2451_v26, %v780_v49  ;;  %v67_v49 = vld [vmem:[%s4125_s0 + $0x1a8] sm:$0xff] }
  0xb2   :  { %v1230_v54 = vadd.f32 %v1229_v19, %v781_v52  ;;  %827 = vmatmul.f32.gmra.mxu0 %v50_v50  ;;  %1040 = vmatmul.f32.gmra.mxu2 %v192_v51 }
  0xb3   :  { %2038 = vmatmul.msk.f32.gmra.mxu3 %vm324_vm0, %v197_v53  ;;  %v2513_v55 = vpop.f32.mrf.mxu1 }
  0xb4   :  { %v1657_v57 = vmax.f32 %v1230_v54, 0.0 }
  0xb5   :  { %v2518_v58 = vpop.f32.mrf.mxu2 }
  0xb6   :  { %1801 = vst.msk [vmem:[%s4127_s3 + $0x10] sm:$0xff] %vm324_vm0, %v1657_v57  ;;  %v1448_v59 = vpop.f32.mrf.mxu3  ;;  %1969 = vmatmul.msk.f32.gmra.mxu1 %vm324_vm0, %v59_v56  ;;  %v202_v56 = vld [vmem:[%s4125_s0 + $0x5e0] sm:$0xff] }
  0xb7   :  { %v783_v60 = vpop.f32.mrf.mxu0 }
  0xb8   :  { %v784_v63 = vadd.f32 %v2451_v26, %v783_v60  ;;  %v207_v60 = vld [vmem:[%s4125_s0 + $0x608] sm:$0xff] }
  0xba   :  { %v1233_v1 = vadd.f32 %v1232_v24, %v784_v63  ;;  %830 = vmatmul.f32.gmra.mxu0 %v52_v61  ;;  %1043 = vmatmul.f32.gmra.mxu2 %v194_v62  ;;  %v198_v24 = vld [vmem:[%s4125_s0 + $0x5c0] sm:$0xff] }
  0xbb   :  { %2039 = vmatmul.msk.f32.gmra.mxu3 %vm324_vm0, %v199_v0  ;;  %v2536_v2 = vpop.f32.mrf.mxu1  ;;  %v69_v0 = vld [vmem:[%s4125_s0 + $0x1b8] sm:$0xff] }
  0xbc   :  { %v1658_v4 = vmax.f32 %v1233_v1, 0.0 }
  0xbd   :  { %v996_v5 = vpop.f32.mrf.mxu2 }
  0xbe   :  { %1802 = vst.msk [vmem:[%s4127_s3 + $0x18] sm:$0xff] %vm324_vm0, %v1658_v4  ;;  %v997_v6 = vadd.f32 %v2451_v26, %v996_v5  ;;  %v1451_v7 = vpop.f32.mrf.mxu3  ;;  %1970 = vmatmul.msk.f32.gmra.mxu1 %vm324_vm0, %v61_v3 }
  0xbf   :  { %v786_v8 = vpop.f32.mrf.mxu0 }
  0xc0   :  { %v1446_v11 = vadd.f32 %v1445_v48, %v997_v6  ;;  %v787_v12 = vadd.f32 %v2451_v26, %v786_v8  ;;  %v62_v6 = vld [vmem:[%s4125_s0 + $0x180] sm:$0xff] }
  0xc2   :  { %v1729_v14 = vmax.f32 %v1446_v11, 0.0  ;;  %v1236_v15 = vadd.f32 %v2465_v33, %v787_v12  ;;  %833 = vmatmul.f32.gmra.mxu0 %v54_v9  ;;  %1046 = vmatmul.f32.gmra.mxu2 %v196_v10  ;;  %v209_v10 = vld [vmem:[%s4125_s0 + $0x618] sm:$0xff] }
  0xc3   :  { %2040 = vmatmul.msk.f32.gmra.mxu3 %vm324_vm0, %v201_v13  ;;  %v2559_v16 = vpop.f32.mrf.mxu1 }
  0xc4   :  { %1873 = vst.msk [vmem:[%s4127_s3 + $0x250] sm:$0xff] %vm324_vm0, %v1729_v14  ;;  %v1659_v18 = vmax.f32 %v1236_v15, 0.0  ;;  %v71_v14 = vld [vmem:[%s4125_s0 + $0x1c8] sm:$0xff] }
  0xc5   :  { %v999_v19 = vpop.f32.mrf.mxu2 }
  0xc6   :  { %1803 = vst.msk [vmem:[%s4127_s3 + $0x20] sm:$0xff] %vm324_vm0, %v1659_v18  ;;  %v1000_v20 = vadd.f32 %v2451_v26, %v999_v19  ;;  %v1454_v21 = vpop.f32.mrf.mxu3  ;;  %1971 = vmatmul.msk.f32.gmra.mxu1 %vm324_vm0, %v63_v17 }
  0xc7   :  { %v789_v22 = vpop.f32.mrf.mxu0 }
  0xc8   :  { %v1449_v25 = vadd.f32 %v1448_v59, %v1000_v20  ;;  %v790_v27 = vadd.f32 %v2451_v26, %v789_v22  ;;  %v64_v20 = vld [vmem:[%s4125_s0 + $0x190] sm:$0xff] }
  0xca   :  { %v1730_v29 = vmax.f32 %v1449_v25, 0.0  ;;  %v1239_v30 = vadd.f32 %v2490_v44, %v790_v27  ;;  %836 = vmatmul.f32.gmra.mxu0 %v56_v23  ;;  %1049 = vmatmul.f32.gmra.mxu2 %v198_v24  ;;  %v205_v44 = vld [vmem:[%s4125_s0 + $0x5f8] sm:$0xff]  ;;  %v211_v24 = vld [vmem:[%s4125_s0 + $0x628] sm:$0xff] }
  0xcb   :  { %2041 = vmatmul.msk.f32.gmra.mxu3 %vm324_vm0, %v203_v28  ;;  %v2586_v31 = vpop.f32.mrf.mxu1 }
  0xcc   :  { %1874 = vst.msk [vmem:[%s4127_s3 + $0x258] sm:$0xff] %vm324_vm0, %v1730_v29  ;;  %v1660_v33 = vmax.f32 %v1239_v30, 0.0  ;;  %v73_v29 = vld [vmem:[%s4125_s0 + $0x1d8] sm:$0xff] }
  0xcd   :  { %v1002_v34 = vpop.f32.mrf.mxu2 }
  0xce   :  { %1804 = vst.msk [vmem:[%s4127_s3 + $0x28] sm:$0xff] %vm324_vm0, %v1660_v33  ;;  %v1003_v35 = vadd.f32 %v2451_v26, %v1002_v34  ;;  %v1457_v38 = vpop.f32.mrf.mxu3  ;;  %1972 = vmatmul.msk.f32.gmra.mxu1 %vm324_vm0, %v65_v32 }
  0xcf   :  { %v792_v39 = vpop.f32.mrf.mxu0 }
  0xd0   :  { %v1452_v42 = vadd.f32 %v1451_v7, %v1003_v35  ;;  %v793_v43 = vadd.f32 %v2451_v26, %v792_v39  ;;  %v204_v7 = vld [vmem:[%s4125_s0 + $0x5f0] sm:$0xff]  ;;  %v66_v35 = vld [vmem:[%s4125_s0 + $0x1a0] sm:$0xff] }
  0xd2   :  { %v1731_v45 = vmax.f32 %v1452_v42, 0.0  ;;  %v1242_v46 = vadd.f32 %v2513_v55, %v793_v43  ;;  %839 = vmatmul.f32.gmra.mxu0 %v58_v40  ;;  %1052 = vmatmul.f32.gmra.mxu2 %v200_v41  ;;  %v60_v55 = vld [vmem:[%s4125_s0 + $0x170] sm:$0xff]  ;;  %v213_v41 = vld [vmem:[%s4125_s0 + $0x638] sm:$0xff] }
  0xd3   :  { %2042 = vmatmul.msk.f32.gmra.mxu3 %vm324_vm0, %v205_v44  ;;  %v2613_v48 = vpop.f32.mrf.mxu1 }
  0xd4   :  { %1875 = vst.msk [vmem:[%s4127_s3 + $0x260] sm:$0xff] %vm324_vm0, %v1731_v45  ;;  %v1661_v50 = vmax.f32 %v1242_v46, 0.0  ;;  %v75_v45 = vld [vmem:[%s4125_s0 + $0x1e8] sm:$0xff] }
  0xd5   :  { %v1005_v51 = vpop.f32.mrf.mxu2 }
  0xd6   :  { %1805 = vst.msk [vmem:[%s4127_s3 + $0x30] sm:$0xff] %vm324_vm0, %v1661_v50  ;;  %v1006_v52 = vadd.f32 %v2451_v26, %v1005_v51  ;;  %v1460_v53 = vpop.f32.mrf.mxu3  ;;  %1973 = vmatmul.msk.f32.gmra.mxu1 %vm324_vm0, %v67_v49 }
  0xd7   :  { %v795_v54 = vpop.f32.mrf.mxu0 }
  0xd8   :  { %v1455_v57 = vadd.f32 %v1454_v21, %v1006_v52  ;;  %v796_v59 = vadd.f32 %v2451_v26, %v795_v54  ;;  %v206_v21 = vld [vmem:[%s4125_s0 + $0x600] sm:$0xff]  ;;  %v68_v52 = vld [vmem:[%s4125_s0 + $0x1b0] sm:$0xff] }
  0xda   :  { %v1732_v61 = vmax.f32 %v1455_v57, 0.0  ;;  %v1245_v62 = vadd.f32 %v2536_v2, %v796_v59  ;;  %842 = vmatmul.f32.gmra.mxu0 %v60_v55  ;;  %1055 = vmatmul.f32.gmra.mxu2 %v202_v56  ;;  %v215_v56 = vld [vmem:[%s4125_s0 + $0x648] sm:$0xff] }
  0xdb   :  { %2043 = vmatmul.msk.f32.gmra.mxu3 %vm324_vm0, %v207_v60  ;;  %v2640_v63 = vpop.f32.mrf.mxu1 }
  0xdc   :  { %1876 = vst.msk [vmem:[%s4127_s3 + $0x268] sm:$0xff] %vm324_vm0, %v1732_v61  ;;  %v1662_v1 = vmax.f32 %v1245_v62, 0.0  ;;  %v77_v61 = vld [vmem:[%s4125_s0 + $0x1f8] sm:$0xff] }
  0xdd   :  { %v1008_v3 = vpop.f32.mrf.mxu2 }
  0xde   :  { %1806 = vst.msk [vmem:[%s4127_s3 + $0x38] sm:$0xff] %vm324_vm0, %v1662_v1  ;;  %v1009_v2 = vadd.f32 %v2451_v26, %v1008_v3  ;;  %v1463_v4 = vpop.f32.mrf.mxu3  ;;  %1974 = vmatmul.msk.f32.gmra.mxu1 %vm324_vm0, %v69_v0 }
  0xdf   :  { %v798_v5 = vpop.f32.mrf.mxu0 }
  0xe0   :  { %v1458_v8 = vadd.f32 %v1457_v38, %v1009_v2  ;;  %v799_v9 = vadd.f32 %v2451_v26, %v798_v5  ;;  %v208_v38 = vld [vmem:[%s4125_s0 + $0x610] sm:$0xff]  ;;  %v70_v2 = vld [vmem:[%s4125_s0 + $0x1c0] sm:$0xff] }
  0xe2   :  { %v1733_v11 = vmax.f32 %v1458_v8, 0.0  ;;  %v1248_v12 = vadd.f32 %v2559_v16, %v799_v9  ;;  %845 = vmatmul.f32.gmra.mxu0 %v62_v6  ;;  %1058 = vmatmul.f32.gmra.mxu2 %v204_v7  ;;  %v217_v7 = vld [vmem:[%s4125_s0 + $0x658] sm:$0xff] }
  0xe3   :  { %2044 = vmatmul.msk.f32.gmra.mxu3 %vm324_vm0, %v209_v10  ;;  %v2667_v13 = vpop.f32.mrf.mxu1 }
  0xe4   :  { %1877 = vst.msk [vmem:[%s4127_s3 + $0x270] sm:$0xff] %vm324_vm0, %v1733_v11  ;;  %v1663_v15 = vmax.f32 %v1248_v12, 0.0  ;;  %v79_v11 = vld [vmem:[%s4125_s0 + $0x208] sm:$0xff] }
  0xe5   :  { %v1011_v17 = vpop.f32.mrf.mxu2 }
  0xe6   :  { %1807 = vst.msk [vmem:[%s4127_s3 + $0x40] sm:$0xff] %vm324_vm0, %v1663_v15  ;;  %v1012_v16 = vadd.f32 %v2451_v26, %v1011_v17  ;;  %v1466_v18 = vpop.f32.mrf.mxu3  ;;  %1975 = vmatmul.msk.f32.gmra.mxu1 %vm324_vm0, %v71_v14 }
  0xe7   :  { %v801_v19 = vpop.f32.mrf.mxu0 }
  0xe8   :  { %v1461_v22 = vadd.f32 %v1460_v53, %v1012_v16  ;;  %v802_v23 = vadd.f32 %v2451_v26, %v801_v19  ;;  %v210_v53 = vld [vmem:[%s4125_s0 + $0x620] sm:$0xff]  ;;  %v72_v16 = vld [vmem:[%s4125_s0 + $0x1d0] sm:$0xff] }
  0xea   :  { %v1734_v25 = vmax.f32 %v1461_v22, 0.0  ;;  %v1251_v27 = vadd.f32 %v2586_v31, %v802_v23  ;;  %848 = vmatmul.f32.gmra.mxu0 %v64_v20  ;;  %1061 = vmatmul.f32.gmra.mxu2 %v206_v21  ;;  %v219_v21 = vld [vmem:[%s4125_s0 + $0x668] sm:$0xff] }
  0xeb   :  { %2045 = vmatmul.msk.f32.gmra.mxu3 %vm324_vm0, %v211_v24  ;;  %v2694_v28 = vpop.f32.mrf.mxu1 }
  0xec   :  { %1878 = vst.msk [vmem:[%s4127_s3 + $0x278] sm:$0xff] %vm324_vm0, %v1734_v25  ;;  %v1664_v30 = vmax.f32 %v1251_v27, 0.0  ;;  %v81_v25 = vld [vmem:[%s4125_s0 + $0x218] sm:$0xff] }
  0xed   :  { %v1014_v32 = vpop.f32.mrf.mxu2 }
  0xee   :  { %1808 = vst.msk [vmem:[%s4127_s3 + $0x48] sm:$0xff] %vm324_vm0, %v1664_v30  ;;  %v1015_v31 = vadd.f32 %v2451_v26, %v1014_v32  ;;  %v1469_v33 = vpop.f32.mrf.mxu3  ;;  %1976 = vmatmul.msk.f32.gmra.mxu1 %vm324_vm0, %v73_v29 }
  0xef   :  { %v804_v34 = vpop.f32.mrf.mxu0 }
  0xf0   :  { %v1464_v39 = vadd.f32 %v1463_v4, %v1015_v31  ;;  %v805_v40 = vadd.f32 %v2451_v26, %v804_v34  ;;  %v212_v4 = vld [vmem:[%s4125_s0 + $0x630] sm:$0xff]  ;;  %v74_v31 = vld [vmem:[%s4125_s0 + $0x1e0] sm:$0xff] }
  0xf2   :  { %v1735_v42 = vmax.f32 %v1464_v39, 0.0  ;;  %v1254_v43 = vadd.f32 %v2613_v48, %v805_v40  ;;  %851 = vmatmul.f32.gmra.mxu0 %v66_v35  ;;  %1064 = vmatmul.f32.gmra.mxu2 %v208_v38  ;;  %v221_v38 = vld [vmem:[%s4125_s0 + $0x678] sm:$0xff] }
  0xf3   :  { %2046 = vmatmul.msk.f32.gmra.mxu3 %vm324_vm0, %v213_v41  ;;  %v2721_v44 = vpop.f32.mrf.mxu1 }
  0xf4   :  { %1879 = vst.msk [vmem:[%s4127_s3 + $0x280] sm:$0xff] %vm324_vm0, %v1735_v42  ;;  %v1665_v46 = vmax.f32 %v1254_v43, 0.0  ;;  %v83_v42 = vld [vmem:[%s4125_s0 + $0x228] sm:$0xff] }
  0xf5   :  { %v1017_v49 = vpop.f32.mrf.mxu2 }
  0xf6   :  { %1809 = vst.msk [vmem:[%s4127_s3 + $0x50] sm:$0xff] %vm324_vm0, %v1665_v46  ;;  %v1018_v48 = vadd.f32 %v2451_v26, %v1017_v49  ;;  %v1472_v50 = vpop.f32.mrf.mxu3  ;;  %1977 = vmatmul.msk.f32.gmra.mxu1 %vm324_vm0, %v75_v45 }
  0xf7   :  { %v807_v51 = vpop.f32.mrf.mxu0 }
  0xf8   :  { %v1467_v54 = vadd.f32 %v1466_v18, %v1018_v48  ;;  %v808_v55 = vadd.f32 %v2451_v26, %v807_v51  ;;  %v214_v18 = vld [vmem:[%s4125_s0 + $0x640] sm:$0xff]  ;;  %v76_v48 = vld [vmem:[%s4125_s0 + $0x1f0] sm:$0xff] }
  0xfa   :  { %v1736_v57 = vmax.f32 %v1467_v54, 0.0  ;;  %v1257_v59 = vadd.f32 %v2640_v63, %v808_v55  ;;  %854 = vmatmul.f32.gmra.mxu0 %v68_v52  ;;  %1067 = vmatmul.f32.gmra.mxu2 %v210_v53  ;;  %v223_v53 = vld [vmem:[%s4125_s0 + $0x688] sm:$0xff] }
  0xfb   :  { %2047 = vmatmul.msk.f32.gmra.mxu3 %vm324_vm0, %v215_v56  ;;  %v2748_v60 = vpop.f32.mrf.mxu1 }
  0xfc   :  { %1880 = vst.msk [vmem:[%s4127_s3 + $0x288] sm:$0xff] %vm324_vm0, %v1736_v57  ;;  %v1666_v62 = vmax.f32 %v1257_v59, 0.0  ;;  %v85_v57 = vld [vmem:[%s4125_s0 + $0x238] sm:$0xff] }
  0xfd   :  { %v1020_v0 = vpop.f32.mrf.mxu2 }
  0xfe   :  { %1810 = vst.msk [vmem:[%s4127_s3 + $0x58] sm:$0xff] %vm324_vm0, %v1666_v62  ;;  %v1021_v63 = vadd.f32 %v2451_v26, %v1020_v0  ;;  %v1475_v1 = vpop.f32.mrf.mxu3  ;;  %1978 = vmatmul.msk.f32.gmra.mxu1 %vm324_vm0, %v77_v61 }
  0xff   :  { %v810_v3 = vpop.f32.mrf.mxu0 }
 0x100   :  { %v1470_v5 = vadd.f32 %v1469_v33, %v1021_v63  ;;  %v811_v6 = vadd.f32 %v2451_v26, %v810_v3  ;;  %v216_v33 = vld [vmem:[%s4125_s0 + $0x650] sm:$0xff]  ;;  %v78_v63 = vld [vmem:[%s4125_s0 + $0x200] sm:$0xff] }
 0x102   :  { %v1737_v8 = vmax.f32 %v1470_v5, 0.0  ;;  %v1260_v9 = vadd.f32 %v2667_v13, %v811_v6  ;;  %857 = vmatmul.f32.gmra.mxu0 %v70_v2  ;;  %1070 = vmatmul.f32.gmra.mxu2 %v212_v4  ;;  %v225_v4 = vld [vmem:[%s4125_s0 + $0x698] sm:$0xff] }
 0x103   :  { %2048 = vmatmul.msk.f32.gmra.mxu3 %vm324_vm0, %v217_v7  ;;  %v2775_v10 = vpop.f32.mrf.mxu1 }
 0x104   :  { %1881 = vst.msk [vmem:[%s4127_s3 + $0x290] sm:$0xff] %vm324_vm0, %v1737_v8  ;;  %v1667_v12 = vmax.f32 %v1260_v9, 0.0  ;;  %v87_v8 = vld [vmem:[%s4125_s0 + $0x248] sm:$0xff] }
 0x105   :  { %v1023_v14 = vpop.f32.mrf.mxu2 }
 0x106   :  { %1811 = vst.msk [vmem:[%s4127_s3 + $0x60] sm:$0xff] %vm324_vm0, %v1667_v12  ;;  %v1024_v13 = vadd.f32 %v2451_v26, %v1023_v14  ;;  %v1478_v15 = vpop.f32.mrf.mxu3  ;;  %1979 = vmatmul.msk.f32.gmra.mxu1 %vm324_vm0, %v79_v11 }
 0x107   :  { %v813_v17 = vpop.f32.mrf.mxu0 }
 0x108   :  { %v1473_v19 = vadd.f32 %v1472_v50, %v1024_v13  ;;  %v814_v20 = vadd.f32 %v2451_v26, %v813_v17  ;;  %v218_v50 = vld [vmem:[%s4125_s0 + $0x660] sm:$0xff]  ;;  %v80_v13 = vld [vmem:[%s4125_s0 + $0x210] sm:$0xff] }
 0x10a   :  { %v1738_v22 = vmax.f32 %v1473_v19, 0.0  ;;  %v1263_v23 = vadd.f32 %v2694_v28, %v814_v20  ;;  %860 = vmatmul.f32.gmra.mxu0 %v72_v16  ;;  %1073 = vmatmul.f32.gmra.mxu2 %v214_v18  ;;  %v227_v18 = vld [vmem:[%s4125_s0 + $0x6a8] sm:$0xff] }
 0x10b   :  { %2049 = vmatmul.msk.f32.gmra.mxu3 %vm324_vm0, %v219_v21  ;;  %v2802_v24 = vpop.f32.mrf.mxu1 }
 0x10c   :  { %1882 = vst.msk [vmem:[%s4127_s3 + $0x298] sm:$0xff] %vm324_vm0, %v1738_v22  ;;  %v1668_v27 = vmax.f32 %v1263_v23, 0.0  ;;  %v89_v22 = vld [vmem:[%s4125_s0 + $0x258] sm:$0xff] }
 0x10d   :  { %v1026_v29 = vpop.f32.mrf.mxu2 }
 0x10e   :  { %1812 = vst.msk [vmem:[%s4127_s3 + $0x68] sm:$0xff] %vm324_vm0, %v1668_v27  ;;  %v1027_v28 = vadd.f32 %v2451_v26, %v1026_v29  ;;  %v1481_v30 = vpop.f32.mrf.mxu3  ;;  %1980 = vmatmul.msk.f32.gmra.mxu1 %vm324_vm0, %v81_v25 }
 0x10f   :  { %v816_v32 = vpop.f32.mrf.mxu0 }
 0x110   :  { %v1476_v34 = vadd.f32 %v1475_v1, %v1027_v28  ;;  %v817_v35 = vadd.f32 %v2451_v26, %v816_v32  ;;  %v220_v1 = vld [vmem:[%s4125_s0 + $0x670] sm:$0xff]  ;;  %v82_v28 = vld [vmem:[%s4125_s0 + $0x220] sm:$0xff] }
 0x112   :  { %v1739_v39 = vmax.f32 %v1476_v34, 0.0  ;;  %v1266_v40 = vadd.f32 %v2721_v44, %v817_v35  ;;  %863 = vmatmul.f32.gmra.mxu0 %v74_v31  ;;  %1076 = vmatmul.f32.gmra.mxu2 %v216_v33  ;;  %v229_v33 = vld [vmem:[%s4125_s0 + $0x6b8] sm:$0xff] }
 0x113   :  { %2050 = vmatmul.msk.f32.gmra.mxu3 %vm324_vm0, %v221_v38  ;;  %v2829_v41 = vpop.f32.mrf.mxu1 }
 0x114   :  { %1883 = vst.msk [vmem:[%s4127_s3 + $0x2a0] sm:$0xff] %vm324_vm0, %v1739_v39  ;;  %v1669_v43 = vmax.f32 %v1266_v40, 0.0  ;;  %v91_v39 = vld [vmem:[%s4125_s0 + $0x268] sm:$0xff] }
 0x115   :  { %v1029_v45 = vpop.f32.mrf.mxu2 }
 0x116   :  { %1813 = vst.msk [vmem:[%s4127_s3 + $0x70] sm:$0xff] %vm324_vm0, %v1669_v43  ;;  %v1030_v44 = vadd.f32 %v2451_v26, %v1029_v45  ;;  %v1484_v46 = vpop.f32.mrf.mxu3  ;;  %1981 = vmatmul.msk.f32.gmra.mxu1 %vm324_vm0, %v83_v42 }
 0x117   :  { %v819_v49 = vpop.f32.mrf.mxu0 }
 0x118   :  { %v1479_v51 = vadd.f32 %v1478_v15, %v1030_v44  ;;  %v820_v52 = vadd.f32 %v2451_v26, %v819_v49  ;;  %v222_v15 = vld [vmem:[%s4125_s0 + $0x680] sm:$0xff]  ;;  %v84_v44 = vld [vmem:[%s4125_s0 + $0x230] sm:$0xff] }
 0x11a   :  { %v1740_v54 = vmax.f32 %v1479_v51, 0.0  ;;  %v1269_v55 = vadd.f32 %v2748_v60, %v820_v52  ;;  %866 = vmatmul.f32.gmra.mxu0 %v76_v48  ;;  %1079 = vmatmul.f32.gmra.mxu2 %v218_v50  ;;  %v231_v50 = vld [vmem:[%s4125_s0 + $0x6c8] sm:$0xff] }
 0x11b   :  { %2051 = vmatmul.msk.f32.gmra.mxu3 %vm324_vm0, %v223_v53  ;;  %v2856_v56 = vpop.f32.mrf.mxu1 }
 0x11c   :  { %1884 = vst.msk [vmem:[%s4127_s3 + $0x2a8] sm:$0xff] %vm324_vm0, %v1740_v54  ;;  %v1670_v59 = vmax.f32 %v1269_v55, 0.0  ;;  %v93_v54 = vld [vmem:[%s4125_s0 + $0x278] sm:$0xff] }
 0x11d   :  { %v1032_v61 = vpop.f32.mrf.mxu2 }
 0x11e   :  { %1814 = vst.msk [vmem:[%s4127_s3 + $0x78] sm:$0xff] %vm324_vm0, %v1670_v59  ;;  %v1033_v60 = vadd.f32 %v2451_v26, %v1032_v61  ;;  %v1487_v62 = vpop.f32.mrf.mxu3  ;;  %1982 = vmatmul.msk.f32.gmra.mxu1 %vm324_vm0, %v85_v57 }
 0x11f   :  { %v822_v0 = vpop.f32.mrf.mxu0 }
 0x120   :  { %v1482_v3 = vadd.f32 %v1481_v30, %v1033_v60  ;;  %v823_v2 = vadd.f32 %v2451_v26, %v822_v0  ;;  %v224_v30 = vld [vmem:[%s4125_s0 + $0x690] sm:$0xff]  ;;  %v86_v60 = vld [vmem:[%s4125_s0 + $0x240] sm:$0xff] }
 0x122   :  { %v1741_v5 = vmax.f32 %v1482_v3, 0.0  ;;  %v1272_v6 = vadd.f32 %v2775_v10, %v823_v2  ;;  %869 = vmatmul.f32.gmra.mxu0 %v78_v63  ;;  %1082 = vmatmul.f32.gmra.mxu2 %v220_v1  ;;  %v233_v1 = vld [vmem:[%s4125_s0 + $0x6d8] sm:$0xff] }
 0x123   :  { %2052 = vmatmul.msk.f32.gmra.mxu3 %vm324_vm0, %v225_v4  ;;  %v2883_v7 = vpop.f32.mrf.mxu1 }
 0x124   :  { %1885 = vst.msk [vmem:[%s4127_s3 + $0x2b0] sm:$0xff] %vm324_vm0, %v1741_v5  ;;  %v1671_v9 = vmax.f32 %v1272_v6, 0.0  ;;  %v95_v5 = vld [vmem:[%s4125_s0 + $0x288] sm:$0xff] }
 0x125   :  { %v1035_v11 = vpop.f32.mrf.mxu2 }
 0x126   :  { %1815 = vst.msk [vmem:[%s4127_s3 + $0x80] sm:$0xff] %vm324_vm0, %v1671_v9  ;;  %v1036_v10 = vadd.f32 %v2451_v26, %v1035_v11  ;;  %v1490_v12 = vpop.f32.mrf.mxu3  ;;  %1983 = vmatmul.msk.f32.gmra.mxu1 %vm324_vm0, %v87_v8 }
 0x127   :  { %v825_v14 = vpop.f32.mrf.mxu0 }
 0x128   :  { %v1485_v17 = vadd.f32 %v1484_v46, %v1036_v10  ;;  %v826_v16 = vadd.f32 %v2451_v26, %v825_v14  ;;  %v226_v46 = vld [vmem:[%s4125_s0 + $0x6a0] sm:$0xff]  ;;  %v88_v10 = vld [vmem:[%s4125_s0 + $0x250] sm:$0xff] }
 0x12a   :  { %v1742_v19 = vmax.f32 %v1485_v17, 0.0  ;;  %v1275_v20 = vadd.f32 %v2802_v24, %v826_v16  ;;  %872 = vmatmul.f32.gmra.mxu0 %v80_v13  ;;  %1085 = vmatmul.f32.gmra.mxu2 %v222_v15  ;;  %v235_v15 = vld [vmem:[%s4125_s0 + $0x6e8] sm:$0xff] }
 0x12b   :  { %2053 = vmatmul.msk.f32.gmra.mxu3 %vm324_vm0, %v227_v18  ;;  %v2910_v21 = vpop.f32.mrf.mxu1 }
 0x12c   :  { %1886 = vst.msk [vmem:[%s4127_s3 + $0x2b8] sm:$0xff] %vm324_vm0, %v1742_v19  ;;  %v1672_v23 = vmax.f32 %v1275_v20, 0.0  ;;  %v97_v19 = vld [vmem:[%s4125_s0 + $0x298] sm:$0xff] }
 0x12d   :  { %v1038_v25 = vpop.f32.mrf.mxu2 }
 0x12e   :  { %1816 = vst.msk [vmem:[%s4127_s3 + $0x88] sm:$0xff] %vm324_vm0, %v1672_v23  ;;  %v1039_v24 = vadd.f32 %v2451_v26, %v1038_v25  ;;  %v1493_v27 = vpop.f32.mrf.mxu3  ;;  %1984 = vmatmul.msk.f32.gmra.mxu1 %vm324_vm0, %v89_v22 }
 0x12f   :  { %v828_v29 = vpop.f32.mrf.mxu0 }
 0x130   :  { %v1488_v32 = vadd.f32 %v1487_v62, %v1039_v24  ;;  %v829_v31 = vadd.f32 %v2451_v26, %v828_v29  ;;  %v228_v62 = vld [vmem:[%s4125_s0 + $0x6b0] sm:$0xff]  ;;  %v90_v24 = vld [vmem:[%s4125_s0 + $0x260] sm:$0xff] }
 0x132   :  { %v1743_v34 = vmax.f32 %v1488_v32, 0.0  ;;  %v1278_v35 = vadd.f32 %v2829_v41, %v829_v31  ;;  %875 = vmatmul.f32.gmra.mxu0 %v82_v28  ;;  %1088 = vmatmul.f32.gmra.mxu2 %v224_v30  ;;  %v237_v30 = vld [vmem:[%s4125_s0 + $0x6f8] sm:$0xff] }
 0x133   :  { %2054 = vmatmul.msk.f32.gmra.mxu3 %vm324_vm0, %v229_v33  ;;  %v2937_v38 = vpop.f32.mrf.mxu1 }
 0x134   :  { %1887 = vst.msk [vmem:[%s4127_s3 + $0x2c0] sm:$0xff] %vm324_vm0, %v1743_v34  ;;  %v1673_v40 = vmax.f32 %v1278_v35, 0.0  ;;  %v99_v34 = vld [vmem:[%s4125_s0 + $0x2a8] sm:$0xff] }
 0x135   :  { %v1041_v42 = vpop.f32.mrf.mxu2 }
 0x136   :  { %1817 = vst.msk [vmem:[%s4127_s3 + $0x90] sm:$0xff] %vm324_vm0, %v1673_v40  ;;  %v1042_v41 = vadd.f32 %v2451_v26, %v1041_v42  ;;  %v1496_v43 = vpop.f32.mrf.mxu3  ;;  %1985 = vmatmul.msk.f32.gmra.mxu1 %vm324_vm0, %v91_v39 }
 0x137   :  { %v831_v45 = vpop.f32.mrf.mxu0 }
 0x138   :  { %v1491_v49 = vadd.f32 %v1490_v12, %v1042_v41  ;;  %v832_v48 = vadd.f32 %v2451_v26, %v831_v45  ;;  %v230_v12 = vld [vmem:[%s4125_s0 + $0x6c0] sm:$0xff]  ;;  %v92_v41 = vld [vmem:[%s4125_s0 + $0x270] sm:$0xff] }
 0x13a   :  { %v1744_v51 = vmax.f32 %v1491_v49, 0.0  ;;  %v1281_v52 = vadd.f32 %v2856_v56, %v832_v48  ;;  %878 = vmatmul.f32.gmra.mxu0 %v84_v44  ;;  %1091 = vmatmul.f32.gmra.mxu2 %v226_v46  ;;  %v239_v46 = vld [vmem:[%s4125_s0 + $0x708] sm:$0xff] }
 0x13b   :  { %2055 = vmatmul.msk.f32.gmra.mxu3 %vm324_vm0, %v231_v50  ;;  %v2964_v53 = vpop.f32.mrf.mxu1 }
 0x13c   :  { %1888 = vst.msk [vmem:[%s4127_s3 + $0x2c8] sm:$0xff] %vm324_vm0, %v1744_v51  ;;  %v1674_v55 = vmax.f32 %v1281_v52, 0.0  ;;  %v101_v51 = vld [vmem:[%s4125_s0 + $0x2b8] sm:$0xff] }
 0x13d   :  { %v1044_v57 = vpop.f32.mrf.mxu2 }
 0x13e   :  { %1818 = vst.msk [vmem:[%s4127_s3 + $0x98] sm:$0xff] %vm324_vm0, %v1674_v55  ;;  %v1045_v56 = vadd.f32 %v2451_v26, %v1044_v57  ;;  %v1499_v59 = vpop.f32.mrf.mxu3  ;;  %1986 = vmatmul.msk.f32.gmra.mxu1 %vm324_vm0, %v93_v54 }
 0x13f   :  { %v834_v61 = vpop.f32.mrf.mxu0 }
 0x140   :  { %v1494_v0 = vadd.f32 %v1493_v27, %v1045_v56  ;;  %v835_v63 = vadd.f32 %v2451_v26, %v834_v61  ;;  %v232_v27 = vld [vmem:[%s4125_s0 + $0x6d0] sm:$0xff]  ;;  %v94_v56 = vld [vmem:[%s4125_s0 + $0x280] sm:$0xff] }
 0x142   :  { %v1745_v3 = vmax.f32 %v1494_v0, 0.0  ;;  %v1284_v2 = vadd.f32 %v2883_v7, %v835_v63  ;;  %881 = vmatmul.f32.gmra.mxu0 %v86_v60  ;;  %1094 = vmatmul.f32.gmra.mxu2 %v228_v62  ;;  %v241_v62 = vld [vmem:[%s4125_s0 + $0x718] sm:$0xff] }
 0x143   :  { %2056 = vmatmul.msk.f32.gmra.mxu3 %vm324_vm0, %v233_v1  ;;  %v2991_v4 = vpop.f32.mrf.mxu1 }
 0x144   :  { %1889 = vst.msk [vmem:[%s4127_s3 + $0x2d0] sm:$0xff] %vm324_vm0, %v1745_v3  ;;  %v1675_v6 = vmax.f32 %v1284_v2, 0.0  ;;  %v103_v3 = vld [vmem:[%s4125_s0 + $0x2c8] sm:$0xff] }
 0x145   :  { %v1047_v8 = vpop.f32.mrf.mxu2 }
 0x146   :  { %1819 = vst.msk [vmem:[%s4127_s3 + $0xa0] sm:$0xff] %vm324_vm0, %v1675_v6  ;;  %v1048_v7 = vadd.f32 %v2451_v26, %v1047_v8  ;;  %v1502_v9 = vpop.f32.mrf.mxu3  ;;  %1987 = vmatmul.msk.f32.gmra.mxu1 %vm324_vm0, %v95_v5 }
 0x147   :  { %v837_v11 = vpop.f32.mrf.mxu0 }
 0x148   :  { %v1497_v14 = vadd.f32 %v1496_v43, %v1048_v7  ;;  %v838_v13 = vadd.f32 %v2451_v26, %v837_v11  ;;  %v234_v43 = vld [vmem:[%s4125_s0 + $0x6e0] sm:$0xff]  ;;  %v96_v7 = vld [vmem:[%s4125_s0 + $0x290] sm:$0xff] }
 0x14a   :  { %v1746_v17 = vmax.f32 %v1497_v14, 0.0  ;;  %v1287_v16 = vadd.f32 %v2910_v21, %v838_v13  ;;  %884 = vmatmul.f32.gmra.mxu0 %v88_v10  ;;  %1097 = vmatmul.f32.gmra.mxu2 %v230_v12  ;;  %v243_v12 = vld [vmem:[%s4125_s0 + $0x728] sm:$0xff] }
 0x14b   :  { %2057 = vmatmul.msk.f32.gmra.mxu3 %vm324_vm0, %v235_v15  ;;  %v3018_v18 = vpop.f32.mrf.mxu1 }
 0x14c   :  { %1890 = vst.msk [vmem:[%s4127_s3 + $0x2d8] sm:$0xff] %vm324_vm0, %v1746_v17  ;;  %v1676_v20 = vmax.f32 %v1287_v16, 0.0  ;;  %v105_v17 = vld [vmem:[%s4125_s0 + $0x2d8] sm:$0xff] }
 0x14d   :  { %v1050_v22 = vpop.f32.mrf.mxu2 }
 0x14e   :  { %1820 = vst.msk [vmem:[%s4127_s3 + $0xa8] sm:$0xff] %vm324_vm0, %v1676_v20  ;;  %v1051_v21 = vadd.f32 %v2451_v26, %v1050_v22  ;;  %v1505_v23 = vpop.f32.mrf.mxu3  ;;  %1988 = vmatmul.msk.f32.gmra.mxu1 %vm324_vm0, %v97_v19 }
 0x14f   :  { %v840_v25 = vpop.f32.mrf.mxu0 }
 0x150   :  { %v1500_v29 = vadd.f32 %v1499_v59, %v1051_v21  ;;  %v841_v28 = vadd.f32 %v2451_v26, %v840_v25  ;;  %v236_v59 = vld [vmem:[%s4125_s0 + $0x6f0] sm:$0xff]  ;;  %v98_v21 = vld [vmem:[%s4125_s0 + $0x2a0] sm:$0xff] }
 0x152   :  { %v1747_v32 = vmax.f32 %v1500_v29, 0.0  ;;  %v1290_v31 = vadd.f32 %v2937_v38, %v841_v28  ;;  %887 = vmatmul.f32.gmra.mxu0 %v90_v24  ;;  %1100 = vmatmul.f32.gmra.mxu2 %v232_v27  ;;  %v3150_v24 = vld [vmem:[%s4126_s2] ss:$0 sm:$0xff]  ;;  %v245_v27 = vld [vmem:[%s4125_s0 + $0x738] sm:$0xff] }
 0x153   :  { %2058 = vmatmul.msk.f32.gmra.mxu3 %vm324_vm0, %v237_v30  ;;  %v3045_v33 = vpop.f32.mrf.mxu1 }
 0x154   :  { %1891 = vst.msk [vmem:[%s4127_s3 + $0x2e0] sm:$0xff] %vm324_vm0, %v1747_v32  ;;  %v1677_v35 = vmax.f32 %v1290_v31, 0.0  ;;  %v107_v32 = vld [vmem:[%s4125_s0 + $0x2e8] sm:$0xff] }
 0x155   :  { %v1053_v39 = vpop.f32.mrf.mxu2 }
 0x156   :  { %1821 = vst.msk [vmem:[%s4127_s3 + $0xb0] sm:$0xff] %vm324_vm0, %v1677_v35  ;;  %v1054_v38 = vadd.f32 %v2451_v26, %v1053_v39  ;;  %v1508_v40 = vpop.f32.mrf.mxu3  ;;  %1989 = vmatmul.msk.f32.gmra.mxu1 %vm324_vm0, %v99_v34 }
 0x157   :  { %v843_v42 = vpop.f32.mrf.mxu0 }
 0x158   :  { %v1503_v45 = vadd.f32 %v1502_v9, %v1054_v38  ;;  %v844_v44 = vadd.f32 %v2451_v26, %v843_v42  ;;  %v238_v9 = vld [vmem:[%s4125_s0 + $0x700] sm:$0xff]  ;;  %v100_v38 = vld [vmem:[%s4125_s0 + $0x2b0] sm:$0xff] }
 0x15a   :  { %v1748_v49 = vmax.f32 %v1503_v45, 0.0  ;;  %v1293_v48 = vadd.f32 %v2964_v53, %v844_v44  ;;  %890 = vmatmul.f32.gmra.mxu0 %v92_v41  ;;  %1103 = vmatmul.f32.gmra.mxu2 %v234_v43  ;;  %v247_v43 = vld [vmem:[%s4125_s0 + $0x748] sm:$0xff] }
 0x15b   :  { %2059 = vmatmul.msk.f32.gmra.mxu3 %vm324_vm0, %v239_v46  ;;  %v3072_v50 = vpop.f32.mrf.mxu1 }
 0x15c   :  { %1892 = vst.msk [vmem:[%s4127_s3 + $0x2e8] sm:$0xff] %vm324_vm0, %v1748_v49  ;;  %v1678_v52 = vmax.f32 %v1293_v48, 0.0  ;;  %v109_v49 = vld [vmem:[%s4125_s0 + $0x2f8] sm:$0xff] }
 0x15d   :  { %v1056_v54 = vpop.f32.mrf.mxu2 }
 0x15e   :  { %1822 = vst.msk [vmem:[%s4127_s3 + $0xb8] sm:$0xff] %vm324_vm0, %v1678_v52  ;;  %v1057_v53 = vadd.f32 %v2451_v26, %v1056_v54  ;;  %v1511_v55 = vpop.f32.mrf.mxu3  ;;  %1990 = vmatmul.msk.f32.gmra.mxu1 %vm324_vm0, %v101_v51 }
 0x15f   :  { %v846_v57 = vpop.f32.mrf.mxu0 }
 0x160   :  { %v1506_v61 = vadd.f32 %v1505_v23, %v1057_v53  ;;  %v847_v60 = vadd.f32 %v2451_v26, %v846_v57  ;;  %v240_v23 = vld [vmem:[%s4125_s0 + $0x710] sm:$0xff]  ;;  %v102_v53 = vld [vmem:[%s4125_s0 + $0x2c0] sm:$0xff] }
 0x162   :  { %v1749_v0 = vmax.f32 %v1506_v61, 0.0  ;;  %v1296_v63 = vadd.f32 %v2991_v4, %v847_v60  ;;  %893 = vmatmul.f32.gmra.mxu0 %v94_v56  ;;  %1106 = vmatmul.f32.gmra.mxu2 %v236_v59  ;;  %v249_v59 = vld [vmem:[%s4125_s0 + $0x758] sm:$0xff] }
 0x163   :  { %2060 = vmatmul.msk.f32.gmra.mxu3 %vm324_vm0, %v241_v62  ;;  %v3099_v1 = vpop.f32.mrf.mxu1 }
 0x164   :  { %1893 = vst.msk [vmem:[%s4127_s3 + $0x2f0] sm:$0xff] %vm324_vm0, %v1749_v0  ;;  %v1679_v2 = vmax.f32 %v1296_v63, 0.0  ;;  %v111_v0 = vld [vmem:[%s4125_s0 + $0x308] sm:$0xff] }
 0x165   :  { %v1059_v5 = vpop.f32.mrf.mxu2 }
 0x166   :  { %1823 = vst.msk [vmem:[%s4127_s3 + $0xc0] sm:$0xff] %vm324_vm0, %v1679_v2  ;;  %v1060_v4 = vadd.f32 %v2451_v26, %v1059_v5  ;;  %v1514_v6 = vpop.f32.mrf.mxu3  ;;  %1991 = vmatmul.msk.f32.gmra.mxu1 %vm324_vm0, %v103_v3 }
 0x167   :  { %v849_v8 = vpop.f32.mrf.mxu0 }
 0x168   :  { %v1509_v11 = vadd.f32 %v1508_v40, %v1060_v4  ;;  %v850_v10 = vadd.f32 %v2451_v26, %v849_v8  ;;  %v242_v40 = vld [vmem:[%s4125_s0 + $0x720] sm:$0xff]  ;;  %v104_v4 = vld [vmem:[%s4125_s0 + $0x2d0] sm:$0xff] }
 0x16a   :  { %v1750_v14 = vmax.f32 %v1509_v11, 0.0  ;;  %v1299_v13 = vadd.f32 %v3018_v18, %v850_v10  ;;  %896 = vmatmul.f32.gmra.mxu0 %v96_v7  ;;  %1109 = vmatmul.f32.gmra.mxu2 %v238_v9  ;;  %v251_v9 = vld [vmem:[%s4125_s0 + $0x768] sm:$0xff] }
 0x16b   :  { %2061 = vmatmul.msk.f32.gmra.mxu3 %vm324_vm0, %v243_v12  ;;  %v3126_v15 = vpop.f32.mrf.mxu1 }
 0x16c   :  { %1894 = vst.msk [vmem:[%s4127_s3 + $0x2f8] sm:$0xff] %vm324_vm0, %v1750_v14  ;;  %v1680_v16 = vmax.f32 %v1299_v13, 0.0  ;;  %v113_v14 = vld [vmem:[%s4125_s0 + $0x318] sm:$0xff] }
 0x16d   :  { %v1062_v19 = vpop.f32.mrf.mxu2 }
 0x16e   :  { %1824 = vst.msk [vmem:[%s4127_s3 + $0xc8] sm:$0xff] %vm324_vm0, %v1680_v16  ;;  %v1063_v18 = vadd.f32 %v2451_v26, %v1062_v19  ;;  %v1517_v20 = vpop.f32.mrf.mxu3  ;;  %1992 = vmatmul.msk.f32.gmra.mxu1 %vm324_vm0, %v105_v17 }
 0x16f   :  { %v852_v22 = vpop.f32.mrf.mxu0 }
 0x170   :  { %v1512_v25 = vadd.f32 %v1511_v55, %v1063_v18  ;;  %v853_v26 = vadd.f32 %v3150_v24, %v852_v22  ;;  %v244_v55 = vld [vmem:[%s4125_s0 + $0x730] sm:$0xff]  ;;  %v106_v18 = vld [vmem:[%s4125_s0 + $0x2e0] sm:$0xff] }
 0x172   :  { %v1751_v29 = vmax.f32 %v1512_v25, 0.0  ;;  %v1302_v28 = vadd.f32 %v3045_v33, %v853_v26  ;;  %899 = vmatmul.f32.gmra.mxu0 %v98_v21  ;;  %1112 = vmatmul.f32.gmra.mxu2 %v240_v23  ;;  %v253_v23 = vld [vmem:[%s4125_s0 + $0x778] sm:$0xff] }
 0x173   :  { %2062 = vmatmul.msk.f32.gmra.mxu3 %vm324_vm0, %v245_v27  ;;  %v3158_v30 = vpop.f32.mrf.mxu1 }
 0x174   :  { %1895 = vst.msk [vmem:[%s4127_s3 + $0x300] sm:$0xff] %vm324_vm0, %v1751_v29  ;;  %v1681_v31 = vmax.f32 %v1302_v28, 0.0  ;;  %v115_v29 = vld [vmem:[%s4125_s0 + $0x328] sm:$0xff] }
 0x175   :  { %v1065_v34 = vpop.f32.mrf.mxu2 }
 0x176   :  { %1825 = vst.msk [vmem:[%s4127_s3 + $0xd0] sm:$0xff] %vm324_vm0, %v1681_v31  ;;  %v1066_v33 = vadd.f32 %v3150_v24, %v1065_v34  ;;  %v1520_v35 = vpop.f32.mrf.mxu3  ;;  %1993 = vmatmul.msk.f32.gmra.mxu1 %vm324_vm0, %v107_v32 }
 0x177   :  { %v855_v39 = vpop.f32.mrf.mxu0 }
 0x178   :  { %v1515_v42 = vadd.f32 %v1514_v6, %v1066_v33  ;;  %v856_v41 = vadd.f32 %v3150_v24, %v855_v39  ;;  %v246_v6 = vld [vmem:[%s4125_s0 + $0x740] sm:$0xff]  ;;  %v108_v33 = vld [vmem:[%s4125_s0 + $0x2f0] sm:$0xff] }
 0x17a   :  { %v1752_v45 = vmax.f32 %v1515_v42, 0.0  ;;  %v1305_v44 = vadd.f32 %v3072_v50, %v856_v41  ;;  %902 = vmatmul.f32.gmra.mxu0 %v100_v38  ;;  %1115 = vmatmul.f32.gmra.mxu2 %v242_v40  ;;  %v255_v40 = vld [vmem:[%s4125_s0 + $0x788] sm:$0xff] }
 0x17b   :  { %2063 = vmatmul.msk.f32.gmra.mxu3 %vm324_vm0, %v247_v43  ;;  %v3185_v46 = vpop.f32.mrf.mxu1 }
 0x17c   :  { %1896 = vst.msk [vmem:[%s4127_s3 + $0x308] sm:$0xff] %vm324_vm0, %v1752_v45  ;;  %v1682_v48 = vmax.f32 %v1305_v44, 0.0  ;;  %v117_v45 = vld [vmem:[%s4125_s0 + $0x338] sm:$0xff] }
 0x17d   :  { %v1068_v51 = vpop.f32.mrf.mxu2 }
 0x17e   :  { %1826 = vst.msk [vmem:[%s4127_s3 + $0xd8] sm:$0xff] %vm324_vm0, %v1682_v48  ;;  %v1069_v50 = vadd.f32 %v3150_v24, %v1068_v51  ;;  %v1523_v52 = vpop.f32.mrf.mxu3  ;;  %1994 = vmatmul.msk.f32.gmra.mxu1 %vm324_vm0, %v109_v49 }
 0x17f   :  { %v858_v54 = vpop.f32.mrf.mxu0 }
 0x180   :  { %v1518_v57 = vadd.f32 %v1517_v20, %v1069_v50  ;;  %v859_v56 = vadd.f32 %v3150_v24, %v858_v54  ;;  %v248_v20 = vld [vmem:[%s4125_s0 + $0x750] sm:$0xff]  ;;  %v110_v50 = vld [vmem:[%s4125_s0 + $0x300] sm:$0xff] }
 0x182   :  { %v1753_v61 = vmax.f32 %v1518_v57, 0.0  ;;  %v1308_v60 = vadd.f32 %v3099_v1, %v859_v56  ;;  %905 = vmatmul.f32.gmra.mxu0 %v102_v53  ;;  %1118 = vmatmul.f32.gmra.mxu2 %v244_v55  ;;  %v257_v55 = vld [vmem:[%s4125_s0 + $0x798] sm:$0xff] }
 0x183   :  { %2064 = vmatmul.msk.f32.gmra.mxu3 %vm324_vm0, %v249_v59  ;;  %v3212_v62 = vpop.f32.mrf.mxu1 }
 0x184   :  { %1897 = vst.msk [vmem:[%s4127_s3 + $0x310] sm:$0xff] %vm324_vm0, %v1753_v61  ;;  %v1683_v63 = vmax.f32 %v1308_v60, 0.0  ;;  %v119_v61 = vld [vmem:[%s4125_s0 + $0x348] sm:$0xff] }
 0x185   :  { %v1071_v3 = vpop.f32.mrf.mxu2 }
 0x186   :  { %1827 = vst.msk [vmem:[%s4127_s3 + $0xe0] sm:$0xff] %vm324_vm0, %v1683_v63  ;;  %v1072_v1 = vadd.f32 %v3150_v24, %v1071_v3  ;;  %v1526_v2 = vpop.f32.mrf.mxu3  ;;  %1995 = vmatmul.msk.f32.gmra.mxu1 %vm324_vm0, %v111_v0 }
 0x187   :  { %v861_v5 = vpop.f32.mrf.mxu0 }
 0x188   :  { %v1521_v8 = vadd.f32 %v1520_v35, %v1072_v1  ;;  %v862_v7 = vadd.f32 %v3150_v24, %v861_v5  ;;  %v250_v35 = vld [vmem:[%s4125_s0 + $0x760] sm:$0xff]  ;;  %v112_v1 = vld [vmem:[%s4125_s0 + $0x310] sm:$0xff] }
 0x18a   :  { %v1754_v11 = vmax.f32 %v1521_v8, 0.0  ;;  %v1311_v10 = vadd.f32 %v3126_v15, %v862_v7  ;;  %908 = vmatmul.f32.gmra.mxu0 %v104_v4  ;;  %1121 = vmatmul.f32.gmra.mxu2 %v246_v6  ;;  %v259_v6 = vld [vmem:[%s4125_s0 + $0x7a8] sm:$0xff] }
 0x18b   :  { %2065 = vmatmul.msk.f32.gmra.mxu3 %vm324_vm0, %v251_v9  ;;  %v3239_v12 = vpop.f32.mrf.mxu1 }
 0x18c   :  { %1898 = vst.msk [vmem:[%s4127_s3 + $0x318] sm:$0xff] %vm324_vm0, %v1754_v11  ;;  %v1684_v13 = vmax.f32 %v1311_v10, 0.0  ;;  %v121_v11 = vld [vmem:[%s4125_s0 + $0x358] sm:$0xff] }
 0x18d   :  { %v1074_v17 = vpop.f32.mrf.mxu2 }
 0x18e   :  { %1828 = vst.msk [vmem:[%s4127_s3 + $0xe8] sm:$0xff] %vm324_vm0, %v1684_v13  ;;  %v1075_v15 = vadd.f32 %v3150_v24, %v1074_v17  ;;  %v1529_v16 = vpop.f32.mrf.mxu3  ;;  %1996 = vmatmul.msk.f32.gmra.mxu1 %vm324_vm0, %v113_v14 }
 0x18f   :  { %v864_v19 = vpop.f32.mrf.mxu0 }
 0x190   :  { %v1524_v22 = vadd.f32 %v1523_v52, %v1075_v15  ;;  %v865_v21 = vadd.f32 %v3150_v24, %v864_v19  ;;  %v252_v52 = vld [vmem:[%s4125_s0 + $0x770] sm:$0xff]  ;;  %v114_v15 = vld [vmem:[%s4125_s0 + $0x320] sm:$0xff] }
 0x192   :  { %v1755_v25 = vmax.f32 %v1524_v22, 0.0  ;;  %v1314_v26 = vadd.f32 %v3158_v30, %v865_v21  ;;  %911 = vmatmul.f32.gmra.mxu0 %v106_v18  ;;  %1124 = vmatmul.f32.gmra.mxu2 %v248_v20  ;;  %v261_v20 = vld [vmem:[%s4125_s0 + $0x7b8] sm:$0xff] }
 0x193   :  { %2066 = vmatmul.msk.f32.gmra.mxu3 %vm324_vm0, %v253_v23  ;;  %v3266_v27 = vpop.f32.mrf.mxu1 }
 0x194   :  { %1899 = vst.msk [vmem:[%s4127_s3 + $0x320] sm:$0xff] %vm324_vm0, %v1755_v25  ;;  %v1685_v28 = vmax.f32 %v1314_v26, 0.0  ;;  %v123_v25 = vld [vmem:[%s4125_s0 + $0x368] sm:$0xff] }
 0x195   :  { %v1077_v32 = vpop.f32.mrf.mxu2 }
 0x196   :  { %1829 = vst.msk [vmem:[%s4127_s3 + $0xf0] sm:$0xff] %vm324_vm0, %v1685_v28  ;;  %v1078_v30 = vadd.f32 %v3150_v24, %v1077_v32  ;;  %v1532_v31 = vpop.f32.mrf.mxu3  ;;  %1997 = vmatmul.msk.f32.gmra.mxu1 %vm324_vm0, %v115_v29 }
 0x197   :  { %v867_v34 = vpop.f32.mrf.mxu0 }
 0x198   :  { %v1527_v39 = vadd.f32 %v1526_v2, %v1078_v30  ;;  %v868_v38 = vadd.f32 %v3150_v24, %v867_v34  ;;  %v254_v2 = vld [vmem:[%s4125_s0 + $0x780] sm:$0xff]  ;;  %v116_v30 = vld [vmem:[%s4125_s0 + $0x330] sm:$0xff] }
 0x19a   :  { %v1756_v42 = vmax.f32 %v1527_v39, 0.0  ;;  %v1317_v41 = vadd.f32 %v3185_v46, %v868_v38  ;;  %914 = vmatmul.f32.gmra.mxu0 %v108_v33  ;;  %1127 = vmatmul.f32.gmra.mxu2 %v250_v35  ;;  %v263_v35 = vld [vmem:[%s4125_s0 + $0x7c8] sm:$0xff] }
 0x19b   :  { %2067 = vmatmul.msk.f32.gmra.mxu3 %vm324_vm0, %v255_v40  ;;  %v3293_v43 = vpop.f32.mrf.mxu1 }
 0x19c   :  { %1900 = vst.msk [vmem:[%s4127_s3 + $0x328] sm:$0xff] %vm324_vm0, %v1756_v42  ;;  %v1686_v44 = vmax.f32 %v1317_v41, 0.0  ;;  %v125_v42 = vld [vmem:[%s4125_s0 + $0x378] sm:$0xff] }
 0x19d   :  { %v1080_v49 = vpop.f32.mrf.mxu2 }
 0x19e   :  { %1830 = vst.msk [vmem:[%s4127_s3 + $0xf8] sm:$0xff] %vm324_vm0, %v1686_v44  ;;  %v1081_v46 = vadd.f32 %v3150_v24, %v1080_v49  ;;  %v1535_v48 = vpop.f32.mrf.mxu3  ;;  %1998 = vmatmul.msk.f32.gmra.mxu1 %vm324_vm0, %v117_v45 }
 0x19f   :  { %v870_v51 = vpop.f32.mrf.mxu0 }
 0x1a0   :  { %v1530_v54 = vadd.f32 %v1529_v16, %v1081_v46  ;;  %v871_v53 = vadd.f32 %v3150_v24, %v870_v51  ;;  %v256_v16 = vld [vmem:[%s4125_s0 + $0x790] sm:$0xff]  ;;  %v118_v46 = vld [vmem:[%s4125_s0 + $0x340] sm:$0xff] }
 0x1a2   :  { %v1757_v57 = vmax.f32 %v1530_v54, 0.0  ;;  %v1320_v56 = vadd.f32 %v3212_v62, %v871_v53  ;;  %917 = vmatmul.f32.gmra.mxu0 %v110_v50  ;;  %1130 = vmatmul.f32.gmra.mxu2 %v252_v52  ;;  %v265_v52 = vld [vmem:[%s4125_s0 + $0x7d8] sm:$0xff] }
 0x1a3   :  { %2068 = vmatmul.msk.f32.gmra.mxu3 %vm324_vm0, %v257_v55  ;;  %v3320_v59 = vpop.f32.mrf.mxu1 }
 0x1a4   :  { %1901 = vst.msk [vmem:[%s4127_s3 + $0x330] sm:$0xff] %vm324_vm0, %v1757_v57  ;;  %v1687_v60 = vmax.f32 %v1320_v56, 0.0  ;;  %v127_v57 = vld [vmem:[%s4125_s0 + $0x388] sm:$0xff] }
 0x1a5   :  { %v1083_v0 = vpop.f32.mrf.mxu2 }
 0x1a6   :  { %1831 = vst.msk [vmem:[%s4127_s3 + $0x100] sm:$0xff] %vm324_vm0, %v1687_v60  ;;  %v1084_v62 = vadd.f32 %v3150_v24, %v1083_v0  ;;  %v1538_v63 = vpop.f32.mrf.mxu3  ;;  %1999 = vmatmul.msk.f32.gmra.mxu1 %vm324_vm0, %v119_v61 }
 0x1a7   :  { %v873_v3 = vpop.f32.mrf.mxu0 }
 0x1a8   :  { %v1533_v5 = vadd.f32 %v1532_v31, %v1084_v62  ;;  %v874_v4 = vadd.f32 %v3150_v24, %v873_v3  ;;  %v258_v31 = vld [vmem:[%s4125_s0 + $0x7a0] sm:$0xff]  ;;  %v120_v62 = vld [vmem:[%s4125_s0 + $0x350] sm:$0xff] }
 0x1aa   :  { %v1758_v8 = vmax.f32 %v1533_v5, 0.0  ;;  %v1323_v7 = vadd.f32 %v3239_v12, %v874_v4  ;;  %920 = vmatmul.f32.gmra.mxu0 %v112_v1  ;;  %1133 = vmatmul.f32.gmra.mxu2 %v254_v2  ;;  %v267_v2 = vld [vmem:[%s4125_s0 + $0x7e8] sm:$0xff] }
 0x1ab   :  { %2069 = vmatmul.msk.f32.gmra.mxu3 %vm324_vm0, %v259_v6  ;;  %v3347_v9 = vpop.f32.mrf.mxu1 }
 0x1ac   :  { %1902 = vst.msk [vmem:[%s4127_s3 + $0x338] sm:$0xff] %vm324_vm0, %v1758_v8  ;;  %v1688_v10 = vmax.f32 %v1323_v7, 0.0  ;;  %v129_v8 = vld [vmem:[%s4125_s0 + $0x398] sm:$0xff] }
 0x1ad   :  { %v1086_v14 = vpop.f32.mrf.mxu2 }
 0x1ae   :  { %1832 = vst.msk [vmem:[%s4127_s3 + $0x108] sm:$0xff] %vm324_vm0, %v1688_v10  ;;  %v1087_v12 = vadd.f32 %v3150_v24, %v1086_v14  ;;  %v1541_v13 = vpop.f32.mrf.mxu3  ;;  %2000 = vmatmul.msk.f32.gmra.mxu1 %vm324_vm0, %v121_v11 }
 0x1af   :  { %v876_v17 = vpop.f32.mrf.mxu0 }
 0x1b0   :  { %v1536_v19 = vadd.f32 %v1535_v48, %v1087_v12  ;;  %v877_v18 = vadd.f32 %v3150_v24, %v876_v17  ;;  %v260_v48 = vld [vmem:[%s4125_s0 + $0x7b0] sm:$0xff]  ;;  %v122_v12 = vld [vmem:[%s4125_s0 + $0x360] sm:$0xff] }
 0x1b2   :  { %v1759_v22 = vmax.f32 %v1536_v19, 0.0  ;;  %v1326_v21 = vadd.f32 %v3266_v27, %v877_v18  ;;  %923 = vmatmul.f32.gmra.mxu0 %v114_v15  ;;  %1136 = vmatmul.f32.gmra.mxu2 %v256_v16  ;;  %v269_v16 = vld [vmem:[%s4125_s0 + $0x7f8] sm:$0xff] }
 0x1b3   :  { %2070 = vmatmul.msk.f32.gmra.mxu3 %vm324_vm0, %v261_v20  ;;  %v3374_v23 = vpop.f32.mrf.mxu1 }
 0x1b4   :  { %1903 = vst.msk [vmem:[%s4127_s3 + $0x340] sm:$0xff] %vm324_vm0, %v1759_v22  ;;  %v1689_v26 = vmax.f32 %v1326_v21, 0.0  ;;  %v131_v22 = vld [vmem:[%s4125_s0 + $0x3a8] sm:$0xff] }
 0x1b5   :  { %v1089_v29 = vpop.f32.mrf.mxu2 }
 0x1b6   :  { %1833 = vst.msk [vmem:[%s4127_s3 + $0x110] sm:$0xff] %vm324_vm0, %v1689_v26  ;;  %v1090_v27 = vadd.f32 %v3150_v24, %v1089_v29  ;;  %v1544_v28 = vpop.f32.mrf.mxu3  ;;  %2001 = vmatmul.msk.f32.gmra.mxu1 %vm324_vm0, %v123_v25 }
 0x1b7   :  { %v879_v32 = vpop.f32.mrf.mxu0 }
 0x1b8   :  { %v1539_v34 = vadd.f32 %v1538_v63, %v1090_v27  ;;  %v880_v33 = vadd.f32 %v3150_v24, %v879_v32  ;;  %v262_v63 = vld [vmem:[%s4125_s0 + $0x7c0] sm:$0xff]  ;;  %v124_v27 = vld [vmem:[%s4125_s0 + $0x370] sm:$0xff] }
 0x1ba   :  { %v1760_v39 = vmax.f32 %v1539_v34, 0.0  ;;  %v1329_v38 = vadd.f32 %v3293_v43, %v880_v33  ;;  %926 = vmatmul.f32.gmra.mxu0 %v116_v30  ;;  %1139 = vmatmul.f32.gmra.mxu2 %v258_v31  ;;  %v271_v31 = vld [vmem:[%s4125_s0 + $0x808] sm:$0xff] }
 0x1bb   :  { %2071 = vmatmul.msk.f32.gmra.mxu3 %vm324_vm0, %v263_v35  ;;  %v3401_v40 = vpop.f32.mrf.mxu1 }
 0x1bc   :  { %1904 = vst.msk [vmem:[%s4127_s3 + $0x348] sm:$0xff] %vm324_vm0, %v1760_v39  ;;  %v1690_v41 = vmax.f32 %v1329_v38, 0.0  ;;  %v133_v39 = vld [vmem:[%s4125_s0 + $0x3b8] sm:$0xff] }
 0x1bd   :  { %v1092_v45 = vpop.f32.mrf.mxu2 }
 0x1be   :  { %1834 = vst.msk [vmem:[%s4127_s3 + $0x118] sm:$0xff] %vm324_vm0, %v1690_v41  ;;  %v1093_v43 = vadd.f32 %v3150_v24, %v1092_v45  ;;  %v1547_v44 = vpop.f32.mrf.mxu3  ;;  %2002 = vmatmul.msk.f32.gmra.mxu1 %vm324_vm0, %v125_v42 }
 0x1bf   :  { %v882_v49 = vpop.f32.mrf.mxu0 }
 0x1c0   :  { %v1542_v51 = vadd.f32 %v1541_v13, %v1093_v43  ;;  %v883_v50 = vadd.f32 %v3150_v24, %v882_v49  ;;  %v264_v13 = vld [vmem:[%s4125_s0 + $0x7d0] sm:$0xff]  ;;  %v126_v43 = vld [vmem:[%s4125_s0 + $0x380] sm:$0xff] }
 0x1c2   :  { %v1761_v54 = vmax.f32 %v1542_v51, 0.0  ;;  %v1332_v53 = vadd.f32 %v3320_v59, %v883_v50  ;;  %929 = vmatmul.f32.gmra.mxu0 %v118_v46  ;;  %1142 = vmatmul.f32.gmra.mxu2 %v260_v48  ;;  %v273_v48 = vld [vmem:[%s4125_s0 + $0x818] sm:$0xff] }
 0x1c3   :  { %2072 = vmatmul.msk.f32.gmra.mxu3 %vm324_vm0, %v265_v52  ;;  %v3428_v55 = vpop.f32.mrf.mxu1 }
 0x1c4   :  { %1905 = vst.msk [vmem:[%s4127_s3 + $0x350] sm:$0xff] %vm324_vm0, %v1761_v54  ;;  %v1691_v56 = vmax.f32 %v1332_v53, 0.0  ;;  %v135_v54 = vld [vmem:[%s4125_s0 + $0x3c8] sm:$0xff] }
 0x1c5   :  { %v1095_v61 = vpop.f32.mrf.mxu2 }
 0x1c6   :  { %1835 = vst.msk [vmem:[%s4127_s3 + $0x120] sm:$0xff] %vm324_vm0, %v1691_v56  ;;  %v1096_v59 = vadd.f32 %v3150_v24, %v1095_v61  ;;  %v1550_v60 = vpop.f32.mrf.mxu3  ;;  %2003 = vmatmul.msk.f32.gmra.mxu1 %vm324_vm0, %v127_v57 }
 0x1c7   :  { %v885_v0 = vpop.f32.mrf.mxu0 }
 0x1c8   :  { %v1545_v3 = vadd.f32 %v1544_v28, %v1096_v59  ;;  %v886_v1 = vadd.f32 %v3150_v24, %v885_v0  ;;  %v266_v28 = vld [vmem:[%s4125_s0 + $0x7e0] sm:$0xff]  ;;  %v128_v59 = vld [vmem:[%s4125_s0 + $0x390] sm:$0xff] }
 0x1ca   :  { %v1762_v5 = vmax.f32 %v1545_v3, 0.0  ;;  %v1335_v4 = vadd.f32 %v3347_v9, %v886_v1  ;;  %932 = vmatmul.f32.gmra.mxu0 %v120_v62  ;;  %1145 = vmatmul.f32.gmra.mxu2 %v262_v63  ;;  %v275_v63 = vld [vmem:[%s4125_s0 + $0x828] sm:$0xff] }
 0x1cb   :  { %2073 = vmatmul.msk.f32.gmra.mxu3 %vm324_vm0, %v267_v2  ;;  %v3455_v6 = vpop.f32.mrf.mxu1 }
 0x1cc   :  { %1906 = vst.msk [vmem:[%s4127_s3 + $0x358] sm:$0xff] %vm324_vm0, %v1762_v5  ;;  %v1692_v7 = vmax.f32 %v1335_v4, 0.0  ;;  %v137_v5 = vld [vmem:[%s4125_s0 + $0x3d8] sm:$0xff] }
 0x1cd   :  { %v1098_v11 = vpop.f32.mrf.mxu2 }
 0x1ce   :  { %1836 = vst.msk [vmem:[%s4127_s3 + $0x128] sm:$0xff] %vm324_vm0, %v1692_v7  ;;  %v1099_v9 = vadd.f32 %v3150_v24, %v1098_v11  ;;  %v1553_v10 = vpop.f32.mrf.mxu3  ;;  %2004 = vmatmul.msk.f32.gmra.mxu1 %vm324_vm0, %v129_v8 }
 0x1cf   :  { %v888_v14 = vpop.f32.mrf.mxu0 }
 0x1d0   :  { %v1548_v17 = vadd.f32 %v1547_v44, %v1099_v9  ;;  %v889_v15 = vadd.f32 %v3150_v24, %v888_v14  ;;  %v268_v44 = vld [vmem:[%s4125_s0 + $0x7f0] sm:$0xff]  ;;  %v130_v9 = vld [vmem:[%s4125_s0 + $0x3a0] sm:$0xff] }
 0x1d2   :  { %v1763_v19 = vmax.f32 %v1548_v17, 0.0  ;;  %v1338_v18 = vadd.f32 %v3374_v23, %v889_v15  ;;  %935 = vmatmul.f32.gmra.mxu0 %v122_v12  ;;  %1148 = vmatmul.f32.gmra.mxu2 %v264_v13  ;;  %v277_v13 = vld [vmem:[%s4125_s0 + $0x838] sm:$0xff] }
 0x1d3   :  { %2074 = vmatmul.msk.f32.gmra.mxu3 %vm324_vm0, %v269_v16  ;;  %v3482_v20 = vpop.f32.mrf.mxu1 }
 0x1d4   :  { %1907 = vst.msk [vmem:[%s4127_s3 + $0x360] sm:$0xff] %vm324_vm0, %v1763_v19  ;;  %v1693_v21 = vmax.f32 %v1338_v18, 0.0  ;;  %v139_v19 = vld [vmem:[%s4125_s0 + $0x3e8] sm:$0xff] }
 0x1d5   :  { %v1101_v25 = vpop.f32.mrf.mxu2 }
 0x1d6   :  { %1837 = vst.msk [vmem:[%s4127_s3 + $0x130] sm:$0xff] %vm324_vm0, %v1693_v21  ;;  %v1102_v23 = vadd.f32 %v3150_v24, %v1101_v25  ;;  %v1556_v26 = vpop.f32.mrf.mxu3  ;;  %2005 = vmatmul.msk.f32.gmra.mxu1 %vm324_vm0, %v131_v22 }
 0x1d7   :  { %v891_v29 = vpop.f32.mrf.mxu0 }
 0x1d8   :  { %v1551_v32 = vadd.f32 %v1550_v60, %v1102_v23  ;;  %v892_v30 = vadd.f32 %v3150_v24, %v891_v29  ;;  %v270_v60 = vld [vmem:[%s4125_s0 + $0x800] sm:$0xff]  ;;  %v132_v23 = vld [vmem:[%s4125_s0 + $0x3b0] sm:$0xff] }
 0x1da   :  { %v1764_v34 = vmax.f32 %v1551_v32, 0.0  ;;  %v1341_v33 = vadd.f32 %v3401_v40, %v892_v30  ;;  %938 = vmatmul.f32.gmra.mxu0 %v124_v27  ;;  %1151 = vmatmul.f32.gmra.mxu2 %v266_v28  ;;  %v279_v28 = vld [vmem:[%s4125_s0 + $0x848] sm:$0xff] }
 0x1db   :  { %2075 = vmatmul.msk.f32.gmra.mxu3 %vm324_vm0, %v271_v31  ;;  %v3509_v35 = vpop.f32.mrf.mxu1 }
 0x1dc   :  { %1908 = vst.msk [vmem:[%s4127_s3 + $0x368] sm:$0xff] %vm324_vm0, %v1764_v34  ;;  %v1694_v38 = vmax.f32 %v1341_v33, 0.0  ;;  %v141_v34 = vld [vmem:[%s4125_s0 + $0x3f8] sm:$0xff] }
 0x1dd   :  { %v1104_v42 = vpop.f32.mrf.mxu2 }
 0x1de   :  { %1838 = vst.msk [vmem:[%s4127_s3 + $0x138] sm:$0xff] %vm324_vm0, %v1694_v38  ;;  %v1105_v40 = vadd.f32 %v3150_v24, %v1104_v42  ;;  %v1559_v41 = vpop.f32.mrf.mxu3  ;;  %2006 = vmatmul.msk.f32.gmra.mxu1 %vm324_vm0, %v133_v39 }
 0x1df   :  { %v894_v45 = vpop.f32.mrf.mxu0 }
 0x1e0   :  { %v1554_v49 = vadd.f32 %v1553_v10, %v1105_v40  ;;  %v895_v46 = vadd.f32 %v3150_v24, %v894_v45  ;;  %v272_v10 = vld [vmem:[%s4125_s0 + $0x810] sm:$0xff]  ;;  %v134_v40 = vld [vmem:[%s4125_s0 + $0x3c0] sm:$0xff] }
 0x1e2   :  { %v1765_v51 = vmax.f32 %v1554_v49, 0.0  ;;  %v1344_v50 = vadd.f32 %v3428_v55, %v895_v46  ;;  %941 = vmatmul.f32.gmra.mxu0 %v126_v43  ;;  %1154 = vmatmul.f32.gmra.mxu2 %v268_v44  ;;  %v281_v44 = vld [vmem:[%s4125_s0 + $0x858] sm:$0xff] }
 0x1e3   :  { %2076 = vmatmul.msk.f32.gmra.mxu3 %vm324_vm0, %v273_v48  ;;  %v3536_v52 = vpop.f32.mrf.mxu1 }
 0x1e4   :  { %1909 = vst.msk [vmem:[%s4127_s3 + $0x370] sm:$0xff] %vm324_vm0, %v1765_v51  ;;  %v1695_v53 = vmax.f32 %v1344_v50, 0.0  ;;  %v143_v51 = vld [vmem:[%s4125_s0 + $0x408] sm:$0xff] }
 0x1e5   :  { %v1107_v57 = vpop.f32.mrf.mxu2 }
 0x1e6   :  { %1839 = vst.msk [vmem:[%s4127_s3 + $0x140] sm:$0xff] %vm324_vm0, %v1695_v53  ;;  %v1108_v55 = vadd.f32 %v3150_v24, %v1107_v57  ;;  %v1562_v56 = vpop.f32.mrf.mxu3  ;;  %2007 = vmatmul.msk.f32.gmra.mxu1 %vm324_vm0, %v135_v54 }
 0x1e7   :  { %v897_v61 = vpop.f32.mrf.mxu0 }
 0x1e8   :  { %v1557_v0 = vadd.f32 %v1556_v26, %v1108_v55  ;;  %v898_v62 = vadd.f32 %v3150_v24, %v897_v61  ;;  %v274_v26 = vld [vmem:[%s4125_s0 + $0x820] sm:$0xff]  ;;  %v136_v55 = vld [vmem:[%s4125_s0 + $0x3d0] sm:$0xff] }
 0x1ea   :  { %v1766_v3 = vmax.f32 %v1557_v0, 0.0  ;;  %v1347_v1 = vadd.f32 %v3455_v6, %v898_v62  ;;  %944 = vmatmul.f32.gmra.mxu0 %v128_v59  ;;  %1157 = vmatmul.f32.gmra.mxu2 %v270_v60  ;;  %v283_v60 = vld [vmem:[%s4125_s0 + $0x868] sm:$0xff] }
 0x1eb   :  { %2077 = vmatmul.msk.f32.gmra.mxu3 %vm324_vm0, %v275_v63  ;;  %v3563_v2 = vpop.f32.mrf.mxu1 }
 0x1ec   :  { %1910 = vst.msk [vmem:[%s4127_s3 + $0x378] sm:$0xff] %vm324_vm0, %v1766_v3  ;;  %v1696_v4 = vmax.f32 %v1347_v1, 0.0  ;;  %v145_v3 = vld [vmem:[%s4125_s0 + $0x418] sm:$0xff] }
 0x1ed   :  { %v1110_v8 = vpop.f32.mrf.mxu2 }
 0x1ee   :  { %1840 = vst.msk [vmem:[%s4127_s3 + $0x148] sm:$0xff] %vm324_vm0, %v1696_v4  ;;  %v1111_v6 = vadd.f32 %v3150_v24, %v1110_v8  ;;  %v1565_v7 = vpop.f32.mrf.mxu3  ;;  %2008 = vmatmul.msk.f32.gmra.mxu1 %vm324_vm0, %v137_v5 }
 0x1ef   :  { %v900_v11 = vpop.f32.mrf.mxu0 }
 0x1f0   :  { %v1560_v14 = vadd.f32 %v1559_v41, %v1111_v6  ;;  %v901_v12 = vadd.f32 %v3150_v24, %v900_v11  ;;  %v276_v41 = vld [vmem:[%s4125_s0 + $0x830] sm:$0xff]  ;;  %v138_v6 = vld [vmem:[%s4125_s0 + $0x3e0] sm:$0xff] }
 0x1f2   :  { %v1767_v17 = vmax.f32 %v1560_v14, 0.0  ;;  %v1350_v15 = vadd.f32 %v3482_v20, %v901_v12  ;;  %947 = vmatmul.f32.gmra.mxu0 %v130_v9  ;;  %1160 = vmatmul.f32.gmra.mxu2 %v272_v10  ;;  %v285_v10 = vld [vmem:[%s4125_s0 + $0x878] sm:$0xff] }
 0x1f3   :  { %2078 = vmatmul.msk.f32.gmra.mxu3 %vm324_vm0, %v277_v13  ;;  %v3590_v16 = vpop.f32.mrf.mxu1 }
 0x1f4   :  { %1911 = vst.msk [vmem:[%s4127_s3 + $0x380] sm:$0xff] %vm324_vm0, %v1767_v17  ;;  %v1697_v18 = vmax.f32 %v1350_v15, 0.0  ;;  %v147_v17 = vld [vmem:[%s4125_s0 + $0x428] sm:$0xff] }
 0x1f5   :  { %v1113_v22 = vpop.f32.mrf.mxu2 }
 0x1f6   :  { %1841 = vst.msk [vmem:[%s4127_s3 + $0x150] sm:$0xff] %vm324_vm0, %v1697_v18  ;;  %v1114_v20 = vadd.f32 %v3150_v24, %v1113_v22  ;;  %v1568_v21 = vpop.f32.mrf.mxu3  ;;  %2009 = vmatmul.msk.f32.gmra.mxu1 %vm324_vm0, %v139_v19 }
 0x1f7   :  { %v903_v25 = vpop.f32.mrf.mxu0 }
 0x1f8   :  { %v1563_v29 = vadd.f32 %v1562_v56, %v1114_v20  ;;  %v904_v27 = vadd.f32 %v3150_v24, %v903_v25  ;;  %v278_v56 = vld [vmem:[%s4125_s0 + $0x840] sm:$0xff]  ;;  %v140_v20 = vld [vmem:[%s4125_s0 + $0x3f0] sm:$0xff] }
 0x1fa   :  { %v1768_v32 = vmax.f32 %v1563_v29, 0.0  ;;  %v1353_v30 = vadd.f32 %v3509_v35, %v904_v27  ;;  %950 = vmatmul.f32.gmra.mxu0 %v132_v23  ;;  %1163 = vmatmul.f32.gmra.mxu2 %v274_v26  ;;  %v287_v26 = vld [vmem:[%s4125_s0 + $0x888] sm:$0xff] }
 0x1fb   :  { %2079 = vmatmul.msk.f32.gmra.mxu3 %vm324_vm0, %v279_v28  ;;  %v3617_v31 = vpop.f32.mrf.mxu1 }
 0x1fc   :  { %1912 = vst.msk [vmem:[%s4127_s3 + $0x388] sm:$0xff] %vm324_vm0, %v1768_v32  ;;  %v1698_v33 = vmax.f32 %v1353_v30, 0.0  ;;  %v149_v32 = vld [vmem:[%s4125_s0 + $0x438] sm:$0xff] }
 0x1fd   :  { %v1116_v39 = vpop.f32.mrf.mxu2 }
 0x1fe   :  { %1842 = vst.msk [vmem:[%s4127_s3 + $0x158] sm:$0xff] %vm324_vm0, %v1698_v33  ;;  %v1117_v35 = vadd.f32 %v3150_v24, %v1116_v39  ;;  %v1571_v38 = vpop.f32.mrf.mxu3  ;;  %2010 = vmatmul.msk.f32.gmra.mxu1 %vm324_vm0, %v141_v34 }
 0x1ff   :  { %v906_v42 = vpop.f32.mrf.mxu0 }
 0x200   :  { %v1566_v45 = vadd.f32 %v1565_v7, %v1117_v35  ;;  %v907_v43 = vadd.f32 %v3150_v24, %v906_v42  ;;  %v280_v7 = vld [vmem:[%s4125_s0 + $0x850] sm:$0xff]  ;;  %v142_v35 = vld [vmem:[%s4125_s0 + $0x400] sm:$0xff] }
 0x202   :  { %v1769_v49 = vmax.f32 %v1566_v45, 0.0  ;;  %v1356_v46 = vadd.f32 %v3536_v52, %v907_v43  ;;  %953 = vmatmul.f32.gmra.mxu0 %v134_v40  ;;  %1166 = vmatmul.f32.gmra.mxu2 %v276_v41  ;;  %v289_v41 = vld [vmem:[%s4125_s0 + $0x898] sm:$0xff] }
 0x203   :  { %2080 = vmatmul.msk.f32.gmra.mxu3 %vm324_vm0, %v281_v44  ;;  %v3644_v48 = vpop.f32.mrf.mxu1 }
 0x204   :  { %1913 = vst.msk [vmem:[%s4127_s3 + $0x390] sm:$0xff] %vm324_vm0, %v1769_v49  ;;  %v1699_v50 = vmax.f32 %v1356_v46, 0.0  ;;  %v151_v49 = vld [vmem:[%s4125_s0 + $0x448] sm:$0xff] }
 0x205   :  { %v1119_v54 = vpop.f32.mrf.mxu2 }
 0x206   :  { %1843 = vst.msk [vmem:[%s4127_s3 + $0x160] sm:$0xff] %vm324_vm0, %v1699_v50  ;;  %v1120_v52 = vadd.f32 %v3150_v24, %v1119_v54  ;;  %v1574_v53 = vpop.f32.mrf.mxu3  ;;  %2011 = vmatmul.msk.f32.gmra.mxu1 %vm324_vm0, %v143_v51 }
 0x207   :  { %v909_v57 = vpop.f32.mrf.mxu0 }
 0x208   :  { %v1569_v61 = vadd.f32 %v1568_v21, %v1120_v52  ;;  %v910_v59 = vadd.f32 %v3150_v24, %v909_v57  ;;  %v282_v21 = vld [vmem:[%s4125_s0 + $0x860] sm:$0xff]  ;;  %v144_v52 = vld [vmem:[%s4125_s0 + $0x410] sm:$0xff] }
 0x20a   :  { %v1770_v0 = vmax.f32 %v1569_v61, 0.0  ;;  %v1359_v62 = vadd.f32 %v3563_v2, %v910_v59  ;;  %956 = vmatmul.f32.gmra.mxu0 %v136_v55  ;;  %1169 = vmatmul.f32.gmra.mxu2 %v278_v56  ;;  %v291_v56 = vld [vmem:[%s4125_s0 + $0x8a8] sm:$0xff] }
 0x20b   :  { %2081 = vmatmul.msk.f32.gmra.mxu3 %vm324_vm0, %v283_v60  ;;  %v3671_v63 = vpop.f32.mrf.mxu1 }
 0x20c   :  { %1914 = vst.msk [vmem:[%s4127_s3 + $0x398] sm:$0xff] %vm324_vm0, %v1770_v0  ;;  %v1700_v1 = vmax.f32 %v1359_v62, 0.0  ;;  %v153_v0 = vld [vmem:[%s4125_s0 + $0x458] sm:$0xff] }
 0x20d   :  { %v1122_v5 = vpop.f32.mrf.mxu2 }
 0x20e   :  { %1844 = vst.msk [vmem:[%s4127_s3 + $0x168] sm:$0xff] %vm324_vm0, %v1700_v1  ;;  %v1123_v2 = vadd.f32 %v3150_v24, %v1122_v5  ;;  %v1577_v4 = vpop.f32.mrf.mxu3  ;;  %2012 = vmatmul.msk.f32.gmra.mxu1 %vm324_vm0, %v145_v3 }
 0x20f   :  { %v912_v8 = vpop.f32.mrf.mxu0 }
 0x210   :  { %v1572_v11 = vadd.f32 %v1571_v38, %v1123_v2  ;;  %v913_v9 = vadd.f32 %v3150_v24, %v912_v8  ;;  %v284_v38 = vld [vmem:[%s4125_s0 + $0x870] sm:$0xff]  ;;  %v146_v2 = vld [vmem:[%s4125_s0 + $0x420] sm:$0xff] }
 0x212   :  { %v1771_v14 = vmax.f32 %v1572_v11, 0.0  ;;  %v1362_v12 = vadd.f32 %v3590_v16, %v913_v9  ;;  %959 = vmatmul.f32.gmra.mxu0 %v138_v6  ;;  %1172 = vmatmul.f32.gmra.mxu2 %v280_v7  ;;  %v293_v7 = vld [vmem:[%s4125_s0 + $0x8b8] sm:$0xff] }
 0x213   :  { %2082 = vmatmul.msk.f32.gmra.mxu3 %vm324_vm0, %v285_v10  ;;  %v3698_v13 = vpop.f32.mrf.mxu1 }
 0x214   :  { %1915 = vst.msk [vmem:[%s4127_s3 + $0x3a0] sm:$0xff] %vm324_vm0, %v1771_v14  ;;  %v1701_v15 = vmax.f32 %v1362_v12, 0.0  ;;  %v155_v14 = vld [vmem:[%s4125_s0 + $0x468] sm:$0xff] }
 0x215   :  { %v1125_v19 = vpop.f32.mrf.mxu2 }
 0x216   :  { %1845 = vst.msk [vmem:[%s4127_s3 + $0x170] sm:$0xff] %vm324_vm0, %v1701_v15  ;;  %v1126_v16 = vadd.f32 %v3150_v24, %v1125_v19  ;;  %v1580_v18 = vpop.f32.mrf.mxu3  ;;  %2013 = vmatmul.msk.f32.gmra.mxu1 %vm324_vm0, %v147_v17 }
 0x217   :  { %v915_v22 = vpop.f32.mrf.mxu0 }
 0x218   :  { %v1575_v25 = vadd.f32 %v1574_v53, %v1126_v16  ;;  %v916_v23 = vadd.f32 %v3150_v24, %v915_v22  ;;  %v286_v53 = vld [vmem:[%s4125_s0 + $0x880] sm:$0xff]  ;;  %v148_v16 = vld [vmem:[%s4125_s0 + $0x430] sm:$0xff] }
 0x21a   :  { %v1772_v29 = vmax.f32 %v1575_v25, 0.0  ;;  %v1365_v27 = vadd.f32 %v3617_v31, %v916_v23  ;;  %962 = vmatmul.f32.gmra.mxu0 %v140_v20  ;;  %1175 = vmatmul.f32.gmra.mxu2 %v282_v21  ;;  %v295_v21 = vld [vmem:[%s4125_s0 + $0x8c8] sm:$0xff] }
 0x21b   :  { %2083 = vmatmul.msk.f32.gmra.mxu3 %vm324_vm0, %v287_v26  ;;  %v3725_v28 = vpop.f32.mrf.mxu1 }
 0x21c   :  { %1916 = vst.msk [vmem:[%s4127_s3 + $0x3a8] sm:$0xff] %vm324_vm0, %v1772_v29  ;;  %v1702_v30 = vmax.f32 %v1365_v27, 0.0  ;;  %v157_v29 = vld [vmem:[%s4125_s0 + $0x478] sm:$0xff] }
 0x21d   :  { %v1128_v34 = vpop.f32.mrf.mxu2 }
 0x21e   :  { %1846 = vst.msk [vmem:[%s4127_s3 + $0x178] sm:$0xff] %vm324_vm0, %v1702_v30  ;;  %v1129_v31 = vadd.f32 %v3150_v24, %v1128_v34  ;;  %v1583_v33 = vpop.f32.mrf.mxu3  ;;  %2014 = vmatmul.msk.f32.gmra.mxu1 %vm324_vm0, %v149_v32 }
 0x21f   :  { %v918_v39 = vpop.f32.mrf.mxu0 }
 0x220   :  { %v1578_v42 = vadd.f32 %v1577_v4, %v1129_v31  ;;  %v919_v40 = vadd.f32 %v3150_v24, %v918_v39  ;;  %v288_v4 = vld [vmem:[%s4125_s0 + $0x890] sm:$0xff]  ;;  %v150_v31 = vld [vmem:[%s4125_s0 + $0x440] sm:$0xff] }
 0x222   :  { %v1773_v45 = vmax.f32 %v1578_v42, 0.0  ;;  %v1368_v43 = vadd.f32 %v3644_v48, %v919_v40  ;;  %965 = vmatmul.f32.gmra.mxu0 %v142_v35  ;;  %1178 = vmatmul.f32.gmra.mxu2 %v284_v38  ;;  %v297_v38 = vld [vmem:[%s4125_s0 + $0x8d8] sm:$0xff] }
 0x223   :  { %2084 = vmatmul.msk.f32.gmra.mxu3 %vm324_vm0, %v289_v41  ;;  %v3752_v44 = vpop.f32.mrf.mxu1 }
 0x224   :  { %1917 = vst.msk [vmem:[%s4127_s3 + $0x3b0] sm:$0xff] %vm324_vm0, %v1773_v45  ;;  %v1703_v46 = vmax.f32 %v1368_v43, 0.0  ;;  %v159_v45 = vld [vmem:[%s4125_s0 + $0x488] sm:$0xff] }
 0x225   :  { %v1131_v51 = vpop.f32.mrf.mxu2 }
 0x226   :  { %1847 = vst.msk [vmem:[%s4127_s3 + $0x180] sm:$0xff] %vm324_vm0, %v1703_v46  ;;  %v1132_v48 = vadd.f32 %v3150_v24, %v1131_v51  ;;  %v1586_v50 = vpop.f32.mrf.mxu3  ;;  %2015 = vmatmul.msk.f32.gmra.mxu1 %vm324_vm0, %v151_v49 }
 0x227   :  { %v921_v54 = vpop.f32.mrf.mxu0 }
 0x228   :  { %v1581_v57 = vadd.f32 %v1580_v18, %v1132_v48  ;;  %v922_v55 = vadd.f32 %v3150_v24, %v921_v54  ;;  %v290_v18 = vld [vmem:[%s4125_s0 + $0x8a0] sm:$0xff]  ;;  %v152_v48 = vld [vmem:[%s4125_s0 + $0x450] sm:$0xff] }
 0x22a   :  { %v1774_v61 = vmax.f32 %v1581_v57, 0.0  ;;  %v1371_v59 = vadd.f32 %v3671_v63, %v922_v55  ;;  %968 = vmatmul.f32.gmra.mxu0 %v144_v52  ;;  %1181 = vmatmul.f32.gmra.mxu2 %v286_v53  ;;  %v299_v53 = vld [vmem:[%s4125_s0 + $0x8e8] sm:$0xff] }
 0x22b   :  { %2085 = vmatmul.msk.f32.gmra.mxu3 %vm324_vm0, %v291_v56  ;;  %v3779_v60 = vpop.f32.mrf.mxu1 }
 0x22c   :  { %1918 = vst.msk [vmem:[%s4127_s3 + $0x3b8] sm:$0xff] %vm324_vm0, %v1774_v61  ;;  %v1704_v62 = vmax.f32 %v1371_v59, 0.0  ;;  %v161_v61 = vld [vmem:[%s4125_s0 + $0x498] sm:$0xff] }
 0x22d   :  { %v1134_v3 = vpop.f32.mrf.mxu2 }
 0x22e   :  { %1848 = vst.msk [vmem:[%s4127_s3 + $0x188] sm:$0xff] %vm324_vm0, %v1704_v62  ;;  %v1135_v63 = vadd.f32 %v3150_v24, %v1134_v3  ;;  %v1589_v1 = vpop.f32.mrf.mxu3  ;;  %2016 = vmatmul.msk.f32.gmra.mxu1 %vm324_vm0, %v153_v0 }
 0x22f   :  { %v924_v5 = vpop.f32.mrf.mxu0 }
 0x230   :  { %v1584_v8 = vadd.f32 %v1583_v33, %v1135_v63  ;;  %v925_v6 = vadd.f32 %v3150_v24, %v924_v5  ;;  %v292_v33 = vld [vmem:[%s4125_s0 + $0x8b0] sm:$0xff]  ;;  %v154_v63 = vld [vmem:[%s4125_s0 + $0x460] sm:$0xff] }
 0x232   :  { %v1775_v11 = vmax.f32 %v1584_v8, 0.0  ;;  %v1374_v9 = vadd.f32 %v3698_v13, %v925_v6  ;;  %971 = vmatmul.f32.gmra.mxu0 %v146_v2  ;;  %1184 = vmatmul.f32.gmra.mxu2 %v288_v4  ;;  %v301_v4 = vld [vmem:[%s4125_s0 + $0x8f8] sm:$0xff] }
 0x233   :  { %2086 = vmatmul.msk.f32.gmra.mxu3 %vm324_vm0, %v293_v7  ;;  %v3806_v10 = vpop.f32.mrf.mxu1 }
 0x234   :  { %1919 = vst.msk [vmem:[%s4127_s3 + $0x3c0] sm:$0xff] %vm324_vm0, %v1775_v11  ;;  %v1705_v12 = vmax.f32 %v1374_v9, 0.0 }
 0x235   :  { %v1137_v17 = vpop.f32.mrf.mxu2 }
 0x236   :  { %1849 = vst.msk [vmem:[%s4127_s3 + $0x190] sm:$0xff] %vm324_vm0, %v1705_v12  ;;  %v1138_v13 = vadd.f32 %v3150_v24, %v1137_v17  ;;  %v1592_v15 = vpop.f32.mrf.mxu3  ;;  %2017 = vmatmul.msk.f32.gmra.mxu1 %vm324_vm0, %v155_v14  ;;  %v298_v17 = vld [vmem:[%s4125_s0 + $0x8e0] sm:$0xff] }
 0x237   :  { %v927_v19 = vpop.f32.mrf.mxu0 }
 0x238   :  { %v1587_v22 = vadd.f32 %v1586_v50, %v1138_v13  ;;  %v928_v20 = vadd.f32 %v3150_v24, %v927_v19  ;;  %v294_v50 = vld [vmem:[%s4125_s0 + $0x8c0] sm:$0xff] }
 0x23a   :  { %v1776_v25 = vmax.f32 %v1587_v22, 0.0  ;;  %v1377_v23 = vadd.f32 %v3725_v28, %v928_v20  ;;  %974 = vmatmul.f32.gmra.mxu0 %v148_v16  ;;  %1187 = vmatmul.f32.gmra.mxu2 %v290_v18  ;;  %v3849_v28 = vld [vmem:[%s4126_s2] ss:$0 sm:$0xff] }
 0x23b   :  { %2087 = vmatmul.msk.f32.gmra.mxu3 %vm324_vm0, %v295_v21  ;;  %v3833_v26 = vpop.f32.mrf.mxu1 }
 0x23c   :  { %1920 = vst.msk [vmem:[%s4127_s3 + $0x3c8] sm:$0xff] %vm324_vm0, %v1776_v25  ;;  %v1706_v24 = vmax.f32 %v1377_v23, 0.0 }
 0x23d   :  { %v1140_v27 = vpop.f32.mrf.mxu2 }
 0x23e   :  { %1850 = vst.msk [vmem:[%s4127_s3 + $0x198] sm:$0xff] %vm324_vm0, %v1706_v24  ;;  %v1141_v32 = vadd.f32 %v3849_v28, %v1140_v27  ;;  %v1595_v30 = vpop.f32.mrf.mxu3  ;;  %2018 = vmatmul.msk.f32.gmra.mxu1 %vm324_vm0, %v157_v29 }
 0x23f   :  { %v930_v34 = vpop.f32.mrf.mxu0 }
 0x240   :  { %v1590_v39 = vadd.f32 %v1589_v1, %v1141_v32  ;;  %v931_v35 = vadd.f32 %v3849_v28, %v930_v34  ;;  %v296_v1 = vld [vmem:[%s4125_s0 + $0x8d0] sm:$0xff] }
 0x242   :  { %v1777_v42 = vmax.f32 %v1590_v39, 0.0  ;;  %v1380_v40 = vadd.f32 %v3752_v44, %v931_v35  ;;  %977 = vmatmul.f32.gmra.mxu0 %v150_v31  ;;  %1190 = vmatmul.f32.gmra.mxu2 %v292_v33 }
 0x243   :  { %2088 = vmatmul.msk.f32.gmra.mxu3 %vm324_vm0, %v297_v38  ;;  %v3865_v41 = vpop.f32.mrf.mxu1 }
 0x244   :  { %1921 = vst.msk [vmem:[%s4127_s3 + $0x3d0] sm:$0xff] %vm324_vm0, %v1777_v42  ;;  %v1707_v43 = vmax.f32 %v1380_v40, 0.0 }
 0x245   :  { %v1143_v49 = vpop.f32.mrf.mxu2 }
 0x246   :  { %1851 = vst.msk [vmem:[%s4127_s3 + $0x1a0] sm:$0xff] %vm324_vm0, %v1707_v43  ;;  %v1144_v44 = vadd.f32 %v3849_v28, %v1143_v49  ;;  %v1598_v46 = vpop.f32.mrf.mxu3  ;;  %2019 = vmatmul.msk.f32.gmra.mxu1 %vm324_vm0, %v159_v45 }
 0x247   :  { %v933_v51 = vpop.f32.mrf.mxu0 }
 0x248   :  { %v1593_v54 = vadd.f32 %v1592_v15, %v1144_v44  ;;  %v934_v52 = vadd.f32 %v3849_v28, %v933_v51 }
 0x24a   :  { %v1778_v57 = vmax.f32 %v1593_v54, 0.0  ;;  %v1383_v55 = vadd.f32 %v3779_v60, %v934_v52  ;;  %980 = vmatmul.f32.gmra.mxu0 %v152_v48  ;;  %1193 = vmatmul.f32.gmra.mxu2 %v294_v50 }
 0x24b   :  { %2089 = vmatmul.msk.f32.gmra.mxu3 %vm324_vm0, %v299_v53  ;;  %v1394_v56 = vpop.f32.mrf.mxu1 }
 0x24c   :  { %1922 = vst.msk [vmem:[%s4127_s3 + $0x3d8] sm:$0xff] %vm324_vm0, %v1778_v57  ;;  %v1708_v59 = vmax.f32 %v1383_v55, 0.0 }
 0x24d   :  { %v1146_v0 = vpop.f32.mrf.mxu2 }
 0x24e   :  { %1852 = vst.msk [vmem:[%s4127_s3 + $0x1a8] sm:$0xff] %vm324_vm0, %v1708_v59  ;;  %v1147_v60 = vadd.f32 %v3849_v28, %v1146_v0  ;;  %v1601_v62 = vpop.f32.mrf.mxu3  ;;  %2020 = vmatmul.msk.f32.gmra.mxu1 %vm324_vm0, %v161_v61 }
 0x24f   :  { %v936_v3 = vpop.f32.mrf.mxu0 }
 0x250   :  { %v1596_v5 = vadd.f32 %v1595_v30, %v1147_v60  ;;  %v937_v2 = vadd.f32 %v3849_v28, %v936_v3 }
 0x252   :  { %v1779_v8 = vmax.f32 %v1596_v5, 0.0  ;;  %v1386_v6 = vadd.f32 %v3806_v10, %v937_v2  ;;  %983 = vmatmul.f32.gmra.mxu0 %v154_v63  ;;  %1196 = vmatmul.f32.gmra.mxu2 %v296_v1 }
 0x253   :  { %2090 = vmatmul.msk.f32.gmra.mxu3 %vm324_vm0, %v301_v4  ;;  %v1397_v7 = vpop.f32.mrf.mxu1 }
 0x254   :  { %1923 = vst.msk [vmem:[%s4127_s3 + $0x3e0] sm:$0xff] %vm324_vm0, %v1779_v8  ;;  %v1709_v11 = vmax.f32 %v1386_v6, 0.0 }
 0x255   :  { %v1149_v9 = vpop.f32.mrf.mxu2 }
 0x256   :  { %1853 = vst.msk [vmem:[%s4127_s3 + $0x1b0] sm:$0xff] %vm324_vm0, %v1709_v11  ;;  %v1150_v14 = vadd.f32 %v3849_v28, %v1149_v9  ;;  %v1604_v10 = vpop.f32.mrf.mxu3 }
 0x257   :  { %v939_v12 = vpop.f32.mrf.mxu0 }
 0x258   :  { %v1599_v13 = vadd.f32 %v1598_v46, %v1150_v14  ;;  %v940_v15 = vadd.f32 %v3849_v28, %v939_v12 }
 0x25a   :  { %v1780_v19 = vmax.f32 %v1599_v13, 0.0  ;;  %v1389_v16 = vadd.f32 %v3833_v26, %v940_v15  ;;  %1199 = vmatmul.f32.gmra.mxu2 %v298_v17 }
 0x25b   :  { %v1400_v18 = vpop.f32.mrf.mxu1 }
 0x25c   :  { %1924 = vst.msk [vmem:[%s4127_s3 + $0x3e8] sm:$0xff] %vm324_vm0, %v1780_v19  ;;  %v1710_v22 = vmax.f32 %v1389_v16, 0.0 }
 0x25d   :  { %v1152_v20 = vpop.f32.mrf.mxu2 }
 0x25e   :  { %1854 = vst.msk [vmem:[%s4127_s3 + $0x1b8] sm:$0xff] %vm324_vm0, %v1710_v22  ;;  %v1153_v21 = vadd.f32 %v3849_v28, %v1152_v20  ;;  %v1607_v25 = vpop.f32.mrf.mxu3 }
 0x25f   :  { %v942_v23 = vpop.f32.mrf.mxu0 }
 0x260   :  { %v1602_v29 = vadd.f32 %v1601_v62, %v1153_v21  ;;  %v943_v26 = vadd.f32 %v3849_v28, %v942_v23 }
 0x262   :  { %v1781_v24 = vmax.f32 %v1602_v29, 0.0  ;;  %v1392_v27 = vadd.f32 %v3865_v41, %v943_v26 }
 0x263   :  { %v1403_v32 = vpop.f32.mrf.mxu1 }
 0x264   :  { %1925 = vst.msk [vmem:[%s4127_s3 + $0x3f0] sm:$0xff] %vm324_vm0, %v1781_v24  ;;  %v1711_v30 = vmax.f32 %v1392_v27, 0.0 }
 0x265   :  { %v1155_v34 = vpop.f32.mrf.mxu2 }
 0x266   :  { %1855 = vst.msk [vmem:[%s4127_s3 + $0x1c0] sm:$0xff] %vm324_vm0, %v1711_v30  ;;  %v1156_v31 = vadd.f32 %v3849_v28, %v1155_v34  ;;  %v1610_v33 = vpop.f32.mrf.mxu3 }
 0x267   :  { %v945_v39 = vpop.f32.mrf.mxu0 }
 0x268   :  { %v1605_v35 = vadd.f32 %v1604_v10, %v1156_v31  ;;  %v946_v38 = vadd.f32 %v3849_v28, %v945_v39 }
 0x26a   :  { %v1782_v42 = vmax.f32 %v1605_v35, 0.0  ;;  %v1395_v40 = vadd.f32 %v1394_v56, %v946_v38 }
 0x26b   :  { %v1406_v41 = vpop.f32.mrf.mxu1 }
 0x26c   :  { %1926 = vst.msk [vmem:[%s4127_s3 + $0x3f8] sm:$0xff] %vm324_vm0, %v1782_v42  ;;  %v1712_v45 = vmax.f32 %v1395_v40, 0.0 }
 0x26d   :  { %v1158_v43 = vpop.f32.mrf.mxu2 }
 0x26e   :  { %1856 = vst.msk [vmem:[%s4127_s3 + $0x1c8] sm:$0xff] %vm324_vm0, %v1712_v45  ;;  %v1159_v49 = vadd.f32 %v3849_v28, %v1158_v43  ;;  %v1613_v44 = vpop.f32.mrf.mxu3 }
 0x26f   :  { %v948_v46 = vpop.f32.mrf.mxu0 }
 0x270   :  { %v1608_v51 = vadd.f32 %v1607_v25, %v1159_v49  ;;  %v949_v48 = vadd.f32 %v3849_v28, %v948_v46 }
 0x272   :  { %v1783_v50 = vmax.f32 %v1608_v51, 0.0  ;;  %v1398_v54 = vadd.f32 %v1397_v7, %v949_v48 }
 0x273   :  { %v1409_v52 = vpop.f32.mrf.mxu1 }
 0x274   :  { %1927 = vst.msk [vmem:[%s4127_s3 + $0x400] sm:$0xff] %vm324_vm0, %v1783_v50  ;;  %v1713_v53 = vmax.f32 %v1398_v54, 0.0 }
 0x275   :  { %v1161_v57 = vpop.f32.mrf.mxu2 }
 0x276   :  { %1857 = vst.msk [vmem:[%s4127_s3 + $0x1d0] sm:$0xff] %vm324_vm0, %v1713_v53  ;;  %v1162_v55 = vadd.f32 %v3849_v28, %v1161_v57  ;;  %v1616_v56 = vpop.f32.mrf.mxu3 }
 0x277   :  { %v951_v61 = vpop.f32.mrf.mxu0 }
 0x278   :  { %v1611_v59 = vadd.f32 %v1610_v33, %v1162_v55  ;;  %v952_v0 = vadd.f32 %v3849_v28, %v951_v61 }
 0x27a   :  { %v1784_v60 = vmax.f32 %v1611_v59, 0.0  ;;  %v1401_v62 = vadd.f32 %v1400_v18, %v952_v0 }
 0x27b   :  { %v1412_v3 = vpop.f32.mrf.mxu1 }
 0x27c   :  { %1928 = vst.msk [vmem:[%s4127_s3 + $0x408] sm:$0xff] %vm324_vm0, %v1784_v60  ;;  %v1714_v63 = vmax.f32 %v1401_v62, 0.0 }
 0x27d   :  { %v1164_v1 = vpop.f32.mrf.mxu2 }
 0x27e   :  { %1858 = vst.msk [vmem:[%s4127_s3 + $0x1d8] sm:$0xff] %vm324_vm0, %v1714_v63  ;;  %v1165_v5 = vadd.f32 %v3849_v28, %v1164_v1  ;;  %v1619_v2 = vpop.f32.mrf.mxu3 }
 0x27f   :  { %v954_v4 = vpop.f32.mrf.mxu0 }
 0x280   :  { %v1614_v8 = vadd.f32 %v1613_v44, %v1165_v5  ;;  %v955_v6 = vadd.f32 %v3849_v28, %v954_v4 }
 0x282   :  { %v1785_v7 = vmax.f32 %v1614_v8, 0.0  ;;  %v1404_v11 = vadd.f32 %v1403_v32, %v955_v6 }
 0x283   :  { %v1415_v9 = vpop.f32.mrf.mxu1 }
 0x284   :  { %1929 = vst.msk [vmem:[%s4127_s3 + $0x410] sm:$0xff] %vm324_vm0, %v1785_v7  ;;  %v1715_v14 = vmax.f32 %v1404_v11, 0.0 }
 0x285   :  { %v1167_v10 = vpop.f32.mrf.mxu2 }
 0x286   :  { %1859 = vst.msk [vmem:[%s4127_s3 + $0x1e0] sm:$0xff] %vm324_vm0, %v1715_v14  ;;  %v1168_v12 = vadd.f32 %v3849_v28, %v1167_v10  ;;  %v1622_v17 = vpop.f32.mrf.mxu3 }
 0x287   :  { %v957_v13 = vpop.f32.mrf.mxu0 }
 0x288   :  { %v1617_v15 = vadd.f32 %v1616_v56, %v1168_v12  ;;  %v958_v19 = vadd.f32 %v3849_v28, %v957_v13 }
 0x28a   :  { %v1786_v16 = vmax.f32 %v1617_v15, 0.0  ;;  %v1407_v18 = vadd.f32 %v1406_v41, %v958_v19 }
 0x28b   :  { %v1418_v22 = vpop.f32.mrf.mxu1 }
 0x28c   :  { %1930 = vst.msk [vmem:[%s4127_s3 + $0x418] sm:$0xff] %vm324_vm0, %v1786_v16  ;;  %v1716_v20 = vmax.f32 %v1407_v18, 0.0  ;;  %v988_v18 = vadd.f32 %v3849_v28, %v2470_v36 }
 0x28d   :  { %v1170_v21 = vpop.f32.mrf.mxu2 }
 0x28e   :  { %1860 = vst.msk [vmem:[%s4127_s3 + $0x1e8] sm:$0xff] %vm324_vm0, %v1716_v20  ;;  %v1171_v25 = vadd.f32 %v3849_v28, %v1170_v21  ;;  %v1625_v23 = vpop.f32.mrf.mxu3 }
 0x28f   :  { %v960_v29 = vpop.f32.mrf.mxu0 }
 0x290   :  { %v1620_v26 = vadd.f32 %v1619_v2, %v1171_v25  ;;  %v961_v24 = vadd.f32 %v3849_v28, %v960_v29 }
 0x292   :  { %v1787_v27 = vmax.f32 %v1620_v26, 0.0  ;;  %v1410_v32 = vadd.f32 %v1409_v52, %v961_v24 }
 0x293   :  { %v1421_v30 = vpop.f32.mrf.mxu1 }
 0x294   :  { %1931 = vst.msk [vmem:[%s4127_s3 + $0x420] sm:$0xff] %vm324_vm0, %v1787_v27  ;;  %v1717_v34 = vmax.f32 %v1410_v32, 0.0 }
 0x295   :  { %v1173_v31 = vpop.f32.mrf.mxu2 }
 0x296   :  { %1861 = vst.msk [vmem:[%s4127_s3 + $0x1f0] sm:$0xff] %vm324_vm0, %v1717_v34  ;;  %v1174_v33 = vadd.f32 %v3849_v28, %v1173_v31  ;;  %v1628_v39 = vpop.f32.mrf.mxu3  ;;  %v991_v34 = vadd.f32 %v3849_v28, %v2495_v47 }
 0x297   :  { %v963_v35 = vpop.f32.mrf.mxu0 }
 0x298   :  { %v1623_v38 = vadd.f32 %v1622_v17, %v1174_v33  ;;  %v964_v42 = vadd.f32 %v3849_v28, %v963_v35 }
 0x29a   :  { %v1788_v40 = vmax.f32 %v1623_v38, 0.0  ;;  %v1413_v41 = vadd.f32 %v1412_v3, %v964_v42 }
 0x29b   :  { %v1424_v45 = vpop.f32.mrf.mxu1 }
 0x29c   :  { %1932 = vst.msk [vmem:[%s4127_s3 + $0x428] sm:$0xff] %vm324_vm0, %v1788_v40  ;;  %v1718_v43 = vmax.f32 %v1413_v41, 0.0 }
 0x29d   :  { %v1176_v49 = vpop.f32.mrf.mxu2 }
 0x29e   :  { %1862 = vst.msk [vmem:[%s4127_s3 + $0x1f8] sm:$0xff] %vm324_vm0, %v1718_v43  ;;  %v1177_v44 = vadd.f32 %v3849_v28, %v1176_v49  ;;  %v1631_v46 = vpop.f32.mrf.mxu3 }
 0x29f   :  { %v966_v51 = vpop.f32.mrf.mxu0 }
 0x2a0   :  { %v1626_v48 = vadd.f32 %v1625_v23, %v1177_v44  ;;  %v967_v50 = vadd.f32 %v3849_v28, %v966_v51  ;;  %v994_v44 = vadd.f32 %v3849_v28, %v2518_v58 }
 0x2a2   :  { %v1789_v54 = vmax.f32 %v1626_v48, 0.0  ;;  %v1416_v52 = vadd.f32 %v1415_v9, %v967_v50 }
 0x2a3   :  { %v1427_v53 = vpop.f32.mrf.mxu1 }
 0x2a4   :  { %1933 = vst.msk [vmem:[%s4127_s3 + $0x430] sm:$0xff] %vm324_vm0, %v1789_v54  ;;  %v1719_v57 = vmax.f32 %v1416_v52, 0.0 }
 0x2a5   :  { %v1179_v55 = vpop.f32.mrf.mxu2 }
 0x2a6   :  { %1863 = vst.msk [vmem:[%s4127_s3 + $0x200] sm:$0xff] %vm324_vm0, %v1719_v57  ;;  %v1180_v56 = vadd.f32 %v3849_v28, %v1179_v55  ;;  %v1634_v61 = vpop.f32.mrf.mxu3 }
 0x2a7   :  { %v969_v59 = vpop.f32.mrf.mxu0 }
 0x2a8   :  { %v1629_v0 = vadd.f32 %v1628_v39, %v1180_v56  ;;  %v970_v60 = vadd.f32 %v3849_v28, %v969_v59 }
 0x2aa   :  { %v1790_v62 = vmax.f32 %v1629_v0, 0.0  ;;  %v1419_v3 = vadd.f32 %v1418_v22, %v970_v60 }
 0x2ab   :  { %v1430_v63 = vpop.f32.mrf.mxu1 }
 0x2ac   :  { %1934 = vst.msk [vmem:[%s4127_s3 + $0x438] sm:$0xff] %vm324_vm0, %v1790_v62  ;;  %v1720_v1 = vmax.f32 %v1419_v3, 0.0  ;;  %v1204_v62 = vadd.f32 %v3849_v28, %v2476_v37 }
 0x2ad   :  { %v1182_v5 = vpop.f32.mrf.mxu2 }
 0x2ae   :  { %1864 = vst.msk [vmem:[%s4127_s3 + $0x208] sm:$0xff] %vm324_vm0, %v1720_v1  ;;  %v1183_v2 = vadd.f32 %v3849_v28, %v1182_v5  ;;  %v1637_v4 = vpop.f32.mrf.mxu3 }
 0x2af   :  { %v972_v8 = vpop.f32.mrf.mxu0 }
 0x2b0   :  { %v1632_v6 = vadd.f32 %v1631_v46, %v1183_v2  ;;  %v973_v7 = vadd.f32 %v3849_v28, %v972_v8 }
 0x2b2   :  { %v1791_v11 = vmax.f32 %v1632_v6, 0.0  ;;  %v1422_v9 = vadd.f32 %v1421_v30, %v973_v7 }
 0x2b3   :  { %v1433_v14 = vpop.f32.mrf.mxu1 }
 0x2b4   :  { %1935 = vst.msk [vmem:[%s4127_s3 + $0x440] sm:$0xff] %vm324_vm0, %v1791_v11  ;;  %v1721_v10 = vmax.f32 %v1422_v9, 0.0 }
 0x2b5   :  { %v1185_v12 = vpop.f32.mrf.mxu2 }
 0x2b6   :  { %1865 = vst.msk [vmem:[%s4127_s3 + $0x210] sm:$0xff] %vm324_vm0, %v1721_v10  ;;  %v1186_v17 = vadd.f32 %v3849_v28, %v1185_v12  ;;  %v1640_v13 = vpop.f32.mrf.mxu3 }
 0x2b7   :  { %v975_v15 = vpop.f32.mrf.mxu0 }
 0x2b8   :  { %v1635_v19 = vadd.f32 %v1634_v61, %v1186_v17  ;;  %v976_v16 = vadd.f32 %v3849_v28, %v975_v15 }
 0x2ba   :  { %v1792_v22 = vmax.f32 %v1635_v19, 0.0  ;;  %v1425_v20 = vadd.f32 %v1424_v45, %v976_v16 }
 0x2bb   :  { %v1436_v21 = vpop.f32.mrf.mxu1 }
 0x2bc   :  { %1936 = vst.msk [vmem:[%s4127_s3 + $0x448] sm:$0xff] %vm324_vm0, %v1792_v22  ;;  %v1722_v25 = vmax.f32 %v1425_v20, 0.0  ;;  %v1437_v23 = vadd.f32 %v1436_v21, %v988_v18 }
 0x2bd   :  { %v1188_v29 = vpop.f32.mrf.mxu2 }
 0x2be   :  { %1866 = vst.msk [vmem:[%s4127_s3 + $0x218] sm:$0xff] %vm324_vm0, %v1722_v25  ;;  %v1726_v26 = vmax.f32 %v1437_v23, 0.0  ;;  %v1189_v24 = vadd.f32 %v3849_v28, %v1188_v29  ;;  %v1643_v36 = vpop.f32.mrf.mxu3 }
 0x2bf   :  { %v978_v27 = vpop.f32.mrf.mxu0 }
 0x2c0   :  { %1870 = vst.msk [vmem:[%s4127_s3 + $0x238] sm:$0xff] %vm324_vm0, %v1726_v26  ;;  %v1638_v32 = vadd.f32 %v1637_v4, %v1189_v24  ;;  %v979_v30 = vadd.f32 %v3849_v28, %v978_v27 }
 0x2c2   :  { %v1793_v31 = vmax.f32 %v1638_v32, 0.0  ;;  %v1428_v33 = vadd.f32 %v1427_v53, %v979_v30 }
 0x2c3   :  { %v1439_v39 = vpop.f32.mrf.mxu1 }
 0x2c4   :  { %1937 = vst.msk [vmem:[%s4127_s3 + $0x450] sm:$0xff] %vm324_vm0, %v1793_v31  ;;  %v1723_v35 = vmax.f32 %v1428_v33, 0.0  ;;  %v1440_v38 = vadd.f32 %v1439_v39, %v991_v34 }
 0x2c5   :  { %v1191_v42 = vpop.f32.mrf.mxu2 }
 0x2c6   :  { %1867 = vst.msk [vmem:[%s4127_s3 + $0x220] sm:$0xff] %vm324_vm0, %v1723_v35  ;;  %v1727_v40 = vmax.f32 %v1440_v38, 0.0  ;;  %v1192_v41 = vadd.f32 %v3849_v28, %v1191_v42  ;;  %v1646_v47 = vpop.f32.mrf.mxu3 }
 0x2c7   :  { %v981_v45 = vpop.f32.mrf.mxu0 }
 0x2c8   :  { %1871 = vst.msk [vmem:[%s4127_s3 + $0x240] sm:$0xff] %vm324_vm0, %v1727_v40  ;;  %v1641_v43 = vadd.f32 %v1640_v13, %v1192_v41  ;;  %v982_v49 = vadd.f32 %v3849_v28, %v981_v45 }
 0x2ca   :  { %v1794_v46 = vmax.f32 %v1641_v43, 0.0  ;;  %v1431_v51 = vadd.f32 %v1430_v63, %v982_v49 }
 0x2cb   :  { %v1442_v48 = vpop.f32.mrf.mxu1 }
 0x2cc   :  { %1938 = vst.msk [vmem:[%s4127_s3 + $0x458] sm:$0xff] %vm324_vm0, %v1794_v46  ;;  %v1724_v50 = vmax.f32 %v1431_v51, 0.0  ;;  %v1443_v54 = vadd.f32 %v1442_v48, %v994_v44 }
 0x2cd   :  { %v1194_v52 = vpop.f32.mrf.mxu2 }
 0x2ce   :  { %1868 = vst.msk [vmem:[%s4127_s3 + $0x228] sm:$0xff] %vm324_vm0, %v1724_v50  ;;  %v1728_v53 = vmax.f32 %v1443_v54, 0.0  ;;  %v1195_v57 = vadd.f32 %v3849_v28, %v1194_v52  ;;  %v1649_v58 = vpop.f32.mrf.mxu3 }
 0x2cf   :  { %v984_v55 = vpop.f32.mrf.mxu0 }
 0x2d0   :  { %1872 = vst.msk [vmem:[%s4127_s3 + $0x248] sm:$0xff] %vm324_vm0, %v1728_v53  ;;  %v1644_v56 = vadd.f32 %v1643_v36, %v1195_v57  ;;  %v985_v61 = vadd.f32 %v3849_v28, %v984_v55 }
 0x2d2   :  { %v1795_v59 = vmax.f32 %v1644_v56, 0.0  ;;  %v1434_v0 = vadd.f32 %v1433_v14, %v985_v61 }
 0x2d4   :  { %1939 = vst.msk [vmem:[%s4127_s3 + $0x460] sm:$0xff] %vm324_vm0, %v1795_v59  ;;  %v1725_v60 = vmax.f32 %v1434_v0, 0.0 }
 0x2d5   :  { %v1197_v3 = vpop.f32.mrf.mxu2 }
 0x2d6   :  { %1869 = vst.msk [vmem:[%s4127_s3 + $0x230] sm:$0xff] %vm324_vm0, %v1725_v60  ;;  %v1198_v63 = vadd.f32 %v3849_v28, %v1197_v3  ;;  %v1652_v1 = vpop.f32.mrf.mxu3 }
 0x2d7   :  { %v1653_v5 = vadd.f32 %v1652_v1, %v1204_v62 }
 0x2d8   :  { %v1647_v2 = vadd.f32 %v1646_v47, %v1198_v63 }
 0x2d9   :  { %v1798_v4 = vmax.f32 %v1653_v5, 0.0 }
 0x2da   :  { %v1796_v8 = vmax.f32 %v1647_v2, 0.0 }
 0x2db   :  { %1942 = vst.msk [vmem:[%s4127_s3 + $0x478] sm:$0xff] %vm324_vm0, %v1798_v4 }
 0x2dc   :  { %1940 = vst.msk [vmem:[%s4127_s3 + $0x468] sm:$0xff] %vm324_vm0, %v1796_v8 }
 0x2dd   :  { %v1200_v37 = vpop.f32.mrf.mxu2 }
 0x2de   :  { %v1201_v6 = vadd.f32 %v3849_v28, %v1200_v37 }
 0x2e0   :  { %v1650_v7 = vadd.f32 %v1649_v58, %v1201_v6 }
 0x2e2   :  { %v1797_v11 = vmax.f32 %v1650_v7, 0.0 }
 0x2e4   :  { %1941 = vst.msk [vmem:[%s4127_s3 + $0x470] sm:$0xff] %vm324_vm0, %v1797_v11 }

// kernel: oct_net_forward.8
= control target key start
LH: loop header
LB: loop body
LE: loop exit
PB: predicated region body
PF: predicated region fallthrough
CT: control target
= control target key end

     0   :  { %vm86_vm0 = vcmask 130048   ;;  %vm371_vm1 = vcmask 523264   ;;  %s866_s1 = inlined_call_operand.vmem [shape: f32[144,64], index: 1, kind: input, shape index: {}]   ;;  %s867_s0 = inlined_call_operand.vmem [shape: f32[200,144], index: 0, kind: input, shape index: {}]   ;;  %s868_s2 = inlined_call_operand.vmem [shape: f32[1,64], index: 2, kind: input, shape index: {}]   ;;  %s869_s3 = inlined_call_operand.vmem [shape: f32[200,64], index: 3, kind: output, shape index: {}]  }
   0x1   :  { %v79_v0 = vld [vmem:[%s866_s1 + $0x78] sm:$0xff]  ;;  %v487_v1 = vld [vmem:[%s866_s1 + $0x88] sm:$0xff]  ;;  %v78_v2 = vld [vmem:[%s866_s1 + $0x70] sm:$0xff] }
   0x2   :  { %162 = vmatpush.msra.mxu0 %v79_v0  ;;  %426 = vmatpush.msra.mxu2 %v79_v0  ;;  %v495_v3 = vld [vmem:[%s866_s1 + $0x80] sm:$0xff]  ;;  %v15_v4 = vld [vmem:[%s867_s0 + $0x8] sm:$0xff]  ;;  %v75_v7 = vld [vmem:[%s866_s1 + $0x58] sm:$0xff] }
   0x3   :  { %427 = vmatpush.msra.mxu3 %v79_v0  ;;  %268 = vmatpush.msra.mxu1 %v487_v1  ;;  %v77_v5 = vld [vmem:[%s866_s1 + $0x68] sm:$0xff]  ;;  %v76_v6 = vld [vmem:[%s866_s1 + $0x60] sm:$0xff]  ;;  %v74_v8 = vld [vmem:[%s866_s1 + $0x50] sm:$0xff] }
   0x4   :  { %163 = vmatpush.msra.mxu0 %v78_v2  ;;  %428 = vmatpush.msra.mxu2 %v78_v2  ;;  %v17_v9 = vld [vmem:[%s867_s0 + $0x18] sm:$0xff]  ;;  %v73_v10 = vld [vmem:[%s866_s1 + $0x48] sm:$0xff]  ;;  %v72_v11 = vld [vmem:[%s866_s1 + $0x40] sm:$0xff] }
   0x5   :  { %429 = vmatpush.msra.mxu3 %v78_v2  ;;  %269 = vmatpush.msra.mxu1 %v495_v3  ;;  %v71_v12 = vld [vmem:[%s866_s1 + $0x38] sm:$0xff]  ;;  %v70_v13 = vld [vmem:[%s866_s1 + $0x30] sm:$0xff]  ;;  %v19_v14 = vld [vmem:[%s867_s0 + $0x28] sm:$0xff] }
   0x6   :  { %401 = vmatmul.msk.f32.vlgmr.msra.gmra.mxu1 %vm86_vm0, %v15_v4  ;;  %164 = vmatpush.msra.mxu0 %v77_v5  ;;  %v69_v15 = vld [vmem:[%s866_s1 + $0x28] sm:$0xff]  ;;  %v68_v16 = vld [vmem:[%s866_s1 + $0x20] sm:$0xff]  ;;  %v67_v17 = vld [vmem:[%s866_s1 + $0x18] sm:$0xff] }
   0x7   :  { %430 = vmatpush.msra.mxu2 %v77_v5  ;;  %431 = vmatpush.msra.mxu3 %v77_v5  ;;  %v66_v18 = vld [vmem:[%s866_s1 + $0x10] sm:$0xff]  ;;  %v21_v19 = vld [vmem:[%s867_s0 + $0x38] sm:$0xff]  ;;  %v65_v20 = vld [vmem:[%s866_s1 + $0x8] sm:$0xff] }
   0x8   :  { %165 = vmatpush.msra.mxu0 %v76_v6  ;;  %v64_v21 = vld [vmem:[%s866_s1] sm:$0xff]  ;;  %v36_v23 = vld [vmem:[%s867_s0 + $0xb0] sm:$0xff]  ;;  %v23_v25 = vld [vmem:[%s867_s0 + $0x48] sm:$0xff] }
   0x9   :  { %432 = vmatpush.msra.mxu2 %v76_v6  ;;  %433 = vmatpush.msra.mxu3 %v76_v6  ;;  %v14_v22 = vld [vmem:[%s867_s0] sm:$0xff]  ;;  %v60_v24 = vld [vmem:[%s867_s0 + $0x170] sm:$0xff]  ;;  %v25_v29 = vld [vmem:[%s867_s0 + $0x58] sm:$0xff] }
   0xa   :  { %166 = vmatpush.msra.mxu0 %v75_v7  ;;  %v16_v26 = vld [vmem:[%s867_s0 + $0x10] sm:$0xff]  ;;  %v38_v27 = vld [vmem:[%s867_s0 + $0xc0] sm:$0xff]  ;;  %v45_v32 = vld [vmem:[%s867_s0 + $0xf8] sm:$0xff] }
   0xb   :  { %434 = vmatpush.msra.mxu2 %v75_v7  ;;  %435 = vmatpush.msra.mxu3 %v75_v7  ;;  %v62_v28 = vld [vmem:[%s867_s0 + $0x180] sm:$0xff]  ;;  %v40_v31 = vld [vmem:[%s867_s0 + $0xd0] sm:$0xff]  ;;  %v27_v33 = vld [vmem:[%s867_s0 + $0x68] sm:$0xff] }
   0xc   :  { %167 = vmatpush.msra.mxu0 %v74_v8  ;;  %v18_v30 = vld [vmem:[%s867_s0 + $0x20] sm:$0xff]  ;;  %v20_v34 = vld [vmem:[%s867_s0 + $0x30] sm:$0xff]  ;;  %v47_v36 = vld [vmem:[%s867_s0 + $0x108] sm:$0xff] }
   0xd   :  { %436 = vmatpush.msra.mxu2 %v74_v8  ;;  %437 = vmatpush.msra.mxu3 %v74_v8  ;;  %v42_v35 = vld [vmem:[%s867_s0 + $0xe0] sm:$0xff]  ;;  %v29_v37 = vld [vmem:[%s867_s0 + $0x78] sm:$0xff]  ;;  %v44_v39 = vld [vmem:[%s867_s0 + $0xf0] sm:$0xff] }
   0xe   :  { %402 = vmatmul.msk.f32.gmra.mxu1 %vm86_vm0, %v17_v9  ;;  %168 = vmatpush.msra.mxu0 %v73_v10  ;;  %v22_v38 = vld [vmem:[%s867_s0 + $0x40] sm:$0xff]  ;;  %v49_v40 = vld [vmem:[%s867_s0 + $0x118] sm:$0xff]  ;;  %v31_v41 = vld [vmem:[%s867_s0 + $0x88] sm:$0xff] }
   0xf   :  { %438 = vmatpush.msra.mxu2 %v73_v10  ;;  %439 = vmatpush.msra.mxu3 %v73_v10  ;;  %v24_v42 = vld [vmem:[%s867_s0 + $0x50] sm:$0xff]  ;;  %v46_v43 = vld [vmem:[%s867_s0 + $0x100] sm:$0xff]  ;;  %v51_v44 = vld [vmem:[%s867_s0 + $0x128] sm:$0xff] }
  0x10   :  { %169 = vmatpush.msra.mxu0 %v72_v11  ;;  %v33_v45 = vld [vmem:[%s867_s0 + $0x98] sm:$0xff]  ;;  %v26_v46 = vld [vmem:[%s867_s0 + $0x60] sm:$0xff]  ;;  %v48_v47 = vld [vmem:[%s867_s0 + $0x110] sm:$0xff] }
  0x11   :  { %440 = vmatpush.msra.mxu2 %v72_v11  ;;  %441 = vmatpush.msra.mxu3 %v72_v11  ;;  %v53_v48 = vld [vmem:[%s867_s0 + $0x138] sm:$0xff]  ;;  %v35_v49 = vld [vmem:[%s867_s0 + $0xa8] sm:$0xff]  ;;  %v28_v50 = vld [vmem:[%s867_s0 + $0x70] sm:$0xff] }
  0x12   :  { %170 = vmatpush.msra.mxu0 %v71_v12  ;;  %v50_v51 = vld [vmem:[%s867_s0 + $0x120] sm:$0xff]  ;;  %v55_v52 = vld [vmem:[%s867_s0 + $0x148] sm:$0xff]  ;;  %v37_v53 = vld [vmem:[%s867_s0 + $0xb8] sm:$0xff] }
  0x13   :  { %442 = vmatpush.msra.mxu2 %v71_v12  ;;  %443 = vmatpush.msra.mxu3 %v71_v12  ;;  %v30_v54 = vld [vmem:[%s867_s0 + $0x80] sm:$0xff]  ;;  %v52_v55 = vld [vmem:[%s867_s0 + $0x130] sm:$0xff]  ;;  %v57_v56 = vld [vmem:[%s867_s0 + $0x158] sm:$0xff] }
  0x14   :  { %171 = vmatpush.msra.mxu0 %v70_v13  ;;  %v39_v57 = vld [vmem:[%s867_s0 + $0xc8] sm:$0xff]  ;;  %v32_v58 = vld [vmem:[%s867_s0 + $0x90] sm:$0xff]  ;;  %v54_v59 = vld [vmem:[%s867_s0 + $0x140] sm:$0xff] }
  0x15   :  { %444 = vmatpush.msra.mxu2 %v70_v13  ;;  %445 = vmatpush.msra.mxu3 %v70_v13  ;;  %v59_v60 = vld [vmem:[%s867_s0 + $0x168] sm:$0xff]  ;;  %v41_v61 = vld [vmem:[%s867_s0 + $0xd8] sm:$0xff]  ;;  %v34_v62 = vld [vmem:[%s867_s0 + $0xa0] sm:$0xff] }
  0x16   :  { %403 = vmatmul.msk.f32.gmra.mxu1 %vm86_vm0, %v19_v14  ;;  %172 = vmatpush.msra.mxu0 %v69_v15  ;;  %v56_v63 = vld [vmem:[%s867_s0 + $0x150] sm:$0xff]  ;;  %v61_v0 = vld [vmem:[%s867_s0 + $0x178] sm:$0xff]  ;;  %v58_v2 = vld [vmem:[%s867_s0 + $0x160] sm:$0xff] }
  0x17   :  { %446 = vmatpush.msra.mxu2 %v69_v15  ;;  %447 = vmatpush.msra.mxu3 %v69_v15  ;;  %v721_v8 = vld [vmem:[%s868_s2] ss:$0 sm:$0xff] }
  0x18   :  { %173 = vmatpush.msra.mxu0 %v68_v16 }
  0x19   :  { %448 = vmatpush.msra.mxu2 %v68_v16  ;;  %449 = vmatpush.msra.mxu3 %v68_v16 }
  0x1a   :  { %174 = vmatpush.msra.mxu0 %v67_v17 }
  0x1b   :  { %450 = vmatpush.msra.mxu2 %v67_v17  ;;  %451 = vmatpush.msra.mxu3 %v67_v17 }
  0x1c   :  { %175 = vmatpush.msra.mxu0 %v66_v18 }
  0x1d   :  { %452 = vmatpush.msra.mxu2 %v66_v18  ;;  %453 = vmatpush.msra.mxu3 %v66_v18 }
  0x1e   :  { %404 = vmatmul.msk.f32.gmra.mxu1 %vm86_vm0, %v21_v19  ;;  %176 = vmatpush.msra.mxu0 %v65_v20 }
  0x1f   :  { %454 = vmatpush.msra.mxu2 %v65_v20  ;;  %455 = vmatpush.msra.mxu3 %v65_v20 }
  0x20   :  { %177 = vmatpush.msra.mxu0 %v64_v21 }
  0x21   :  { %456 = vmatpush.msra.mxu2 %v64_v21  ;;  %457 = vmatpush.msra.mxu3 %v64_v21 }
  0x22   :  { %178 = vmatmul.f32.vlgmr.msra.gmra.mxu0 %v14_v22  ;;  %211 = vmatmul.f32.vlgmr.msra.gmra.mxu2 %v36_v23 }
  0x23   :  { %247 = vmatmul.f32.vlgmr.msra.gmra.mxu3 %v60_v24 }
  0x24   :  { %458 = vmatpush.msrb.mxu3 %v487_v1  ;;  %v43_v1 = vld [vmem:[%s867_s0 + $0xe8] sm:$0xff] }
  0x26   :  { %405 = vmatmul.msk.f32.gmra.mxu1 %vm86_vm0, %v23_v25  ;;  %459 = vmatpush.msrb.mxu3 %v495_v3  ;;  %v63_v3 = vld [vmem:[%s867_s0 + $0x188] sm:$0xff] }
  0x2a   :  { %181 = vmatmul.f32.gmra.mxu0 %v16_v26  ;;  %214 = vmatmul.f32.gmra.mxu2 %v38_v27 }
  0x2b   :  { %250 = vmatmul.f32.gmra.mxu3 %v62_v28 }
  0x2e   :  { %406 = vmatmul.msk.f32.gmra.mxu1 %vm86_vm0, %v25_v29 }
  0x32   :  { %184 = vmatmul.f32.gmra.mxu0 %v18_v30  ;;  %217 = vmatmul.f32.gmra.mxu2 %v40_v31 }
  0x33   :  { %416 = vmatmul.msk.f32.vlgmr.msrb.gmra.mxu3 %vm86_vm0, %v45_v32 }
  0x36   :  { %407 = vmatmul.msk.f32.gmra.mxu1 %vm86_vm0, %v27_v33 }
  0x3a   :  { %187 = vmatmul.f32.gmra.mxu0 %v20_v34  ;;  %220 = vmatmul.f32.gmra.mxu2 %v42_v35 }
  0x3b   :  { %417 = vmatmul.msk.f32.gmra.mxu3 %vm86_vm0, %v47_v36 }
  0x3e   :  { %408 = vmatmul.msk.f32.gmra.mxu1 %vm86_vm0, %v29_v37 }
  0x42   :  { %190 = vmatmul.f32.gmra.mxu0 %v22_v38  ;;  %223 = vmatmul.f32.gmra.mxu2 %v44_v39 }
  0x43   :  { %418 = vmatmul.msk.f32.gmra.mxu3 %vm86_vm0, %v49_v40 }
  0x46   :  { %409 = vmatmul.msk.f32.gmra.mxu1 %vm86_vm0, %v31_v41 }
  0x4a   :  { %193 = vmatmul.f32.gmra.mxu0 %v24_v42  ;;  %226 = vmatmul.f32.gmra.mxu2 %v46_v43 }
  0x4b   :  { %419 = vmatmul.msk.f32.gmra.mxu3 %vm86_vm0, %v51_v44 }
  0x4e   :  { %410 = vmatmul.msk.f32.gmra.mxu1 %vm86_vm0, %v33_v45 }
  0x52   :  { %196 = vmatmul.f32.gmra.mxu0 %v26_v46  ;;  %229 = vmatmul.f32.gmra.mxu2 %v48_v47 }
  0x53   :  { %420 = vmatmul.msk.f32.gmra.mxu3 %vm86_vm0, %v53_v48 }
  0x56   :  { %411 = vmatmul.msk.f32.gmra.mxu1 %vm86_vm0, %v35_v49 }
  0x5a   :  { %199 = vmatmul.f32.gmra.mxu0 %v28_v50  ;;  %232 = vmatmul.f32.gmra.mxu2 %v50_v51 }
  0x5b   :  { %421 = vmatmul.msk.f32.gmra.mxu3 %vm86_vm0, %v55_v52 }
  0x5e   :  { %412 = vmatmul.msk.f32.gmra.mxu1 %vm86_vm0, %v37_v53 }
  0x62   :  { %202 = vmatmul.f32.gmra.mxu0 %v30_v54  ;;  %235 = vmatmul.f32.gmra.mxu2 %v52_v55 }
  0x63   :  { %422 = vmatmul.msk.f32.gmra.mxu3 %vm86_vm0, %v57_v56 }
  0x66   :  { %413 = vmatmul.msk.f32.gmra.mxu1 %vm86_vm0, %v39_v57 }
  0x6a   :  { %205 = vmatmul.f32.gmra.mxu0 %v32_v58  ;;  %238 = vmatmul.f32.gmra.mxu2 %v54_v59 }
  0x6b   :  { %423 = vmatmul.msk.f32.gmra.mxu3 %vm86_vm0, %v59_v60 }
  0x6e   :  { %414 = vmatmul.msk.f32.gmra.mxu1 %vm86_vm0, %v41_v61 }
  0x72   :  { %208 = vmatmul.f32.gmra.mxu0 %v34_v62  ;;  %241 = vmatmul.f32.gmra.mxu2 %v56_v63 }
  0x73   :  { %424 = vmatmul.msk.f32.gmra.mxu3 %vm86_vm0, %v61_v0 }
  0x76   :  { %415 = vmatmul.msk.f32.gmra.mxu1 %vm86_vm0, %v43_v1 }
  0x7a   :  { %244 = vmatmul.f32.gmra.mxu2 %v58_v2 }
  0x7b   :  { %425 = vmatmul.msk.f32.gmra.mxu3 %vm86_vm0, %v63_v3 }
  0x83   :  { %v271_v4 = vpop.f32.mrf.mxu1 }
  0x8b   :  { %v274_v5 = vpop.f32.mrf.mxu1 }
  0x93   :  { %v277_v6 = vpop.f32.mrf.mxu1 }
  0x9b   :  { %v280_v7 = vpop.f32.mrf.mxu1 }
  0x9f   :  { %v179_v9 = vpop.f32.mrf.mxu0 }
  0xa0   :  { %v180_v10 = vadd.f32 %v721_v8, %v179_v9 }
  0xa2   :  { %v272_v11 = vadd.f32 %v271_v4, %v180_v10 }
  0xa3   :  { %v283_v12 = vpop.f32.mrf.mxu1 }
  0xa4   :  { %v346_v13 = vmax.f32 %v272_v11, 0.0 }
  0xa5   :  { %v724_v14 = vpop.f32.mrf.mxu2 }
  0xa6   :  { %372 = vst.msk [vmem:[%s869_s3] sm:$0xff] %vm371_vm1, %v346_v13  ;;  %v730_v15 = vpop.f32.mrf.mxu3  ;;  %v213_v4 = vadd.f32 %v721_v8, %v724_v14 }
  0xa7   :  { %v182_v16 = vpop.f32.mrf.mxu0 }
  0xa8   :  { %v183_v17 = vadd.f32 %v721_v8, %v182_v16 }
  0xaa   :  { %v275_v18 = vadd.f32 %v274_v5, %v183_v17 }
  0xab   :  { %v286_v19 = vpop.f32.mrf.mxu1 }
  0xac   :  { %v347_v20 = vmax.f32 %v275_v18, 0.0 }
  0xad   :  { %v733_v21 = vpop.f32.mrf.mxu2 }
  0xae   :  { %373 = vst.msk [vmem:[%s869_s3 + $0x8] sm:$0xff] %vm371_vm1, %v347_v20  ;;  %v739_v22 = vpop.f32.mrf.mxu3 }
  0xaf   :  { %v185_v23 = vpop.f32.mrf.mxu0 }
  0xb0   :  { %v186_v24 = vadd.f32 %v721_v8, %v185_v23 }
  0xb2   :  { %v278_v25 = vadd.f32 %v277_v6, %v186_v24 }
  0xb3   :  { %v289_v26 = vpop.f32.mrf.mxu1 }
  0xb4   :  { %v348_v27 = vmax.f32 %v278_v25, 0.0 }
  0xb5   :  { %v742_v28 = vpop.f32.mrf.mxu2 }
  0xb6   :  { %374 = vst.msk [vmem:[%s869_s3 + $0x10] sm:$0xff] %vm371_vm1, %v348_v27  ;;  %v316_v29 = vpop.f32.mrf.mxu3 }
  0xb7   :  { %v188_v30 = vpop.f32.mrf.mxu0 }
  0xb8   :  { %v189_v31 = vadd.f32 %v721_v8, %v188_v30 }
  0xba   :  { %v281_v32 = vadd.f32 %v280_v7, %v189_v31 }
  0xbb   :  { %v292_v33 = vpop.f32.mrf.mxu1 }
  0xbc   :  { %v349_v34 = vmax.f32 %v281_v32, 0.0 }
  0xbd   :  { %v749_v35 = vpop.f32.mrf.mxu2 }
  0xbe   :  { %375 = vst.msk [vmem:[%s869_s3 + $0x18] sm:$0xff] %vm371_vm1, %v349_v34  ;;  %v319_v36 = vpop.f32.mrf.mxu3  ;;  %v219_v34 = vadd.f32 %v721_v8, %v742_v28 }
  0xbf   :  { %v191_v37 = vpop.f32.mrf.mxu0 }
  0xc0   :  { %v192_v38 = vadd.f32 %v721_v8, %v191_v37 }
  0xc2   :  { %v284_v39 = vadd.f32 %v283_v12, %v192_v38 }
  0xc3   :  { %v295_v40 = vpop.f32.mrf.mxu1 }
  0xc4   :  { %v350_v41 = vmax.f32 %v284_v39, 0.0 }
  0xc5   :  { %v224_v42 = vpop.f32.mrf.mxu2 }
  0xc6   :  { %376 = vst.msk [vmem:[%s869_s3 + $0x20] sm:$0xff] %vm371_vm1, %v350_v41  ;;  %v225_v43 = vadd.f32 %v721_v8, %v224_v42  ;;  %v322_v44 = vpop.f32.mrf.mxu3 }
  0xc7   :  { %v194_v45 = vpop.f32.mrf.mxu0 }
  0xc8   :  { %v317_v46 = vadd.f32 %v316_v29, %v225_v43  ;;  %v195_v47 = vadd.f32 %v721_v8, %v194_v45 }
  0xca   :  { %v361_v48 = vmax.f32 %v317_v46, 0.0  ;;  %v287_v49 = vadd.f32 %v286_v19, %v195_v47  ;;  %v216_v19 = vadd.f32 %v721_v8, %v733_v21  ;;  %v222_v47 = vadd.f32 %v721_v8, %v749_v35 }
  0xcb   :  { %v298_v50 = vpop.f32.mrf.mxu1 }
  0xcc   :  { %387 = vst.msk [vmem:[%s869_s3 + $0x78] sm:$0xff] %vm371_vm1, %v361_v48  ;;  %v351_v51 = vmax.f32 %v287_v49, 0.0 }
  0xcd   :  { %v227_v52 = vpop.f32.mrf.mxu2 }
  0xce   :  { %377 = vst.msk [vmem:[%s869_s3 + $0x28] sm:$0xff] %vm371_vm1, %v351_v51  ;;  %v228_v53 = vadd.f32 %v721_v8, %v227_v52  ;;  %v325_v54 = vpop.f32.mrf.mxu3 }
  0xcf   :  { %v197_v55 = vpop.f32.mrf.mxu0 }
  0xd0   :  { %v320_v56 = vadd.f32 %v319_v36, %v228_v53  ;;  %v198_v57 = vadd.f32 %v721_v8, %v197_v55  ;;  %v249_v53 = vadd.f32 %v721_v8, %v730_v15  ;;  %v252_v15 = vadd.f32 %v721_v8, %v739_v22 }
  0xd2   :  { %v362_v58 = vmax.f32 %v320_v56, 0.0  ;;  %v290_v59 = vadd.f32 %v289_v26, %v198_v57 }
  0xd3   :  { %v301_v60 = vpop.f32.mrf.mxu1 }
  0xd4   :  { %388 = vst.msk [vmem:[%s869_s3 + $0x80] sm:$0xff] %vm371_vm1, %v362_v58  ;;  %v352_v61 = vmax.f32 %v290_v59, 0.0 }
  0xd5   :  { %v230_v62 = vpop.f32.mrf.mxu2 }
  0xd6   :  { %378 = vst.msk [vmem:[%s869_s3 + $0x30] sm:$0xff] %vm371_vm1, %v352_v61  ;;  %v231_v63 = vadd.f32 %v721_v8, %v230_v62  ;;  %v328_v0 = vpop.f32.mrf.mxu3 }
  0xd7   :  { %v200_v1 = vpop.f32.mrf.mxu0 }
  0xd8   :  { %v323_v2 = vadd.f32 %v322_v44, %v231_v63  ;;  %v201_v3 = vadd.f32 %v721_v8, %v200_v1 }
  0xda   :  { %v363_v5 = vmax.f32 %v323_v2, 0.0  ;;  %v293_v6 = vadd.f32 %v292_v33, %v201_v3 }
  0xdb   :  { %v304_v7 = vpop.f32.mrf.mxu1 }
  0xdc   :  { %389 = vst.msk [vmem:[%s869_s3 + $0x88] sm:$0xff] %vm371_vm1, %v363_v5  ;;  %v353_v9 = vmax.f32 %v293_v6, 0.0  ;;  %v305_v10 = vadd.f32 %v304_v7, %v213_v4 }
  0xdd   :  { %v233_v11 = vpop.f32.mrf.mxu2 }
  0xde   :  { %379 = vst.msk [vmem:[%s869_s3 + $0x38] sm:$0xff] %vm371_vm1, %v353_v9  ;;  %v357_v12 = vmax.f32 %v305_v10, 0.0  ;;  %v234_v13 = vadd.f32 %v721_v8, %v233_v11  ;;  %v331_v14 = vpop.f32.mrf.mxu3 }
  0xdf   :  { %v203_v16 = vpop.f32.mrf.mxu0 }
  0xe0   :  { %383 = vst.msk [vmem:[%s869_s3 + $0x58] sm:$0xff] %vm371_vm1, %v357_v12  ;;  %v326_v17 = vadd.f32 %v325_v54, %v234_v13  ;;  %v204_v18 = vadd.f32 %v721_v8, %v203_v16 }
  0xe2   :  { %v364_v20 = vmax.f32 %v326_v17, 0.0  ;;  %v296_v23 = vadd.f32 %v295_v40, %v204_v18 }
  0xe3   :  { %v307_v24 = vpop.f32.mrf.mxu1 }
  0xe4   :  { %390 = vst.msk [vmem:[%s869_s3 + $0x90] sm:$0xff] %vm371_vm1, %v364_v20  ;;  %v354_v25 = vmax.f32 %v296_v23, 0.0  ;;  %v308_v26 = vadd.f32 %v307_v24, %v216_v19 }
  0xe5   :  { %v236_v27 = vpop.f32.mrf.mxu2 }
  0xe6   :  { %380 = vst.msk [vmem:[%s869_s3 + $0x40] sm:$0xff] %vm371_vm1, %v354_v25  ;;  %v358_v29 = vmax.f32 %v308_v26, 0.0  ;;  %v237_v30 = vadd.f32 %v721_v8, %v236_v27  ;;  %v334_v21 = vpop.f32.mrf.mxu3 }
  0xe7   :  { %v206_v31 = vpop.f32.mrf.mxu0 }
  0xe8   :  { %384 = vst.msk [vmem:[%s869_s3 + $0x60] sm:$0xff] %vm371_vm1, %v358_v29  ;;  %v329_v32 = vadd.f32 %v328_v0, %v237_v30  ;;  %v207_v33 = vadd.f32 %v721_v8, %v206_v31 }
  0xea   :  { %v365_v36 = vmax.f32 %v329_v32, 0.0  ;;  %v299_v37 = vadd.f32 %v298_v50, %v207_v33 }
  0xeb   :  { %v310_v38 = vpop.f32.mrf.mxu1 }
  0xec   :  { %391 = vst.msk [vmem:[%s869_s3 + $0x98] sm:$0xff] %vm371_vm1, %v365_v36  ;;  %v355_v39 = vmax.f32 %v299_v37, 0.0  ;;  %v311_v40 = vadd.f32 %v310_v38, %v219_v34 }
  0xed   :  { %v239_v41 = vpop.f32.mrf.mxu2 }
  0xee   :  { %381 = vst.msk [vmem:[%s869_s3 + $0x48] sm:$0xff] %vm371_vm1, %v355_v39  ;;  %v359_v42 = vmax.f32 %v311_v40, 0.0  ;;  %v240_v43 = vadd.f32 %v721_v8, %v239_v41  ;;  %v337_v28 = vpop.f32.mrf.mxu3 }
  0xef   :  { %v209_v44 = vpop.f32.mrf.mxu0 }
  0xf0   :  { %385 = vst.msk [vmem:[%s869_s3 + $0x68] sm:$0xff] %vm371_vm1, %v359_v42  ;;  %v332_v45 = vadd.f32 %v331_v14, %v240_v43  ;;  %v210_v46 = vadd.f32 %v721_v8, %v209_v44 }
  0xf2   :  { %v366_v48 = vmax.f32 %v332_v45, 0.0  ;;  %v302_v49 = vadd.f32 %v301_v60, %v210_v46 }
  0xf3   :  { %v313_v50 = vpop.f32.mrf.mxu1 }
  0xf4   :  { %392 = vst.msk [vmem:[%s869_s3 + $0xa0] sm:$0xff] %vm371_vm1, %v366_v48  ;;  %v356_v51 = vmax.f32 %v302_v49, 0.0  ;;  %v314_v52 = vadd.f32 %v313_v50, %v222_v47 }
  0xf5   :  { %v242_v54 = vpop.f32.mrf.mxu2 }
  0xf6   :  { %382 = vst.msk [vmem:[%s869_s3 + $0x50] sm:$0xff] %vm371_vm1, %v356_v51  ;;  %v360_v35 = vmax.f32 %v314_v52, 0.0  ;;  %v243_v55 = vadd.f32 %v721_v8, %v242_v54  ;;  %v340_v56 = vpop.f32.mrf.mxu3 }
  0xf7   :  { %v341_v57 = vadd.f32 %v340_v56, %v249_v53 }
  0xf8   :  { %386 = vst.msk [vmem:[%s869_s3 + $0x70] sm:$0xff] %vm371_vm1, %v360_v35  ;;  %v335_v58 = vadd.f32 %v334_v21, %v243_v55 }
  0xf9   :  { %v369_v59 = vmax.f32 %v341_v57, 0.0 }
  0xfa   :  { %v367_v60 = vmax.f32 %v335_v58, 0.0 }
  0xfb   :  { %395 = vst.msk [vmem:[%s869_s3 + $0xb8] sm:$0xff] %vm371_vm1, %v369_v59 }
  0xfc   :  { %393 = vst.msk [vmem:[%s869_s3 + $0xa8] sm:$0xff] %vm371_vm1, %v367_v60 }
  0xfd   :  { %v245_v61 = vpop.f32.mrf.mxu2 }
  0xfe   :  { %v246_v62 = vadd.f32 %v721_v8, %v245_v61  ;;  %v343_v63 = vpop.f32.mrf.mxu3 }
  0xff   :  { %v344_v0 = vadd.f32 %v343_v63, %v252_v15 }
 0x100   :  { %v338_v1 = vadd.f32 %v337_v28, %v246_v62 }
 0x101   :  { %v370_v2 = vmax.f32 %v344_v0, 0.0 }
 0x102   :  { %v368_v3 = vmax.f32 %v338_v1, 0.0 }
 0x103   :  { %396 = vst.msk [vmem:[%s869_s3 + $0xc0] sm:$0xff] %vm371_vm1, %v370_v2 }
 0x104   :  { %394 = vst.msk [vmem:[%s869_s3 + $0xb0] sm:$0xff] %vm371_vm1, %v368_v3 }

// kernel: oct_net_forward.9
= control target key start
LH: loop header
LB: loop body
LE: loop exit
PB: predicated region body
PF: predicated region fallthrough
CT: control target
= control target key end

     0   :  { %vm170_vm0 = vcmask 523264   ;;  %s1258_s1 = inlined_call_operand.vmem [shape: f32[576,64], index: 1, kind: input, shape index: {}]   ;;  %s1259_s0 = inlined_call_operand.vmem [shape: f32[128,576], index: 0, kind: input, shape index: {}]   ;;  %s1260_s2 = inlined_call_operand.vmem [shape: f32[1,64], index: 2, kind: input, shape index: {}]   ;;  %s1261_s3 = inlined_call_operand.vmem [shape: f32[128,64], index: 3, kind: output, shape index: {}]  }
   0x1   :  { %v109_v0 = vld [vmem:[%s1258_s1 + $0x78] sm:$0xff]  ;;  %v108_v1 = vld [vmem:[%s1258_s1 + $0x70] sm:$0xff]  ;;  %v107_v2 = vld [vmem:[%s1258_s1 + $0x68] sm:$0xff] }
   0x2   :  { %596 = vmatpush.msra.mxu1 %v109_v0  ;;  %597 = vmatpush.msra.mxu2 %v109_v0  ;;  %v106_v3 = vld [vmem:[%s1258_s1 + $0x60] sm:$0xff]  ;;  %v105_v4 = vld [vmem:[%s1258_s1 + $0x58] sm:$0xff]  ;;  %v104_v5 = vld [vmem:[%s1258_s1 + $0x50] sm:$0xff] }
   0x3   :  { %598 = vmatpush.msra.mxu3 %v109_v0  ;;  %219 = vmatpush.msra.mxu0 %v109_v0  ;;  %v103_v6 = vld [vmem:[%s1258_s1 + $0x48] sm:$0xff]  ;;  %v102_v7 = vld [vmem:[%s1258_s1 + $0x40] sm:$0xff]  ;;  %v101_v8 = vld [vmem:[%s1258_s1 + $0x38] sm:$0xff] }
   0x4   :  { %599 = vmatpush.msra.mxu1 %v108_v1  ;;  %600 = vmatpush.msra.mxu2 %v108_v1  ;;  %v100_v9 = vld [vmem:[%s1258_s1 + $0x30] sm:$0xff]  ;;  %v99_v10 = vld [vmem:[%s1258_s1 + $0x28] sm:$0xff]  ;;  %v98_v11 = vld [vmem:[%s1258_s1 + $0x20] sm:$0xff] }
   0x5   :  { %601 = vmatpush.msra.mxu3 %v108_v1  ;;  %220 = vmatpush.msra.mxu0 %v108_v1  ;;  %v97_v12 = vld [vmem:[%s1258_s1 + $0x18] sm:$0xff]  ;;  %v96_v13 = vld [vmem:[%s1258_s1 + $0x10] sm:$0xff]  ;;  %v95_v14 = vld [vmem:[%s1258_s1 + $0x8] sm:$0xff] }
   0x6   :  { %602 = vmatpush.msra.mxu1 %v107_v2  ;;  %603 = vmatpush.msra.mxu2 %v107_v2  ;;  %v94_v15 = vld [vmem:[%s1258_s1] sm:$0xff]  ;;  %v141_v18 = vld [vmem:[%s1258_s1 + $0x178] sm:$0xff]  ;;  %v140_v21 = vld [vmem:[%s1258_s1 + $0x170] sm:$0xff] }
   0x7   :  { %604 = vmatpush.msra.mxu3 %v107_v2  ;;  %221 = vmatpush.msra.mxu0 %v107_v2  ;;  %v34_v16 = vld [vmem:[%s1259_s0 + $0xa0] sm:$0xff]  ;;  %v125_v19 = vld [vmem:[%s1258_s1 + $0xf8] sm:$0xff]  ;;  %v124_v23 = vld [vmem:[%s1258_s1 + $0xf0] sm:$0xff] }
   0x8   :  { %605 = vmatpush.msra.mxu1 %v106_v3  ;;  %606 = vmatpush.msra.mxu2 %v106_v3  ;;  %v54_v17 = vld [vmem:[%s1259_s0 + $0x140] sm:$0xff]  ;;  %v157_v22 = vld [vmem:[%s1258_s1 + $0x1f8] sm:$0xff]  ;;  %v139_v24 = vld [vmem:[%s1258_s1 + $0x168] sm:$0xff] }
   0x9   :  { %607 = vmatpush.msra.mxu3 %v106_v3  ;;  %222 = vmatpush.msra.mxu0 %v106_v3  ;;  %v74_v20 = vld [vmem:[%s1259_s0 + $0x1e0] sm:$0xff]  ;;  %v156_v25 = vld [vmem:[%s1258_s1 + $0x1f0] sm:$0xff]  ;;  %v123_v26 = vld [vmem:[%s1258_s1 + $0xe8] sm:$0xff] }
   0xa   :  { %608 = vmatpush.msra.mxu1 %v105_v4  ;;  %609 = vmatpush.msra.mxu2 %v105_v4  ;;  %v14_v27 = vld [vmem:[%s1259_s0] sm:$0xff]  ;;  %v155_v29 = vld [vmem:[%s1258_s1 + $0x1e8] sm:$0xff]  ;;  %v137_v33 = vld [vmem:[%s1258_s1 + $0x158] sm:$0xff] }
   0xb   :  { %610 = vmatpush.msra.mxu3 %v105_v4  ;;  %223 = vmatpush.msra.mxu0 %v105_v4  ;;  %v138_v28 = vld [vmem:[%s1258_s1 + $0x160] sm:$0xff]  ;;  %v59_v31 = vld [vmem:[%s1259_s0 + $0x168] sm:$0xff]  ;;  %v121_v35 = vld [vmem:[%s1258_s1 + $0xd8] sm:$0xff] }
   0xc   :  { %611 = vmatpush.msra.mxu1 %v104_v5  ;;  %612 = vmatpush.msra.mxu2 %v104_v5  ;;  %v122_v30 = vld [vmem:[%s1258_s1 + $0xe0] sm:$0xff]  ;;  %v39_v32 = vld [vmem:[%s1259_s0 + $0xc8] sm:$0xff]  ;;  %v136_v37 = vld [vmem:[%s1258_s1 + $0x150] sm:$0xff] }
   0xd   :  { %613 = vmatpush.msra.mxu3 %v104_v5  ;;  %224 = vmatpush.msra.mxu0 %v104_v5  ;;  %v154_v34 = vld [vmem:[%s1258_s1 + $0x1e0] sm:$0xff]  ;;  %v79_v36 = vld [vmem:[%s1259_s0 + $0x208] sm:$0xff]  ;;  %v153_v38 = vld [vmem:[%s1258_s1 + $0x1d8] sm:$0xff] }
   0xe   :  { %614 = vmatpush.msra.mxu1 %v103_v6  ;;  %615 = vmatpush.msra.mxu2 %v103_v6  ;;  %v165_v39 = vld [vmem:[%s1258_s1 + $0x238] sm:$0xff]  ;;  %v120_v40 = vld [vmem:[%s1258_s1 + $0xd0] sm:$0xff]  ;;  %v135_v41 = vld [vmem:[%s1258_s1 + $0x148] sm:$0xff] }
   0xf   :  { %616 = vmatpush.msra.mxu3 %v103_v6  ;;  %225 = vmatpush.msra.mxu0 %v103_v6  ;;  %v152_v42 = vld [vmem:[%s1258_s1 + $0x1d0] sm:$0xff]  ;;  %v119_v44 = vld [vmem:[%s1258_s1 + $0xc8] sm:$0xff]  ;;  %v134_v45 = vld [vmem:[%s1258_s1 + $0x140] sm:$0xff] }
  0x10   :  { %617 = vmatpush.msra.mxu1 %v102_v7  ;;  %618 = vmatpush.msra.mxu2 %v102_v7  ;;  %v164_v43 = vld [vmem:[%s1258_s1 + $0x230] sm:$0xff]  ;;  %v151_v46 = vld [vmem:[%s1258_s1 + $0x1c8] sm:$0xff]  ;;  %v118_v48 = vld [vmem:[%s1258_s1 + $0xc0] sm:$0xff] }
  0x11   :  { %619 = vmatpush.msra.mxu3 %v102_v7  ;;  %226 = vmatpush.msra.mxu0 %v102_v7  ;;  %v64_v47 = vld [vmem:[%s1259_s0 + $0x190] sm:$0xff]  ;;  %v133_v49 = vld [vmem:[%s1258_s1 + $0x138] sm:$0xff]  ;;  %v150_v51 = vld [vmem:[%s1258_s1 + $0x1c0] sm:$0xff] }
  0x12   :  { %620 = vmatpush.msra.mxu1 %v101_v8  ;;  %621 = vmatpush.msra.mxu2 %v101_v8  ;;  %v44_v50 = vld [vmem:[%s1259_s0 + $0xf0] sm:$0xff]  ;;  %v117_v52 = vld [vmem:[%s1258_s1 + $0xb8] sm:$0xff]  ;;  %v19_v53 = vld [vmem:[%s1259_s0 + $0x28] sm:$0xff] }
  0x13   :  { %622 = vmatpush.msra.mxu3 %v101_v8  ;;  %227 = vmatpush.msra.mxu0 %v101_v8  ;;  %v84_v54 = vld [vmem:[%s1259_s0 + $0x230] sm:$0xff]  ;;  %v149_v56 = vld [vmem:[%s1258_s1 + $0x1b8] sm:$0xff]  ;;  %v163_v57 = vld [vmem:[%s1258_s1 + $0x228] sm:$0xff] }
  0x14   :  { %623 = vmatpush.msra.mxu1 %v100_v9  ;;  %624 = vmatpush.msra.mxu2 %v100_v9  ;;  %v132_v55 = vld [vmem:[%s1258_s1 + $0x130] sm:$0xff]  ;;  %v131_v59 = vld [vmem:[%s1258_s1 + $0x128] sm:$0xff]  ;;  %v162_v61 = vld [vmem:[%s1258_s1 + $0x220] sm:$0xff] }
  0x15   :  { %625 = vmatpush.msra.mxu3 %v100_v9  ;;  %228 = vmatpush.msra.mxu0 %v100_v9  ;;  %v116_v58 = vld [vmem:[%s1258_s1 + $0xb0] sm:$0xff]  ;;  %v115_v62 = vld [vmem:[%s1258_s1 + $0xa8] sm:$0xff]  ;;  %v130_v63 = vld [vmem:[%s1258_s1 + $0x120] sm:$0xff] }
  0x16   :  { %626 = vmatpush.msra.mxu1 %v99_v10  ;;  %627 = vmatpush.msra.mxu2 %v99_v10  ;;  %v148_v60 = vld [vmem:[%s1258_s1 + $0x1b0] sm:$0xff]  ;;  %v147_v0 = vld [vmem:[%s1258_s1 + $0x1a8] sm:$0xff]  ;;  %v69_v1 = vld [vmem:[%s1259_s0 + $0x1b8] sm:$0xff] }
  0x17   :  { %628 = vmatpush.msra.mxu3 %v99_v10  ;;  %229 = vmatpush.msra.mxu0 %v99_v10  ;;  %v114_v2 = vld [vmem:[%s1258_s1 + $0xa0] sm:$0xff]  ;;  %v129_v3 = vld [vmem:[%s1258_s1 + $0x118] sm:$0xff]  ;;  %v24_v7 = vld [vmem:[%s1259_s0 + $0x50] sm:$0xff] }
  0x18   :  { %629 = vmatpush.msra.mxu1 %v98_v11  ;;  %630 = vmatpush.msra.mxu2 %v98_v11  ;;  %v49_v4 = vld [vmem:[%s1259_s0 + $0x118] sm:$0xff]  ;;  %v146_v5 = vld [vmem:[%s1258_s1 + $0x1a0] sm:$0xff]  ;;  %v128_v9 = vld [vmem:[%s1258_s1 + $0x110] sm:$0xff] }
  0x19   :  { %631 = vmatpush.msra.mxu3 %v98_v11  ;;  %230 = vmatpush.msra.mxu0 %v98_v11  ;;  %v113_v6 = vld [vmem:[%s1258_s1 + $0x98] sm:$0xff] }
  0x1a   :  { %632 = vmatpush.msra.mxu1 %v97_v12  ;;  %633 = vmatpush.msra.mxu2 %v97_v12  ;;  %v89_v8 = vld [vmem:[%s1259_s0 + $0x258] sm:$0xff] }
  0x1b   :  { %634 = vmatpush.msra.mxu3 %v97_v12  ;;  %231 = vmatpush.msra.mxu0 %v97_v12  ;;  %v145_v10 = vld [vmem:[%s1258_s1 + $0x198] sm:$0xff]  ;;  %v112_v12 = vld [vmem:[%s1258_s1 + $0x90] sm:$0xff] }
  0x1c   :  { %635 = vmatpush.msra.mxu1 %v96_v13  ;;  %636 = vmatpush.msra.mxu2 %v96_v13  ;;  %v161_v11 = vld [vmem:[%s1258_s1 + $0x218] sm:$0xff] }
  0x1d   :  { %637 = vmatpush.msra.mxu3 %v96_v13  ;;  %232 = vmatpush.msra.mxu0 %v96_v13  ;;  %v127_v13 = vld [vmem:[%s1258_s1 + $0x108] sm:$0xff] }
  0x1e   :  { %638 = vmatpush.msra.mxu1 %v95_v14  ;;  %639 = vmatpush.msra.mxu2 %v95_v14 }
  0x1f   :  { %640 = vmatpush.msra.mxu3 %v95_v14  ;;  %233 = vmatpush.msra.mxu0 %v95_v14  ;;  %v144_v14 = vld [vmem:[%s1258_s1 + $0x190] sm:$0xff] }
  0x20   :  { %641 = vmatpush.msra.mxu1 %v94_v15  ;;  %642 = vmatpush.msra.mxu2 %v94_v15 }
  0x21   :  { %247 = vmatmul.f32.vlgmr.msra.gmra.mxu1 %v34_v16  ;;  %259 = vmatmul.f32.vlgmr.msra.gmra.mxu2 %v54_v17  ;;  %v111_v16 = vld [vmem:[%s1258_s1 + $0x88] sm:$0xff]  ;;  %v126_v17 = vld [vmem:[%s1258_s1 + $0x100] sm:$0xff] }
  0x22   :  { %349 = vmatpush.msrb.mxu2 %v141_v18  ;;  %643 = vmatpush.msra.mxu3 %v94_v15  ;;  %v143_v18 = vld [vmem:[%s1258_s1 + $0x188] sm:$0xff] }
  0x23   :  { %284 = vmatpush.msrb.mxu1 %v125_v19  ;;  %271 = vmatmul.f32.vlgmr.msra.gmra.mxu3 %v74_v20  ;;  %v16_v19 = vld [vmem:[%s1259_s0 + $0x10] sm:$0xff]  ;;  %v110_v20 = vld [vmem:[%s1258_s1 + $0x80] sm:$0xff] }
  0x24   :  { %350 = vmatpush.msrb.mxu2 %v140_v21  ;;  %414 = vmatpush.msrb.mxu3 %v157_v22  ;;  %v159_v21 = vld [vmem:[%s1258_s1 + $0x208] sm:$0xff] }
  0x25   :  { %285 = vmatpush.msrb.mxu1 %v124_v23  ;;  %234 = vmatpush.msra.mxu0 %v94_v15  ;;  %v160_v15 = vld [vmem:[%s1258_s1 + $0x210] sm:$0xff]  ;;  %v15_v22 = vld [vmem:[%s1259_s0 + $0x8] sm:$0xff]  ;;  %v142_v23 = vld [vmem:[%s1258_s1 + $0x180] sm:$0xff] }
  0x26   :  { %351 = vmatpush.msrb.mxu2 %v139_v24  ;;  %415 = vmatpush.msrb.mxu3 %v156_v25  ;;  %v29_v24 = vld [vmem:[%s1259_s0 + $0x78] sm:$0xff] }
  0x27   :  { %286 = vmatpush.msrb.mxu1 %v123_v26  ;;  %235 = vmatmul.f32.vlgmr.msra.gmra.mxu0 %v14_v27  ;;  %v17_v25 = vld [vmem:[%s1259_s0 + $0x18] sm:$0xff]  ;;  %v158_v26 = vld [vmem:[%s1258_s1 + $0x200] sm:$0xff] }
  0x28   :  { %352 = vmatpush.msrb.mxu2 %v138_v28  ;;  %416 = vmatpush.msrb.mxu3 %v155_v29  ;;  %v21_v27 = vld [vmem:[%s1259_s0 + $0x38] sm:$0xff]  ;;  %v20_v28 = vld [vmem:[%s1259_s0 + $0x30] sm:$0xff]  ;;  %v22_v29 = vld [vmem:[%s1259_s0 + $0x40] sm:$0xff] }
  0x29   :  { %287 = vmatpush.msrb.mxu1 %v122_v30  ;;  %262 = vmatmul.f32.gmra.mxu2 %v59_v31  ;;  %v18_v30 = vld [vmem:[%s1259_s0 + $0x20] sm:$0xff] }
  0x2a   :  { %250 = vmatmul.f32.gmra.mxu1 %v39_v32  ;;  %353 = vmatpush.msrb.mxu2 %v137_v33  ;;  %v26_v31 = vld [vmem:[%s1259_s0 + $0x60] sm:$0xff]  ;;  %v25_v32 = vld [vmem:[%s1259_s0 + $0x58] sm:$0xff]  ;;  %v27_v33 = vld [vmem:[%s1259_s0 + $0x68] sm:$0xff] }
  0x2b   :  { %417 = vmatpush.msrb.mxu3 %v154_v34  ;;  %288 = vmatpush.msrb.mxu1 %v121_v35  ;;  %v23_v34 = vld [vmem:[%s1259_s0 + $0x48] sm:$0xff] }
  0x2c   :  { %274 = vmatmul.f32.gmra.mxu3 %v79_v36  ;;  %354 = vmatpush.msrb.mxu2 %v136_v37  ;;  %v31_v35 = vld [vmem:[%s1259_s0 + $0x88] sm:$0xff]  ;;  %v30_v36 = vld [vmem:[%s1259_s0 + $0x80] sm:$0xff]  ;;  %v32_v37 = vld [vmem:[%s1259_s0 + $0x90] sm:$0xff] }
  0x2d   :  { %418 = vmatpush.msrb.mxu3 %v153_v38  ;;  %487 = vmatpush.msrb.mxu0 %v165_v39  ;;  %v28_v38 = vld [vmem:[%s1259_s0 + $0x70] sm:$0xff] }
  0x2e   :  { %289 = vmatpush.msrb.mxu1 %v120_v40  ;;  %355 = vmatpush.msrb.mxu2 %v135_v41  ;;  %v36_v39 = vld [vmem:[%s1259_s0 + $0xb0] sm:$0xff]  ;;  %v35_v40 = vld [vmem:[%s1259_s0 + $0xa8] sm:$0xff]  ;;  %v37_v41 = vld [vmem:[%s1259_s0 + $0xb8] sm:$0xff] }
  0x2f   :  { %419 = vmatpush.msrb.mxu3 %v152_v42  ;;  %488 = vmatpush.msrb.mxu0 %v164_v43  ;;  %v33_v42 = vld [vmem:[%s1259_s0 + $0x98] sm:$0xff] }
  0x30   :  { %290 = vmatpush.msrb.mxu1 %v119_v44  ;;  %356 = vmatpush.msrb.mxu2 %v134_v45  ;;  %v41_v43 = vld [vmem:[%s1259_s0 + $0xd8] sm:$0xff]  ;;  %v40_v44 = vld [vmem:[%s1259_s0 + $0xd0] sm:$0xff]  ;;  %v42_v45 = vld [vmem:[%s1259_s0 + $0xe0] sm:$0xff] }
  0x31   :  { %420 = vmatpush.msrb.mxu3 %v151_v46  ;;  %265 = vmatmul.f32.gmra.mxu2 %v64_v47  ;;  %v38_v46 = vld [vmem:[%s1259_s0 + $0xc0] sm:$0xff] }
  0x32   :  { %291 = vmatpush.msrb.mxu1 %v118_v48  ;;  %357 = vmatpush.msrb.mxu2 %v133_v49  ;;  %v46_v47 = vld [vmem:[%s1259_s0 + $0x100] sm:$0xff]  ;;  %v45_v48 = vld [vmem:[%s1259_s0 + $0xf8] sm:$0xff]  ;;  %v47_v49 = vld [vmem:[%s1259_s0 + $0x108] sm:$0xff] }
  0x33   :  { %253 = vmatmul.f32.gmra.mxu1 %v44_v50  ;;  %421 = vmatpush.msrb.mxu3 %v150_v51  ;;  %v43_v50 = vld [vmem:[%s1259_s0 + $0xe8] sm:$0xff] }
  0x34   :  { %292 = vmatpush.msrb.mxu1 %v117_v52  ;;  %238 = vmatmul.f32.gmra.mxu0 %v19_v53  ;;  %v51_v51 = vld [vmem:[%s1259_s0 + $0x128] sm:$0xff]  ;;  %v50_v52 = vld [vmem:[%s1259_s0 + $0x120] sm:$0xff]  ;;  %v52_v53 = vld [vmem:[%s1259_s0 + $0x130] sm:$0xff] }
  0x35   :  { %277 = vmatmul.f32.gmra.mxu3 %v84_v54  ;;  %358 = vmatpush.msrb.mxu2 %v132_v55  ;;  %v48_v54 = vld [vmem:[%s1259_s0 + $0x110] sm:$0xff] }
  0x36   :  { %422 = vmatpush.msrb.mxu3 %v149_v56  ;;  %489 = vmatpush.msrb.mxu0 %v163_v57  ;;  %v56_v55 = vld [vmem:[%s1259_s0 + $0x150] sm:$0xff]  ;;  %v55_v56 = vld [vmem:[%s1259_s0 + $0x148] sm:$0xff]  ;;  %v57_v57 = vld [vmem:[%s1259_s0 + $0x158] sm:$0xff] }
  0x37   :  { %293 = vmatpush.msrb.mxu1 %v116_v58  ;;  %359 = vmatpush.msrb.mxu2 %v131_v59  ;;  %v53_v58 = vld [vmem:[%s1259_s0 + $0x138] sm:$0xff] }
  0x38   :  { %423 = vmatpush.msrb.mxu3 %v148_v60  ;;  %490 = vmatpush.msrb.mxu0 %v162_v61  ;;  %v61_v59 = vld [vmem:[%s1259_s0 + $0x178] sm:$0xff]  ;;  %v60_v60 = vld [vmem:[%s1259_s0 + $0x170] sm:$0xff]  ;;  %v62_v61 = vld [vmem:[%s1259_s0 + $0x180] sm:$0xff] }
  0x39   :  { %294 = vmatpush.msrb.mxu1 %v115_v62  ;;  %360 = vmatpush.msrb.mxu2 %v130_v63  ;;  %v58_v62 = vld [vmem:[%s1259_s0 + $0x160] sm:$0xff] }
  0x3a   :  { %424 = vmatpush.msrb.mxu3 %v147_v0  ;;  %268 = vmatmul.f32.gmra.mxu2 %v69_v1  ;;  %v66_v63 = vld [vmem:[%s1259_s0 + $0x1a0] sm:$0xff]  ;;  %v65_v0 = vld [vmem:[%s1259_s0 + $0x198] sm:$0xff]  ;;  %v67_v1 = vld [vmem:[%s1259_s0 + $0x1a8] sm:$0xff] }
  0x3b   :  { %295 = vmatpush.msrb.mxu1 %v114_v2  ;;  %361 = vmatpush.msrb.mxu2 %v129_v3  ;;  %v63_v2 = vld [vmem:[%s1259_s0 + $0x188] sm:$0xff] }
  0x3c   :  { %256 = vmatmul.f32.gmra.mxu1 %v49_v4  ;;  %425 = vmatpush.msrb.mxu3 %v146_v5  ;;  %v71_v3 = vld [vmem:[%s1259_s0 + $0x1c8] sm:$0xff]  ;;  %v70_v4 = vld [vmem:[%s1259_s0 + $0x1c0] sm:$0xff]  ;;  %v72_v5 = vld [vmem:[%s1259_s0 + $0x1d0] sm:$0xff] }
  0x3d   :  { %296 = vmatpush.msrb.mxu1 %v113_v6  ;;  %241 = vmatmul.f32.gmra.mxu0 %v24_v7  ;;  %v68_v6 = vld [vmem:[%s1259_s0 + $0x1b0] sm:$0xff] }
  0x3e   :  { %280 = vmatmul.f32.gmra.mxu3 %v89_v8  ;;  %362 = vmatpush.msrb.mxu2 %v128_v9  ;;  %v76_v8 = vld [vmem:[%s1259_s0 + $0x1f0] sm:$0xff]  ;;  %v75_v9 = vld [vmem:[%s1259_s0 + $0x1e8] sm:$0xff] }
  0x3f   :  { %426 = vmatpush.msrb.mxu3 %v145_v10  ;;  %491 = vmatpush.msrb.mxu0 %v161_v11  ;;  %v1092_v10 = vld [vmem:[%s1260_s2] ss:$0 sm:$0xff]  ;;  %v77_v11 = vld [vmem:[%s1259_s0 + $0x1f8] sm:$0xff] }
  0x40   :  { %297 = vmatpush.msrb.mxu1 %v112_v12  ;;  %363 = vmatpush.msrb.mxu2 %v127_v13  ;;  %v73_v12 = vld [vmem:[%s1259_s0 + $0x1d8] sm:$0xff] }
  0x41   :  { %427 = vmatpush.msrb.mxu3 %v144_v14  ;;  %492 = vmatpush.msrb.mxu0 %v160_v15 }
  0x42   :  { %298 = vmatpush.msrb.mxu1 %v111_v16  ;;  %364 = vmatpush.msrb.mxu2 %v126_v17 }
  0x43   :  { %428 = vmatpush.msrb.mxu3 %v143_v18  ;;  %365 = vmatmul.f32.vlgmr.msrb.gmra.mxu2 %v16_v19  ;;  %v81_v19 = vld [vmem:[%s1259_s0 + $0x218] sm:$0xff] }
  0x44   :  { %299 = vmatpush.msrb.mxu1 %v110_v20  ;;  %493 = vmatpush.msrb.mxu0 %v159_v21  ;;  %v80_v20 = vld [vmem:[%s1259_s0 + $0x210] sm:$0xff]  ;;  %v82_v21 = vld [vmem:[%s1259_s0 + $0x220] sm:$0xff] }
  0x45   :  { %300 = vmatmul.f32.vlgmr.msrb.gmra.mxu1 %v15_v22  ;;  %429 = vmatpush.msrb.mxu3 %v142_v23  ;;  %v78_v22 = vld [vmem:[%s1259_s0 + $0x200] sm:$0xff] }
  0x46   :  { %244 = vmatmul.f32.gmra.mxu0 %v29_v24  ;;  %430 = vmatmul.f32.vlgmr.msrb.gmra.mxu3 %v17_v25 }
  0x47   :  { %494 = vmatpush.msrb.mxu0 %v158_v26 }
  0x4b   :  { %368 = vmatmul.f32.gmra.mxu2 %v21_v27 }
  0x4d   :  { %303 = vmatmul.f32.gmra.mxu1 %v20_v28  ;;  %v86_v28 = vld [vmem:[%s1259_s0 + $0x240] sm:$0xff] }
  0x4e   :  { %433 = vmatmul.f32.gmra.mxu3 %v22_v29  ;;  %580 = vmatmul.msk.f32.vlgmr.msrb.gmra.mxu0 %vm170_vm0, %v18_v30  ;;  %v85_v30 = vld [vmem:[%s1259_s0 + $0x238] sm:$0xff] }
  0x53   :  { %371 = vmatmul.f32.gmra.mxu2 %v26_v31  ;;  %v87_v31 = vld [vmem:[%s1259_s0 + $0x248] sm:$0xff] }
  0x55   :  { %306 = vmatmul.f32.gmra.mxu1 %v25_v32  ;;  %v83_v32 = vld [vmem:[%s1259_s0 + $0x228] sm:$0xff] }
  0x56   :  { %436 = vmatmul.f32.gmra.mxu3 %v27_v33  ;;  %581 = vmatmul.msk.f32.gmra.mxu0 %vm170_vm0, %v23_v34 }
  0x5b   :  { %374 = vmatmul.f32.gmra.mxu2 %v31_v35 }
  0x5d   :  { %309 = vmatmul.f32.gmra.mxu1 %v30_v36  ;;  %v91_v36 = vld [vmem:[%s1259_s0 + $0x268] sm:$0xff] }
  0x5e   :  { %439 = vmatmul.f32.gmra.mxu3 %v32_v37  ;;  %582 = vmatmul.msk.f32.gmra.mxu0 %vm170_vm0, %v28_v38 }
  0x63   :  { %377 = vmatmul.f32.gmra.mxu2 %v36_v39 }
  0x65   :  { %312 = vmatmul.f32.gmra.mxu1 %v35_v40  ;;  %v90_v40 = vld [vmem:[%s1259_s0 + $0x260] sm:$0xff] }
  0x66   :  { %442 = vmatmul.f32.gmra.mxu3 %v37_v41  ;;  %583 = vmatmul.msk.f32.gmra.mxu0 %vm170_vm0, %v33_v42  ;;  %v92_v41 = vld [vmem:[%s1259_s0 + $0x270] sm:$0xff] }
  0x67   :  { %v88_v42 = vld [vmem:[%s1259_s0 + $0x250] sm:$0xff] }
  0x6b   :  { %380 = vmatmul.f32.gmra.mxu2 %v41_v43 }
  0x6d   :  { %315 = vmatmul.f32.gmra.mxu1 %v40_v44 }
  0x6e   :  { %445 = vmatmul.f32.gmra.mxu3 %v42_v45  ;;  %584 = vmatmul.msk.f32.gmra.mxu0 %vm170_vm0, %v38_v46 }
  0x73   :  { %383 = vmatmul.f32.gmra.mxu2 %v46_v47 }
  0x75   :  { %318 = vmatmul.f32.gmra.mxu1 %v45_v48 }
  0x76   :  { %448 = vmatmul.f32.gmra.mxu3 %v47_v49  ;;  %585 = vmatmul.msk.f32.gmra.mxu0 %vm170_vm0, %v43_v50  ;;  %v93_v50 = vld [vmem:[%s1259_s0 + $0x278] sm:$0xff] }
  0x7b   :  { %386 = vmatmul.f32.gmra.mxu2 %v51_v51 }
  0x7d   :  { %321 = vmatmul.f32.gmra.mxu1 %v50_v52 }
  0x7e   :  { %451 = vmatmul.f32.gmra.mxu3 %v52_v53  ;;  %586 = vmatmul.msk.f32.gmra.mxu0 %vm170_vm0, %v48_v54 }
  0x83   :  { %389 = vmatmul.f32.gmra.mxu2 %v56_v55 }
  0x85   :  { %324 = vmatmul.f32.gmra.mxu1 %v55_v56 }
  0x86   :  { %454 = vmatmul.f32.gmra.mxu3 %v57_v57  ;;  %587 = vmatmul.msk.f32.gmra.mxu0 %vm170_vm0, %v53_v58 }
  0x8b   :  { %392 = vmatmul.f32.gmra.mxu2 %v61_v59 }
  0x8d   :  { %327 = vmatmul.f32.gmra.mxu1 %v60_v60 }
  0x8e   :  { %457 = vmatmul.f32.gmra.mxu3 %v62_v61  ;;  %588 = vmatmul.msk.f32.gmra.mxu0 %vm170_vm0, %v58_v62 }
  0x93   :  { %395 = vmatmul.f32.gmra.mxu2 %v66_v63 }
  0x95   :  { %330 = vmatmul.f32.gmra.mxu1 %v65_v0 }
  0x96   :  { %460 = vmatmul.f32.gmra.mxu3 %v67_v1  ;;  %589 = vmatmul.msk.f32.gmra.mxu0 %vm170_vm0, %v63_v2 }
  0x9b   :  { %398 = vmatmul.f32.gmra.mxu2 %v71_v3 }
  0x9d   :  { %333 = vmatmul.f32.gmra.mxu1 %v70_v4 }
  0x9e   :  { %463 = vmatmul.f32.gmra.mxu3 %v72_v5  ;;  %590 = vmatmul.msk.f32.gmra.mxu0 %vm170_vm0, %v68_v6  ;;  %v1081_v7 = vpop.f32.mrf.mxu1 }
  0xa3   :  { %401 = vmatmul.f32.gmra.mxu2 %v76_v8 }
  0xa4   :  { %v260_v13 = vpop.f32.mrf.mxu2  ;;  %v236_v18 = vpop.f32.mrf.mxu0 }
  0xa5   :  { %336 = vmatmul.f32.gmra.mxu1 %v75_v9  ;;  %v1101_v14 = vadd.f32 %v1092_v10, %v260_v13  ;;  %v237_v48 = vadd.f32 %v1092_v10, %v236_v18 }
  0xa6   :  { %466 = vmatmul.f32.gmra.mxu3 %v77_v11  ;;  %591 = vmatmul.msk.f32.gmra.mxu0 %vm170_vm0, %v73_v12  ;;  %v272_v15 = vpop.f32.mrf.mxu3 }
  0xa7   :  { %v1104_v16 = vpop.f32.mrf.mxu1  ;;  %v1107_v17 = vadd.f32 %v1092_v10, %v272_v15 }
  0xab   :  { %404 = vmatmul.f32.gmra.mxu2 %v81_v19 }
  0xac   :  { %v263_v23 = vpop.f32.mrf.mxu2 }
  0xad   :  { %339 = vmatmul.f32.gmra.mxu1 %v80_v20  ;;  %v1122_v24 = vadd.f32 %v1092_v10, %v263_v23 }
  0xae   :  { %469 = vmatmul.f32.gmra.mxu3 %v82_v21  ;;  %592 = vmatmul.msk.f32.gmra.mxu0 %vm170_vm0, %v78_v22 }
  0xaf   :  { %v275_v25 = vpop.f32.mrf.mxu3 }
  0xb0   :  { %v1125_v26 = vpop.f32.mrf.mxu1  ;;  %v1128_v27 = vadd.f32 %v1092_v10, %v275_v25 }
  0xb1   :  { %v239_v29 = vpop.f32.mrf.mxu0 }
  0xb2   :  { %v240_v57 = vadd.f32 %v1092_v10, %v239_v29 }
  0xb3   :  { %407 = vmatmul.f32.gmra.mxu2 %v86_v28 }
  0xb4   :  { %v266_v33 = vpop.f32.mrf.mxu2 }
  0xb5   :  { %342 = vmatmul.f32.gmra.mxu1 %v85_v30  ;;  %v1143_v34 = vadd.f32 %v1092_v10, %v266_v33 }
  0xb6   :  { %472 = vmatmul.f32.gmra.mxu3 %v87_v31  ;;  %593 = vmatmul.msk.f32.gmra.mxu0 %vm170_vm0, %v83_v32  ;;  %v249_v31 = vadd.f32 %v1092_v10, %v1081_v7 }
  0xb8   :  { %v278_v35 = vpop.f32.mrf.mxu3 }
  0xb9   :  { %v1149_v37 = vpop.f32.mrf.mxu1  ;;  %v1152_v38 = vadd.f32 %v1092_v10, %v278_v35 }
  0xba   :  { %v242_v39 = vpop.f32.mrf.mxu0 }
  0xbb   :  { %410 = vmatmul.f32.gmra.mxu2 %v91_v36  ;;  %v243_v3 = vadd.f32 %v1092_v10, %v242_v39 }
  0xbd   :  { %345 = vmatmul.f32.gmra.mxu1 %v90_v40  ;;  %v269_v43 = vpop.f32.mrf.mxu2 }
  0xbe   :  { %475 = vmatmul.f32.gmra.mxu3 %v92_v41  ;;  %594 = vmatmul.msk.f32.gmra.mxu0 %vm170_vm0, %v88_v42  ;;  %v1165_v44 = vadd.f32 %v1092_v10, %v269_v43 }
  0xc1   :  { %v281_v45 = vpop.f32.mrf.mxu3 }
  0xc2   :  { %v1168_v46 = vadd.f32 %v1092_v10, %v281_v45  ;;  %v301_v47 = vpop.f32.mrf.mxu1  ;;  %v252_v45 = vadd.f32 %v1092_v10, %v1104_v16 }
  0xc3   :  { %v245_v49 = vpop.f32.mrf.mxu0  ;;  %v302_v51 = vadd.f32 %v301_v47, %v237_v48 }
  0xc4   :  { %v246_v18 = vadd.f32 %v1092_v10, %v245_v49 }
  0xc6   :  { %595 = vmatmul.msk.f32.gmra.mxu0 %vm170_vm0, %v93_v50  ;;  %v366_v52 = vpop.f32.mrf.mxu2 }
  0xc7   :  { %v367_v53 = vadd.f32 %v366_v52, %v302_v51 }
  0xc9   :  { %v431_v54 = vpop.f32.mrf.mxu3 }
  0xca   :  { %v304_v55 = vpop.f32.mrf.mxu1  ;;  %v432_v56 = vadd.f32 %v431_v54, %v367_v53 }
  0xcb   :  { %v496_v58 = vpop.f32.mrf.mxu0  ;;  %v305_v60 = vadd.f32 %v304_v55, %v240_v57  ;;  %v255_v55 = vadd.f32 %v1092_v10, %v1125_v26 }
  0xcc   :  { %v497_v59 = vadd.f32 %v496_v58, %v432_v56 }
  0xce   :  { %v544_v61 = vmax.f32 %v497_v59, 0.0  ;;  %v369_v62 = vpop.f32.mrf.mxu2 }
  0xcf   :  { %v370_v63 = vadd.f32 %v369_v62, %v305_v60 }
  0xd0   :  { %560 = vst.msk [vmem:[%s1261_s3] sm:$0xff] %vm170_vm0, %v544_v61 }
  0xd1   :  { %v434_v0 = vpop.f32.mrf.mxu3 }
  0xd2   :  { %v307_v1 = vpop.f32.mrf.mxu1  ;;  %v435_v2 = vadd.f32 %v434_v0, %v370_v63  ;;  %v258_v0 = vadd.f32 %v1092_v10, %v1149_v37 }
  0xd3   :  { %v499_v4 = vpop.f32.mrf.mxu0  ;;  %v308_v6 = vadd.f32 %v307_v1, %v243_v3 }
  0xd4   :  { %v500_v5 = vadd.f32 %v499_v4, %v435_v2 }
  0xd6   :  { %v545_v8 = vmax.f32 %v500_v5, 0.0  ;;  %v372_v9 = vpop.f32.mrf.mxu2 }
  0xd7   :  { %v373_v11 = vadd.f32 %v372_v9, %v308_v6 }
  0xd8   :  { %561 = vst.msk [vmem:[%s1261_s3 + $0x8] sm:$0xff] %vm170_vm0, %v545_v8 }
  0xd9   :  { %v437_v12 = vpop.f32.mrf.mxu3 }
  0xda   :  { %v310_v13 = vpop.f32.mrf.mxu1  ;;  %v438_v15 = vadd.f32 %v437_v12, %v373_v11 }
  0xdb   :  { %v502_v19 = vpop.f32.mrf.mxu0  ;;  %v311_v21 = vadd.f32 %v310_v13, %v246_v18 }
  0xdc   :  { %v503_v20 = vadd.f32 %v502_v19, %v438_v15 }
  0xde   :  { %v546_v22 = vmax.f32 %v503_v20, 0.0  ;;  %v375_v23 = vpop.f32.mrf.mxu2 }
  0xdf   :  { %v376_v25 = vadd.f32 %v375_v23, %v311_v21 }
  0xe0   :  { %562 = vst.msk [vmem:[%s1261_s3 + $0x10] sm:$0xff] %vm170_vm0, %v546_v22 }
  0xe1   :  { %v440_v28 = vpop.f32.mrf.mxu3 }
  0xe2   :  { %v313_v29 = vpop.f32.mrf.mxu1  ;;  %v441_v30 = vadd.f32 %v440_v28, %v376_v25 }
  0xe3   :  { %v505_v32 = vpop.f32.mrf.mxu0  ;;  %v314_v35 = vadd.f32 %v313_v29, %v249_v31 }
  0xe4   :  { %v506_v33 = vadd.f32 %v505_v32, %v441_v30 }
  0xe6   :  { %v547_v36 = vmax.f32 %v506_v33, 0.0  ;;  %v378_v39 = vpop.f32.mrf.mxu2 }
  0xe7   :  { %v379_v40 = vadd.f32 %v378_v39, %v314_v35 }
  0xe8   :  { %563 = vst.msk [vmem:[%s1261_s3 + $0x18] sm:$0xff] %vm170_vm0, %v547_v36 }
  0xe9   :  { %v443_v41 = vpop.f32.mrf.mxu3 }
  0xea   :  { %v316_v42 = vpop.f32.mrf.mxu1  ;;  %v444_v43 = vadd.f32 %v443_v41, %v379_v40 }
  0xeb   :  { %v508_v47 = vpop.f32.mrf.mxu0  ;;  %v317_v7 = vadd.f32 %v316_v42, %v252_v45 }
  0xec   :  { %v509_v48 = vadd.f32 %v508_v47, %v444_v43 }
  0xee   :  { %v548_v49 = vmax.f32 %v509_v48, 0.0  ;;  %v381_v50 = vpop.f32.mrf.mxu2 }
  0xef   :  { %v382_v51 = vadd.f32 %v381_v50, %v317_v7 }
  0xf0   :  { %564 = vst.msk [vmem:[%s1261_s3 + $0x20] sm:$0xff] %vm170_vm0, %v548_v49 }
  0xf1   :  { %v446_v52 = vpop.f32.mrf.mxu3 }
  0xf2   :  { %v319_v53 = vpop.f32.mrf.mxu1  ;;  %v447_v54 = vadd.f32 %v446_v52, %v382_v51 }
  0xf3   :  { %v511_v56 = vpop.f32.mrf.mxu0  ;;  %v320_v16 = vadd.f32 %v319_v53, %v255_v55 }
  0xf4   :  { %v512_v57 = vadd.f32 %v511_v56, %v447_v54 }
  0xf6   :  { %v549_v58 = vmax.f32 %v512_v57, 0.0  ;;  %v384_v59 = vpop.f32.mrf.mxu2 }
  0xf7   :  { %v385_v60 = vadd.f32 %v384_v59, %v320_v16 }
  0xf8   :  { %565 = vst.msk [vmem:[%s1261_s3 + $0x28] sm:$0xff] %vm170_vm0, %v549_v58 }
  0xf9   :  { %v449_v61 = vpop.f32.mrf.mxu3 }
  0xfa   :  { %v322_v62 = vpop.f32.mrf.mxu1  ;;  %v450_v63 = vadd.f32 %v449_v61, %v385_v60 }
  0xfb   :  { %v514_v1 = vpop.f32.mrf.mxu0  ;;  %v323_v26 = vadd.f32 %v322_v62, %v258_v0 }
  0xfc   :  { %v515_v2 = vadd.f32 %v514_v1, %v450_v63 }
  0xfe   :  { %v550_v3 = vmax.f32 %v515_v2, 0.0  ;;  %v387_v4 = vpop.f32.mrf.mxu2 }
  0xff   :  { %v388_v5 = vadd.f32 %v387_v4, %v323_v26 }
 0x100   :  { %566 = vst.msk [vmem:[%s1261_s3 + $0x30] sm:$0xff] %vm170_vm0, %v550_v3 }
 0x101   :  { %v452_v6 = vpop.f32.mrf.mxu3 }
 0x102   :  { %v325_v8 = vpop.f32.mrf.mxu1  ;;  %v453_v9 = vadd.f32 %v452_v6, %v388_v5 }
 0x103   :  { %v517_v11 = vpop.f32.mrf.mxu0  ;;  %v326_v13 = vadd.f32 %v325_v8, %v1101_v14 }
 0x104   :  { %v518_v12 = vadd.f32 %v517_v11, %v453_v9 }
 0x106   :  { %v551_v15 = vmax.f32 %v518_v12, 0.0  ;;  %v390_v10 = vpop.f32.mrf.mxu2 }
 0x107   :  { %v391_v37 = vadd.f32 %v390_v10, %v326_v13 }
 0x108   :  { %567 = vst.msk [vmem:[%s1261_s3 + $0x38] sm:$0xff] %vm170_vm0, %v551_v15 }
 0x109   :  { %v455_v18 = vpop.f32.mrf.mxu3 }
 0x10a   :  { %v328_v19 = vpop.f32.mrf.mxu1  ;;  %v456_v20 = vadd.f32 %v455_v18, %v391_v37 }
 0x10b   :  { %v520_v21 = vpop.f32.mrf.mxu0  ;;  %v329_v23 = vadd.f32 %v328_v19, %v1122_v24 }
 0x10c   :  { %v521_v22 = vadd.f32 %v520_v21, %v456_v20 }
 0x10e   :  { %v552_v25 = vmax.f32 %v521_v22, 0.0  ;;  %v393_v28 = vpop.f32.mrf.mxu2 }
 0x10f   :  { %v394_v29 = vadd.f32 %v393_v28, %v329_v23 }
 0x110   :  { %568 = vst.msk [vmem:[%s1261_s3 + $0x40] sm:$0xff] %vm170_vm0, %v552_v25 }
 0x111   :  { %v458_v14 = vpop.f32.mrf.mxu3 }
 0x112   :  { %v331_v30 = vpop.f32.mrf.mxu1  ;;  %v459_v31 = vadd.f32 %v458_v14, %v394_v29 }
 0x113   :  { %v523_v32 = vpop.f32.mrf.mxu0  ;;  %v332_v35 = vadd.f32 %v331_v30, %v1143_v34 }
 0x114   :  { %v524_v33 = vadd.f32 %v523_v32, %v459_v31 }
 0x116   :  { %v553_v36 = vmax.f32 %v524_v33, 0.0  ;;  %v396_v39 = vpop.f32.mrf.mxu2 }
 0x117   :  { %v397_v40 = vadd.f32 %v396_v39, %v332_v35 }
 0x118   :  { %569 = vst.msk [vmem:[%s1261_s3 + $0x48] sm:$0xff] %vm170_vm0, %v553_v36 }
 0x119   :  { %v461_v24 = vpop.f32.mrf.mxu3 }
 0x11a   :  { %v334_v41 = vpop.f32.mrf.mxu1  ;;  %v462_v42 = vadd.f32 %v461_v24, %v397_v40 }
 0x11b   :  { %v526_v43 = vpop.f32.mrf.mxu0  ;;  %v335_v47 = vadd.f32 %v334_v41, %v1165_v44 }
 0x11c   :  { %v527_v45 = vadd.f32 %v526_v43, %v462_v42 }
 0x11e   :  { %v554_v48 = vmax.f32 %v527_v45, 0.0  ;;  %v399_v7 = vpop.f32.mrf.mxu2 }
 0x11f   :  { %v400_v49 = vadd.f32 %v399_v7, %v335_v47 }
 0x120   :  { %570 = vst.msk [vmem:[%s1261_s3 + $0x50] sm:$0xff] %vm170_vm0, %v554_v48 }
 0x121   :  { %v464_v34 = vpop.f32.mrf.mxu3 }
 0x122   :  { %v337_v50 = vpop.f32.mrf.mxu1  ;;  %v465_v51 = vadd.f32 %v464_v34, %v400_v49 }
 0x123   :  { %v529_v52 = vpop.f32.mrf.mxu0  ;;  %v338_v54 = vadd.f32 %v337_v50, %v1107_v17 }
 0x124   :  { %v530_v53 = vadd.f32 %v529_v52, %v465_v51 }
 0x126   :  { %v555_v55 = vmax.f32 %v530_v53, 0.0  ;;  %v402_v56 = vpop.f32.mrf.mxu2 }
 0x127   :  { %v403_v57 = vadd.f32 %v402_v56, %v338_v54 }
 0x128   :  { %571 = vst.msk [vmem:[%s1261_s3 + $0x58] sm:$0xff] %vm170_vm0, %v555_v55 }
 0x129   :  { %v467_v44 = vpop.f32.mrf.mxu3 }
 0x12a   :  { %v340_v16 = vpop.f32.mrf.mxu1  ;;  %v468_v58 = vadd.f32 %v467_v44, %v403_v57 }
 0x12b   :  { %v532_v59 = vpop.f32.mrf.mxu0  ;;  %v341_v61 = vadd.f32 %v340_v16, %v1128_v27 }
 0x12c   :  { %v533_v60 = vadd.f32 %v532_v59, %v468_v58 }
 0x12e   :  { %v556_v62 = vmax.f32 %v533_v60, 0.0  ;;  %v405_v63 = vpop.f32.mrf.mxu2 }
 0x12f   :  { %v406_v0 = vadd.f32 %v405_v63, %v341_v61 }
 0x130   :  { %572 = vst.msk [vmem:[%s1261_s3 + $0x60] sm:$0xff] %vm170_vm0, %v556_v62 }
 0x131   :  { %v470_v17 = vpop.f32.mrf.mxu3 }
 0x132   :  { %v343_v1 = vpop.f32.mrf.mxu1  ;;  %v471_v2 = vadd.f32 %v470_v17, %v406_v0 }
 0x133   :  { %v535_v26 = vpop.f32.mrf.mxu0  ;;  %v344_v4 = vadd.f32 %v343_v1, %v1152_v38 }
 0x134   :  { %v536_v3 = vadd.f32 %v535_v26, %v471_v2 }
 0x136   :  { %v557_v5 = vmax.f32 %v536_v3, 0.0  ;;  %v408_v6 = vpop.f32.mrf.mxu2 }
 0x137   :  { %v409_v8 = vadd.f32 %v408_v6, %v344_v4 }
 0x138   :  { %573 = vst.msk [vmem:[%s1261_s3 + $0x68] sm:$0xff] %vm170_vm0, %v557_v5 }
 0x139   :  { %v473_v27 = vpop.f32.mrf.mxu3 }
 0x13a   :  { %v346_v9 = vpop.f32.mrf.mxu1  ;;  %v474_v11 = vadd.f32 %v473_v27, %v409_v8 }
 0x13b   :  { %v538_v12 = vpop.f32.mrf.mxu0  ;;  %v347_v15 = vadd.f32 %v346_v9, %v1168_v46 }
 0x13c   :  { %v539_v13 = vadd.f32 %v538_v12, %v474_v11 }
 0x13e   :  { %v558_v10 = vmax.f32 %v539_v13, 0.0  ;;  %v411_v37 = vpop.f32.mrf.mxu2 }
 0x13f   :  { %v412_v18 = vadd.f32 %v411_v37, %v347_v15 }
 0x140   :  { %574 = vst.msk [vmem:[%s1261_s3 + $0x70] sm:$0xff] %vm170_vm0, %v558_v10 }
 0x141   :  { %v476_v38 = vpop.f32.mrf.mxu3 }
 0x142   :  { %v477_v19 = vadd.f32 %v476_v38, %v412_v18 }
 0x143   :  { %v541_v20 = vpop.f32.mrf.mxu0 }
 0x144   :  { %v542_v21 = vadd.f32 %v541_v20, %v477_v19 }
 0x146   :  { %v559_v22 = vmax.f32 %v542_v21, 0.0 }
 0x148   :  { %575 = vst.msk [vmem:[%s1261_s3 + $0x78] sm:$0xff] %vm170_vm0, %v559_v22 }

// kernel: oct_net_forward.11
= control target key start
LH: loop header
LB: loop body
LE: loop exit
PB: predicated region body
PF: predicated region fallthrough
CT: control target
= control target key end

     0   :  { %s1010_s0 = inlined_call_operand.vmem [shape: f32[2,1024], index: 0, kind: input, shape index: {}]   ;;  %s1011_s1 = inlined_call_operand.vmem [shape: f32[1024,128], index: 1, kind: input, shape index: {}]   ;;  %s1012_s2 = inlined_call_operand.vmem [shape: f32[1,128], index: 2, kind: input, shape index: {}]   ;;  %s1013_s3 = inlined_call_operand.vmem [shape: f32[128,128], index: 3, kind: input, shape index: {}]   ;;  %s1014_s4 = inlined_call_operand.vmem [shape: f32[1,128], index: 4, kind: input, shape index: {}]   ;;  %s1015_s5 = inlined_call_operand.vmem [shape: f32[128,128], index: 5, kind: input, shape index: {}]   ;;  %s1016_s6 = inlined_call_operand.vmem [shape: f32[1,128], index: 6, kind: input, shape index: {}]   ;;  %s1017_s7 = inlined_call_operand.hbm [shape: f32[2,128], index: 7, kind: output, shape index: {}]  }
   0x1   :  { %v76_v0 = vld [vmem:[%s1011_s1 + $0x178] sm:$0xff]  ;;  %v75_v2 = vld [vmem:[%s1011_s1 + $0x170] sm:$0xff]  ;;  %v74_v6 = vld [vmem:[%s1011_s1 + $0x168] sm:$0xff] }
   0x2   :  { %v44_v1 = vld [vmem:[%s1011_s1 + $0x78] sm:$0xff]  ;;  %222 = vmatpush.msra.mxu2 %v76_v0  ;;  %v43_v4 = vld [vmem:[%s1011_s1 + $0x70] sm:$0xff]  ;;  %v42_v8 = vld [vmem:[%s1011_s1 + $0x68] sm:$0xff] }
   0x3   :  { %182 = vmatpush.msra.mxu0 %v44_v1  ;;  %v92_v3 = vld [vmem:[%s1011_s1 + $0x1f8] sm:$0xff]  ;;  %v91_v7 = vld [vmem:[%s1011_s1 + $0x1f0] sm:$0xff]  ;;  %v90_v10 = vld [vmem:[%s1011_s1 + $0x1e8] sm:$0xff] }
   0x4   :  { %v60_v5 = vld [vmem:[%s1011_s1 + $0xf8] sm:$0xff]  ;;  %242 = vmatpush.msra.mxu3 %v92_v3  ;;  %223 = vmatpush.msra.mxu2 %v75_v2  ;;  %v59_v9 = vld [vmem:[%s1011_s1 + $0xf0] sm:$0xff]  ;;  %v73_v11 = vld [vmem:[%s1011_s1 + $0x160] sm:$0xff] }
   0x5   :  { %202 = vmatpush.msra.mxu1 %v60_v5  ;;  %183 = vmatpush.msra.mxu0 %v43_v4  ;;  %v41_v12 = vld [vmem:[%s1011_s1 + $0x60] sm:$0xff]  ;;  %v58_v13 = vld [vmem:[%s1011_s1 + $0xe8] sm:$0xff]  ;;  %v72_v16 = vld [vmem:[%s1011_s1 + $0x158] sm:$0xff] }
   0x6   :  { %243 = vmatpush.msra.mxu3 %v91_v7  ;;  %224 = vmatpush.msra.mxu2 %v74_v6  ;;  %v89_v14 = vld [vmem:[%s1011_s1 + $0x1e0] sm:$0xff]  ;;  %v40_v17 = vld [vmem:[%s1011_s1 + $0x58] sm:$0xff]  ;;  %v71_v20 = vld [vmem:[%s1011_s1 + $0x150] sm:$0xff] }
   0x7   :  { %203 = vmatpush.msra.mxu1 %v59_v9  ;;  %184 = vmatpush.msra.mxu0 %v42_v8  ;;  %v57_v15 = vld [vmem:[%s1011_s1 + $0xe0] sm:$0xff]  ;;  %v88_v18 = vld [vmem:[%s1011_s1 + $0x1d8] sm:$0xff]  ;;  %v39_v21 = vld [vmem:[%s1011_s1 + $0x50] sm:$0xff] }
   0x8   :  { %244 = vmatpush.msra.mxu3 %v90_v10  ;;  %225 = vmatpush.msra.mxu2 %v73_v11  ;;  %v56_v19 = vld [vmem:[%s1011_s1 + $0xd8] sm:$0xff]  ;;  %v87_v22 = vld [vmem:[%s1011_s1 + $0x1d0] sm:$0xff]  ;;  %v70_v24 = vld [vmem:[%s1011_s1 + $0x148] sm:$0xff] }
   0x9   :  { %204 = vmatpush.msra.mxu1 %v58_v13  ;;  %185 = vmatpush.msra.mxu0 %v41_v12  ;;  %v55_v23 = vld [vmem:[%s1011_s1 + $0xd0] sm:$0xff]  ;;  %v38_v25 = vld [vmem:[%s1011_s1 + $0x48] sm:$0xff]  ;;  %v69_v28 = vld [vmem:[%s1011_s1 + $0x140] sm:$0xff] }
   0xa   :  { %245 = vmatpush.msra.mxu3 %v89_v14  ;;  %226 = vmatpush.msra.mxu2 %v72_v16  ;;  %v86_v26 = vld [vmem:[%s1011_s1 + $0x1c8] sm:$0xff]  ;;  %v37_v29 = vld [vmem:[%s1011_s1 + $0x40] sm:$0xff]  ;;  %v68_v32 = vld [vmem:[%s1011_s1 + $0x138] sm:$0xff] }
   0xb   :  { %205 = vmatpush.msra.mxu1 %v57_v15  ;;  %186 = vmatpush.msra.mxu0 %v40_v17  ;;  %v54_v27 = vld [vmem:[%s1011_s1 + $0xc8] sm:$0xff]  ;;  %v85_v30 = vld [vmem:[%s1011_s1 + $0x1c0] sm:$0xff]  ;;  %v36_v33 = vld [vmem:[%s1011_s1 + $0x38] sm:$0xff] }
   0xc   :  { %246 = vmatpush.msra.mxu3 %v88_v18  ;;  %227 = vmatpush.msra.mxu2 %v71_v20  ;;  %v53_v31 = vld [vmem:[%s1011_s1 + $0xc0] sm:$0xff]  ;;  %v84_v34 = vld [vmem:[%s1011_s1 + $0x1b8] sm:$0xff]  ;;  %v67_v36 = vld [vmem:[%s1011_s1 + $0x130] sm:$0xff] }
   0xd   :  { %206 = vmatpush.msra.mxu1 %v56_v19  ;;  %187 = vmatpush.msra.mxu0 %v39_v21  ;;  %v52_v35 = vld [vmem:[%s1011_s1 + $0xb8] sm:$0xff]  ;;  %v35_v37 = vld [vmem:[%s1011_s1 + $0x30] sm:$0xff]  ;;  %v66_v40 = vld [vmem:[%s1011_s1 + $0x128] sm:$0xff] }
   0xe   :  { %247 = vmatpush.msra.mxu3 %v87_v22  ;;  %228 = vmatpush.msra.mxu2 %v70_v24  ;;  %v83_v38 = vld [vmem:[%s1011_s1 + $0x1b0] sm:$0xff]  ;;  %v34_v41 = vld [vmem:[%s1011_s1 + $0x28] sm:$0xff]  ;;  %v65_v44 = vld [vmem:[%s1011_s1 + $0x120] sm:$0xff] }
   0xf   :  { %207 = vmatpush.msra.mxu1 %v55_v23  ;;  %188 = vmatpush.msra.mxu0 %v38_v25  ;;  %v51_v39 = vld [vmem:[%s1011_s1 + $0xb0] sm:$0xff]  ;;  %v82_v42 = vld [vmem:[%s1011_s1 + $0x1a8] sm:$0xff]  ;;  %v33_v45 = vld [vmem:[%s1011_s1 + $0x20] sm:$0xff] }
  0x10   :  { %248 = vmatpush.msra.mxu3 %v86_v26  ;;  %229 = vmatpush.msra.mxu2 %v69_v28  ;;  %v50_v43 = vld [vmem:[%s1011_s1 + $0xa8] sm:$0xff]  ;;  %v81_v46 = vld [vmem:[%s1011_s1 + $0x1a0] sm:$0xff]  ;;  %v64_v48 = vld [vmem:[%s1011_s1 + $0x118] sm:$0xff] }
  0x11   :  { %208 = vmatpush.msra.mxu1 %v54_v27  ;;  %189 = vmatpush.msra.mxu0 %v37_v29  ;;  %v49_v47 = vld [vmem:[%s1011_s1 + $0xa0] sm:$0xff]  ;;  %v32_v49 = vld [vmem:[%s1011_s1 + $0x18] sm:$0xff]  ;;  %v63_v52 = vld [vmem:[%s1011_s1 + $0x110] sm:$0xff] }
  0x12   :  { %249 = vmatpush.msra.mxu3 %v85_v30  ;;  %230 = vmatpush.msra.mxu2 %v68_v32  ;;  %v80_v50 = vld [vmem:[%s1011_s1 + $0x198] sm:$0xff]  ;;  %v31_v53 = vld [vmem:[%s1011_s1 + $0x10] sm:$0xff]  ;;  %v62_v56 = vld [vmem:[%s1011_s1 + $0x108] sm:$0xff] }
  0x13   :  { %209 = vmatpush.msra.mxu1 %v53_v31  ;;  %190 = vmatpush.msra.mxu0 %v36_v33  ;;  %v48_v51 = vld [vmem:[%s1011_s1 + $0x98] sm:$0xff]  ;;  %v79_v54 = vld [vmem:[%s1011_s1 + $0x190] sm:$0xff]  ;;  %v30_v57 = vld [vmem:[%s1011_s1 + $0x8] sm:$0xff] }
  0x14   :  { %250 = vmatpush.msra.mxu3 %v84_v34  ;;  %231 = vmatpush.msra.mxu2 %v67_v36  ;;  %v47_v55 = vld [vmem:[%s1011_s1 + $0x90] sm:$0xff]  ;;  %v78_v58 = vld [vmem:[%s1011_s1 + $0x188] sm:$0xff]  ;;  %v61_v60 = vld [vmem:[%s1011_s1 + $0x100] sm:$0xff] }
  0x15   :  { %210 = vmatpush.msra.mxu1 %v52_v35  ;;  %191 = vmatpush.msra.mxu0 %v35_v37  ;;  %v46_v59 = vld [vmem:[%s1011_s1 + $0x88] sm:$0xff]  ;;  %v29_v61 = vld [vmem:[%s1011_s1] sm:$0xff]  ;;  %v140_v62 = vld [vmem:[%s1011_s1 + $0x378] sm:$0xff] }
  0x16   :  { %251 = vmatpush.msra.mxu3 %v83_v38  ;;  %232 = vmatpush.msra.mxu2 %v66_v40  ;;  %v77_v63 = vld [vmem:[%s1011_s1 + $0x180] sm:$0xff]  ;;  %v108_v0 = vld [vmem:[%s1011_s1 + $0x278] sm:$0xff]  ;;  %v139_v2 = vld [vmem:[%s1011_s1 + $0x370] sm:$0xff] }
  0x17   :  { %211 = vmatpush.msra.mxu1 %v51_v39  ;;  %192 = vmatpush.msra.mxu0 %v34_v41  ;;  %v156_v1 = vld [vmem:[%s1011_s1 + $0x3f8] sm:$0xff]  ;;  %v45_v3 = vld [vmem:[%s1011_s1 + $0x80] sm:$0xff]  ;;  %v107_v4 = vld [vmem:[%s1011_s1 + $0x270] sm:$0xff] }
  0x18   :  { %252 = vmatpush.msra.mxu3 %v82_v42  ;;  %233 = vmatpush.msra.mxu2 %v65_v44  ;;  %v124_v5 = vld [vmem:[%s1011_s1 + $0x2f8] sm:$0xff]  ;;  %v138_v6 = vld [vmem:[%s1011_s1 + $0x368] sm:$0xff]  ;;  %v155_v7 = vld [vmem:[%s1011_s1 + $0x3f0] sm:$0xff] }
  0x19   :  { %212 = vmatpush.msra.mxu1 %v50_v43  ;;  %193 = vmatpush.msra.mxu0 %v33_v45  ;;  %v106_v8 = vld [vmem:[%s1011_s1 + $0x268] sm:$0xff]  ;;  %v123_v9 = vld [vmem:[%s1011_s1 + $0x2f0] sm:$0xff]  ;;  %v137_v10 = vld [vmem:[%s1011_s1 + $0x360] sm:$0xff] }
  0x1a   :  { %253 = vmatpush.msra.mxu3 %v81_v46  ;;  %234 = vmatpush.msra.mxu2 %v64_v48  ;;  %v154_v11 = vld [vmem:[%s1011_s1 + $0x3e8] sm:$0xff]  ;;  %v105_v12 = vld [vmem:[%s1011_s1 + $0x260] sm:$0xff]  ;;  %v136_v15 = vld [vmem:[%s1011_s1 + $0x358] sm:$0xff] }
  0x1b   :  { %213 = vmatpush.msra.mxu1 %v49_v47  ;;  %194 = vmatpush.msra.mxu0 %v32_v49  ;;  %v122_v13 = vld [vmem:[%s1011_s1 + $0x2e8] sm:$0xff]  ;;  %v27_v14 = vld [vmem:[%s1010_s0] sm:$0xff]  ;;  %v104_v17 = vld [vmem:[%s1011_s1 + $0x258] sm:$0xff] }
  0x1c   :  { %254 = vmatpush.msra.mxu3 %v80_v50  ;;  %235 = vmatpush.msra.mxu2 %v63_v52  ;;  %v153_v16 = vld [vmem:[%s1011_s1 + $0x3e0] sm:$0xff]  ;;  %163 = vst [vmem:[#allocation1] ss:$4 sm:$0xff] %v27_v14  ;;  %v135_v19 = vld [vmem:[%s1011_s1 + $0x350] sm:$0xff]  ;;  %v152_v20 = vld [vmem:[%s1011_s1 + $0x3d8] sm:$0xff] }
  0x1d   :  { %214 = vmatpush.msra.mxu1 %v48_v51  ;;  %195 = vmatpush.msra.mxu0 %v31_v53  ;;  %v121_v18 = vld [vmem:[%s1011_s1 + $0x2e0] sm:$0xff]  ;;  %v103_v21 = vld [vmem:[%s1011_s1 + $0x250] sm:$0xff]  ;;  %v120_v22 = vld [vmem:[%s1011_s1 + $0x2d8] sm:$0xff] }
  0x1e   :  { %255 = vmatpush.msra.mxu3 %v79_v54  ;;  %236 = vmatpush.msra.mxu2 %v62_v56  ;;  %v134_v23 = vld [vmem:[%s1011_s1 + $0x348] sm:$0xff]  ;;  %v151_v24 = vld [vmem:[%s1011_s1 + $0x3d0] sm:$0xff]  ;;  %v133_v28 = vld [vmem:[%s1011_s1 + $0x340] sm:$0xff] }
  0x1f   :  { %215 = vmatpush.msra.mxu1 %v47_v55  ;;  %196 = vmatpush.msra.mxu0 %v30_v57  ;;  %v28_v25 = vld [vmem:[%s1010_s0 + $0x8] sm:$0xff]  ;;  %v119_v27 = vld [vmem:[%s1011_s1 + $0x2d0] sm:$0xff]  ;;  %v101_v30 = vld [vmem:[%s1011_s1 + $0x240] sm:$0xff] }
  0x20   :  { %256 = vmatpush.msra.mxu3 %v78_v58  ;;  %237 = vmatpush.msra.mxu2 %v61_v60  ;;  %v102_v26 = vld [vmem:[%s1011_s1 + $0x248] sm:$0xff]  ;;  %165 = vst [vmem:[#allocation1 + $0x20] ss:$4 sm:$0xff] %v28_v25  ;;  %v132_v32 = vld [vmem:[%s1011_s1 + $0x338] sm:$0xff]  ;;  %v149_v33 = vld [vmem:[%s1011_s1 + $0x3c0] sm:$0xff] }
  0x21   :  { %216 = vmatpush.msra.mxu1 %v46_v59  ;;  %197 = vmatpush.msra.mxu0 %v29_v61  ;;  %v150_v29 = vld [vmem:[%s1011_s1 + $0x3c8] sm:$0xff]  ;;  %v100_v34 = vld [vmem:[%s1011_s1 + $0x238] sm:$0xff]  ;;  %v117_v35 = vld [vmem:[%s1011_s1 + $0x2c0] sm:$0xff] }
  0x22   :  { %302 = vmatpush.msrb.mxu2 %v140_v62  ;;  %257 = vmatpush.msra.mxu3 %v77_v63  ;;  %v118_v31 = vld [vmem:[%s1011_s1 + $0x2c8] sm:$0xff]  ;;  %v131_v36 = vld [vmem:[%s1011_s1 + $0x330] sm:$0xff]  ;;  %v148_v37 = vld [vmem:[%s1011_s1 + $0x3b8] sm:$0xff] }
  0x23   :  { %262 = vmatpush.msrb.mxu0 %v108_v0  ;;  %217 = vmatpush.msra.mxu1 %v45_v3  ;;  %v99_v38 = vld [vmem:[%s1011_s1 + $0x230] sm:$0xff]  ;;  %v116_v39 = vld [vmem:[%s1011_s1 + $0x2b8] sm:$0xff] }
  0x24   :  { %322 = vmatpush.msrb.mxu3 %v156_v1  ;;  %303 = vmatpush.msrb.mxu2 %v139_v2 }
  0x25   :  { %263 = vmatpush.msrb.mxu0 %v107_v4  ;;  %282 = vmatpush.msrb.mxu1 %v124_v5 }
  0x26   :  { %304 = vmatpush.msrb.mxu2 %v138_v6  ;;  %323 = vmatpush.msrb.mxu3 %v155_v7 }
  0x27   :  { %264 = vmatpush.msrb.mxu0 %v106_v8  ;;  %283 = vmatpush.msrb.mxu1 %v123_v9 }
  0x28   :  { %305 = vmatpush.msrb.mxu2 %v137_v10  ;;  %324 = vmatpush.msrb.mxu3 %v154_v11 }
  0x29   :  { %265 = vmatpush.msrb.mxu0 %v105_v12  ;;  %284 = vmatpush.msrb.mxu1 %v122_v13 }
  0x2a   :  { %306 = vmatpush.msrb.mxu2 %v136_v15  ;;  %325 = vmatpush.msrb.mxu3 %v153_v16 }
  0x2b   :  { %266 = vmatpush.msrb.mxu0 %v104_v17  ;;  %285 = vmatpush.msrb.mxu1 %v121_v18 }
  0x2c   :  { %307 = vmatpush.msrb.mxu2 %v135_v19  ;;  %326 = vmatpush.msrb.mxu3 %v152_v20 }
  0x2d   :  { %267 = vmatpush.msrb.mxu0 %v103_v21  ;;  %286 = vmatpush.msrb.mxu1 %v120_v22 }
  0x2e   :  { %308 = vmatpush.msrb.mxu2 %v134_v23  ;;  %327 = vmatpush.msrb.mxu3 %v151_v24 }
  0x2f   :  { %268 = vmatpush.msrb.mxu0 %v102_v26  ;;  %287 = vmatpush.msrb.mxu1 %v119_v27 }
  0x30   :  { %309 = vmatpush.msrb.mxu2 %v133_v28  ;;  %328 = vmatpush.msrb.mxu3 %v150_v29 }
  0x31   :  { %269 = vmatpush.msrb.mxu0 %v101_v30  ;;  %288 = vmatpush.msrb.mxu1 %v118_v31 }
  0x32   :  { %310 = vmatpush.msrb.mxu2 %v132_v32  ;;  %329 = vmatpush.msrb.mxu3 %v149_v33 }
  0x33   :  { %12 = vsyncpa [#allocation3], 0  ;;  %270 = vmatpush.msrb.mxu0 %v100_v34  ;;  %289 = vmatpush.msrb.mxu1 %v117_v35  ;;  %v130_v40 = vld [vmem:[%s1011_s1 + $0x328] sm:$0xff]  ;;  %v147_v41 = vld [vmem:[%s1011_s1 + $0x3b0] sm:$0xff]  ;;  %s471_s20 = smov [#allocation2]   ;;  %s432_s24 = sshll.u32 %s1017_s7, 4  ;;  %s433_s24 = int_to_ptr.hbm [resolvable:$true] %s432_s24 }
  0x34   :  { %311 = vmatpush.msrb.mxu2 %v131_v36  ;;  %330 = vmatpush.msrb.mxu3 %v148_v37  ;;  %v98_v42 = vld [vmem:[%s1011_s1 + $0x228] sm:$0xff]  ;;  %v115_v43 = vld [vmem:[%s1011_s1 + $0x2b0] sm:$0xff]  ;;  %v129_v44 = vld [vmem:[%s1011_s1 + $0x320] sm:$0xff]  ;;  %s430_s21 = sshll.u32 %s471_s20, 4  ;;  %s431_s21 = int_to_ptr.vmem [resolvable:$true] %s430_s21 }
  0x35   :  { %271 = vmatpush.msrb.mxu0 %v99_v38  ;;  %290 = vmatpush.msrb.mxu1 %v116_v39  ;;  %v146_v45 = vld [vmem:[%s1011_s1 + $0x3a8] sm:$0xff]  ;;  %v168_v46 = vld.sshfl [vmem:[#allocation1 + $0x10] sm:$0xff pattern:$0x73625140]  ;;  %v97_v47 = vld [vmem:[%s1011_s1 + $0x220] sm:$0xff] }
  0x36   :  { %312 = vmatpush.msrb.mxu2 %v130_v40  ;;  %331 = vmatpush.msrb.mxu3 %v147_v41  ;;  %v114_v48 = vld [vmem:[%s1011_s1 + $0x2a8] sm:$0xff]  ;;  %v128_v49 = vld [vmem:[%s1011_s1 + $0x318] sm:$0xff]  ;;  %v145_v50 = vld [vmem:[%s1011_s1 + $0x3a0] sm:$0xff] }
  0x37   :  { %272 = vmatpush.msrb.mxu0 %v98_v42  ;;  %291 = vmatpush.msrb.mxu1 %v115_v43  ;;  %v166_v51 = vld.sshfl [vmem:[#allocation1] sm:$0xff pattern:$0x73625140]  ;;  %v169_v52 = vld.sshfl [vmem:[#allocation1 + $0x18] sm:$0xff pattern:$0x73625140] }
  0x38   :  { %313 = vmatpush.msrb.mxu2 %v129_v44  ;;  %332 = vmatpush.msrb.mxu3 %v146_v45  ;;  %v96_v53 = vld [vmem:[%s1011_s1 + $0x218] sm:$0xff]  ;;  %v113_v54 = vld [vmem:[%s1011_s1 + $0x2a0] sm:$0xff]  ;;  %v127_v55 = vld [vmem:[%s1011_s1 + $0x310] sm:$0xff] }
  0x39   :  { %238 = vmatmul.f32.vlgmr.msra.gmra.mxu2 %v168_v46  ;;  %273 = vmatpush.msrb.mxu0 %v97_v47  ;;  %v144_v56 = vld [vmem:[%s1011_s1 + $0x398] sm:$0xff]  ;;  %v167_v57 = vld.sshfl [vmem:[#allocation1 + $0x8] sm:$0xff pattern:$0x73625140]  ;;  %v95_v58 = vld [vmem:[%s1011_s1 + $0x210] sm:$0xff] }
  0x3a   :  { %292 = vmatpush.msrb.mxu1 %v114_v48  ;;  %314 = vmatpush.msrb.mxu2 %v128_v49  ;;  %v112_v59 = vld [vmem:[%s1011_s1 + $0x298] sm:$0xff]  ;;  %v126_v60 = vld [vmem:[%s1011_s1 + $0x308] sm:$0xff]  ;;  %v143_v61 = vld [vmem:[%s1011_s1 + $0x390] sm:$0xff] }
  0x3b   :  { %333 = vmatpush.msrb.mxu3 %v145_v50  ;;  %198 = vmatmul.f32.vlgmr.msra.gmra.mxu0 %v166_v51  ;;  %v94_v62 = vld [vmem:[%s1011_s1 + $0x208] sm:$0xff]  ;;  %v111_v63 = vld [vmem:[%s1011_s1 + $0x290] sm:$0xff]  ;;  %v125_v0 = vld [vmem:[%s1011_s1 + $0x300] sm:$0xff] }
  0x3c   :  { %258 = vmatmul.f32.vlgmr.msra.gmra.mxu3 %v169_v52  ;;  %274 = vmatpush.msrb.mxu0 %v96_v53  ;;  %v142_v1 = vld [vmem:[%s1011_s1 + $0x388] sm:$0xff]  ;;  %v172_v2 = vld.sshfl [vmem:[#allocation1 + $0x30] sm:$0xff pattern:$0x73625140]  ;;  %v93_v3 = vld [vmem:[%s1011_s1 + $0x200] sm:$0xff] }
  0x3d   :  { %293 = vmatpush.msrb.mxu1 %v113_v54  ;;  %315 = vmatpush.msrb.mxu2 %v127_v55  ;;  %v110_v4 = vld [vmem:[%s1011_s1 + $0x288] sm:$0xff]  ;;  %v141_v5 = vld [vmem:[%s1011_s1 + $0x380] sm:$0xff]  ;;  %v173_v7 = vld.sshfl [vmem:[#allocation1 + $0x38] sm:$0xff pattern:$0x73625140] }
  0x3e   :  { %334 = vmatpush.msrb.mxu3 %v144_v56  ;;  %218 = vmatmul.f32.vlgmr.msra.gmra.mxu1 %v167_v57  ;;  %v170_v6 = vld.sshfl [vmem:[#allocation1 + $0x20] sm:$0xff pattern:$0x73625140]  ;;  %v358_v9 = vld [vmem:[%s1013_s3 + $0x78] sm:$0xff]  ;;  %v357_v11 = vld [vmem:[%s1013_s3 + $0x70] sm:$0xff] }
  0x3f   :  { %275 = vmatpush.msrb.mxu0 %v95_v58  ;;  %294 = vmatpush.msrb.mxu1 %v112_v59  ;;  %v109_v8 = vld [vmem:[%s1011_s1 + $0x280] sm:$0xff]  ;;  %v171_v10 = vld.sshfl [vmem:[#allocation1 + $0x28] sm:$0xff pattern:$0x73625140]  ;;  %v354_v14 = vld [vmem:[%s1013_s3 + $0x58] sm:$0xff] }
  0x40   :  { %316 = vmatpush.msrb.mxu2 %v126_v60  ;;  %335 = vmatpush.msrb.mxu3 %v143_v61  ;;  %v356_v12 = vld [vmem:[%s1013_s3 + $0x68] sm:$0xff]  ;;  %v355_v13 = vld [vmem:[%s1013_s3 + $0x60] sm:$0xff]  ;;  %v353_v15 = vld [vmem:[%s1013_s3 + $0x50] sm:$0xff] }
  0x41   :  { %276 = vmatpush.msrb.mxu0 %v94_v62  ;;  %295 = vmatpush.msrb.mxu1 %v111_v63  ;;  %v352_v16 = vld [vmem:[%s1013_s3 + $0x48] sm:$0xff]  ;;  %v351_v17 = vld [vmem:[%s1013_s3 + $0x40] sm:$0xff]  ;;  %v350_v18 = vld [vmem:[%s1013_s3 + $0x38] sm:$0xff] }
  0x42   :  { %317 = vmatpush.msrb.mxu2 %v125_v0  ;;  %336 = vmatpush.msrb.mxu3 %v142_v1  ;;  %v349_v19 = vld [vmem:[%s1013_s3 + $0x30] sm:$0xff]  ;;  %v348_v20 = vld [vmem:[%s1013_s3 + $0x28] sm:$0xff]  ;;  %v347_v21 = vld [vmem:[%s1013_s3 + $0x20] sm:$0xff] }
  0x43   :  { %318 = vmatmul.f32.vlgmr.msrb.gmra.mxu2 %v172_v2  ;;  %277 = vmatpush.msrb.mxu0 %v93_v3  ;;  %v346_v22 = vld [vmem:[%s1013_s3 + $0x18] sm:$0xff]  ;;  %v345_v23 = vld [vmem:[%s1013_s3 + $0x10] sm:$0xff]  ;;  %v344_v24 = vld [vmem:[%s1013_s3 + $0x8] sm:$0xff] }
  0x44   :  { %296 = vmatpush.msrb.mxu1 %v110_v4  ;;  %337 = vmatpush.msrb.mxu3 %v141_v5  ;;  %v343_v25 = vld [vmem:[%s1013_s3] sm:$0xff]  ;;  %v399_v26 = vld [vmem:[%s1015_s5 + $0x78] sm:$0xff]  ;;  %v398_v27 = vld [vmem:[%s1015_s5 + $0x70] sm:$0xff] }
  0x45   :  { %278 = vmatmul.f32.vlgmr.msrb.gmra.mxu0 %v170_v6  ;;  %338 = vmatmul.f32.vlgmr.msrb.gmra.mxu3 %v173_v7  ;;  %v397_v28 = vld [vmem:[%s1015_s5 + $0x68] sm:$0xff]  ;;  %v396_v29 = vld [vmem:[%s1015_s5 + $0x60] sm:$0xff]  ;;  %v395_v30 = vld [vmem:[%s1015_s5 + $0x58] sm:$0xff] }
  0x46   :  { %297 = vmatpush.msrb.mxu1 %v109_v8  ;;  %363 = vmatpush.msra.mxu0 %v358_v9  ;;  %v442_v31 = vld [vmem:[%s1012_s2] ss:$0 sm:$0xff]  ;;  %v394_v32 = vld [vmem:[%s1015_s5 + $0x50] sm:$0xff]  ;;  %v393_v33 = vld [vmem:[%s1015_s5 + $0x48] sm:$0xff] }
  0x47   :  { %298 = vmatmul.f32.vlgmr.msrb.gmra.mxu1 %v171_v10  ;;  %v392_v36 = vld [vmem:[%s1015_s5 + $0x40] sm:$0xff]  ;;  %v391_v38 = vld [vmem:[%s1015_s5 + $0x38] sm:$0xff]  ;;  %v390_v41 = vld [vmem:[%s1015_s5 + $0x30] sm:$0xff] }
  0x48   :  { %364 = vmatpush.msra.mxu0 %v357_v11  ;;  %404 = vmatpush.msra.mxu1 %v399_v26  ;;  %v389_v44 = vld [vmem:[%s1015_s5 + $0x28] sm:$0xff]  ;;  %v388_v46 = vld [vmem:[%s1015_s5 + $0x20] sm:$0xff]  ;;  %v387_v49 = vld [vmem:[%s1015_s5 + $0x18] sm:$0xff] }
  0x49   :  { %v386_v57 = vld [vmem:[%s1015_s5 + $0x10] sm:$0xff]  ;;  %v385_v58 = vld [vmem:[%s1015_s5 + $0x8] sm:$0xff]  ;;  %v384_v59 = vld [vmem:[%s1015_s5] sm:$0xff] }
  0x4a   :  { %365 = vmatpush.msra.mxu0 %v356_v12  ;;  %405 = vmatpush.msra.mxu1 %v398_v27  ;;  %v443_v60 = vld [vmem:[%s1014_s4] ss:$0 sm:$0xff] }
  0x4b   :  { %v444_v0 = vld [vmem:[%s1016_s6] ss:$0 sm:$0xff] }
  0x4c   :  { %366 = vmatpush.msra.mxu0 %v355_v13  ;;  %406 = vmatpush.msra.mxu1 %v397_v28 }
  0x4e   :  { %367 = vmatpush.msra.mxu0 %v354_v14  ;;  %407 = vmatpush.msra.mxu1 %v396_v29 }
  0x50   :  { %368 = vmatpush.msra.mxu0 %v353_v15  ;;  %408 = vmatpush.msra.mxu1 %v395_v30 }
  0x52   :  { %369 = vmatpush.msra.mxu0 %v352_v16  ;;  %409 = vmatpush.msra.mxu1 %v394_v32 }
  0x54   :  { %370 = vmatpush.msra.mxu0 %v351_v17  ;;  %410 = vmatpush.msra.mxu1 %v393_v33 }
  0x56   :  { %371 = vmatpush.msra.mxu0 %v350_v18  ;;  %411 = vmatpush.msra.mxu1 %v392_v36 }
  0x58   :  { %372 = vmatpush.msra.mxu0 %v349_v19  ;;  %412 = vmatpush.msra.mxu1 %v391_v38 }
  0x5a   :  { %373 = vmatpush.msra.mxu0 %v348_v20  ;;  %413 = vmatpush.msra.mxu1 %v390_v41 }
  0x5c   :  { %374 = vmatpush.msra.mxu0 %v347_v21  ;;  %414 = vmatpush.msra.mxu1 %v389_v44 }
  0x5e   :  { %375 = vmatpush.msra.mxu0 %v346_v22  ;;  %415 = vmatpush.msra.mxu1 %v388_v46 }
  0x60   :  { %376 = vmatpush.msra.mxu0 %v345_v23  ;;  %416 = vmatpush.msra.mxu1 %v387_v49 }
  0x62   :  { %377 = vmatpush.msra.mxu0 %v344_v24  ;;  %417 = vmatpush.msra.mxu1 %v386_v57 }
  0x64   :  { %378 = vmatpush.msra.mxu0 %v343_v25  ;;  %418 = vmatpush.msra.mxu1 %v385_v58 }
  0x66   :  { %419 = vmatpush.msra.mxu1 %v384_v59 }
  0xb8   :  { %v199_v34 = vpop.f32.mrf.mxu0 }
  0xb9   :  { %v200_v35 = vadd.f32 %v442_v31, %v199_v34 }
  0xbb   :  { %v219_v37 = vpop.f32.mrf.mxu1 }
  0xbc   :  { %v220_v39 = vadd.f32 %v219_v37, %v200_v35  ;;  %v239_v40 = vpop.f32.mrf.mxu2 }
  0xbe   :  { %v240_v42 = vadd.f32 %v239_v40, %v220_v39 }
  0xbf   :  { %v259_v43 = vpop.f32.mrf.mxu3 }
  0xc0   :  { %v260_v45 = vadd.f32 %v259_v43, %v240_v42 }
  0xc2   :  { %v279_v47 = vpop.f32.mrf.mxu0 }
  0xc3   :  { %v280_v48 = vadd.f32 %v279_v47, %v260_v45 }
  0xc4   :  { %v299_v50 = vpop.f32.mrf.mxu1 }
  0xc5   :  { %v300_v51 = vadd.f32 %v299_v50, %v280_v48 }
  0xc6   :  { %v319_v52 = vpop.f32.mrf.mxu2 }
  0xc7   :  { %v320_v53 = vadd.f32 %v319_v52, %v300_v51 }
  0xc8   :  { %v339_v54 = vpop.f32.mrf.mxu3 }
  0xc9   :  { %v340_v55 = vadd.f32 %v339_v54, %v320_v53 }
  0xcb   :  { %v342_v56 = vmax.f32 %v340_v55, 0.0 }
  0xcd   :  { %379 = vmatmul.f32.vlgmr.msra.gmra.mxu0 %v342_v56 }
 0x14a   :  { %v380_v61 = vpop.f32.mrf.mxu0 }
 0x14b   :  { %v381_v62 = vadd.f32 %v443_v60, %v380_v61 }
 0x14d   :  { %v383_v63 = vmax.f32 %v381_v62, 0.0 }
 0x14f   :  { %420 = vmatmul.f32.vlgmr.msra.gmra.mxu1 %v383_v63 }
 0x1cc   :  { %v421_v1 = vpop.f32.mrf.mxu1 }
 0x1cd   :  { %v422_v2 = vadd.f32 %v444_v0, %v421_v1 }
 0x1cf   :  { %424 = vst [vmem:[#allocation2] sm:$0x3] %v422_v2 }
 0x1d0   :  { %435 = dma.vmem_to_hbm [thread:$0]  %s431_s21, 32, %s433_s24, [#allocation3]  }
 0x1d1   :  { %469 = dma.done.wait [#allocation3], 32  }
 0x1d2   :  { %470 = vsyncadd [#allocation3], 4294967264 }
 0x1d3   :  { %440 = vsyncpa [#allocation3], 1 }

</bundles_post_ra>
